<compile_context>
chip_gen: v6e
topology: v6e:2x2x1
jax: 0.10.0
libtpu: 0.0.40
codegen_flags: <defaults>
</compile_context>

<pallas_src>
import numpy as np
import jax
import jax.numpy as jnp
from jax import lax
from jax.experimental import pallas as pl
from jax.experimental.pallas import tpu as pltpu

H_IN, W_IN = 40, 4          # input spatial (NCHW: x is (N, 1, 40, 4))
C1 = 16                     # conv channel width
H2 = 37                     # conv2 output height (valid, k=4)
FLAT = C1 * H2              # 592 flattened features
FLAT_PAD = 640              # 5 * 128 lanes (zero-padded tail)
WP = 8                      # padded frame width: 1 left pad + 4 cols + 2 right pad + 1 align
HP = 42                     # frame rows actually touched (hp = 0..41)
LW = WP * C1                # 128 lanes: lane = frame_col*16 + channel


# ----------------------------- fused kernel -----------------------------------------
def _make_kernel(B):
    """Kernel closure over the batch-block size B (rows are interleaved: row = h*B + b)."""

    def kernel(p_ref, w1_ref, b1_ref, wd1_ref, bd1_ref, wd2_ref, bd2_ref,
               w2_ref, b2_ref, fw1_ref, fb1_ref, fw2_ref, fb2_ref,
               fw34_ref, fb34_ref, out_ref, a1_ref, a2_ref, a3_ref, feats_ref):
        f32 = jnp.float32
        bf16 = jnp.bfloat16
        zrow = jnp.zeros((B, LW), bf16)

        # Zero only the padding rows later convs read.  Done every grid step (three cheap
        # (B,128) stores) so scratch stays valid under megacore 'parallel' sharding.
        a1_ref[41 * B:42 * B, :] = zrow                # bottom 'same' pad row for conv_d1
        a2_ref[0:B, :] = zrow                          # top pad row for conv_d2 (dil=2)
        a2_ref[41 * B:42 * B, :] = zrow                # bottom pad row for conv_d2

        # ---- conv1: ONE matmul (40B,32)@(32,128); kh taps live in the patch lanes,
        #      kw taps + 'same' column padding are folded into the block-Toeplitz weight.
        y = jnp.dot(p_ref[...], w1_ref[...], preferred_element_type=f32)
        a1_ref[B:41 * B, :] = jnp.maximum(y + b1_ref[...], 0.0).astype(bf16)

        # ---- conv_d1 (k=2, dil=1, 'same'): 2 row taps, (kw, cin) folded into (128,128)
        acc = jnp.dot(a1_ref[B:41 * B, :], wd1_ref[0], preferred_element_type=f32)
        acc = acc + jnp.dot(a1_ref[2 * B:42 * B, :], wd1_ref[1], preferred_element_type=f32)
        a2_ref[B:41 * B, :] = jnp.maximum(acc + bd1_ref[...], 0.0).astype(bf16)

        # ---- conv_d2 (k=2, dil=2, 'same'): row taps at offsets h-1 / h+1
        acc = jnp.dot(a2_ref[0:40 * B, :], wd2_ref[0], preferred_element_type=f32)
        acc = acc + jnp.dot(a2_ref[2 * B:42 * B, :], wd2_ref[1], preferred_element_type=f32)
        a3_ref[B:41 * B, :] = jnp.maximum(acc + bd2_ref[...], 0.0).astype(bf16)

        # ---- conv2 (k=4, valid): ONE matmul (40B,128)@(128,64) with the 4 row taps
        #      concatenated along N; recombine with three row-shifted adds.
        yy = jnp.dot(a3_ref[B:41 * B, :], w2_ref[...], preferred_element_type=f32)
        acc = (yy[0:37 * B, 0:16] + yy[B:38 * B, 16:32]
               + yy[2 * B:39 * B, 32:48] + yy[3 * B:40 * B, 48:64])
        c2 = jnp.maximum(acc + b2_ref[...], 0.0).astype(bf16)     # (37B, 16): rows h*B+b

        # ---- flatten into FC layout with grouped 128-lane aligned stores:
        #      feats[b, h*16 + c] = c2[h*B + b, c]; lanes 592..639 explicitly zeroed.
        for g in range(5):
            lo = 8 * g
            n_h = min(8, H2 - lo)
            pieces = [c2[(lo + j) * B:(lo + j + 1) * B, :] for j in range(n_h)]
            if n_h < 8:
                pieces.append(jnp.zeros((B, C1 * (8 - n_h)), bf16))
            feats_ref[:, g * 128:(g + 1) * 128] = jnp.concatenate(pieces, axis=1)

        # ---- fused MLP (fc1 pre-permuted/padded to the (h, c) feature order; fc3/fc4 folded)
        z = jnp.dot(feats_ref[...], fw1_ref[...], preferred_element_type=f32) + fb1_ref[...]
        z = jnp.maximum(z, 0.0).astype(bf16)
        z = jnp.dot(z, fw2_ref[...], preferred_element_type=f32) + fb2_ref[...]
        z = jnp.maximum(z, 0.0).astype(bf16)
        out_ref[...] = jnp.dot(z, fw34_ref[...], preferred_element_type=f32) + fb34_ref[...]

    return kernel


# ----------------------------- wrapper-side weight folding --------------------------
def _fold_convd_weight(w, col_offsets):
    """w: (Co, Ci, 2, 2) -> (2, 128, 128) block-Toeplitz weights (one per row tap),
    mapping input frame col wi = wo + col_offsets[kw] to output frame col wo (1..4)."""
    wt = jnp.transpose(w, (2, 3, 1, 0))                    # (KH, KW, Ci, Co)
    mats = []
    for kh in range(2):
        m = jnp.zeros((WP, C1, WP, C1), jnp.float32)
        for kw in range(2):
            for wo in range(1, 1 + W_IN):
                wi = wo + col_offsets[kw]
                m = m.at[wi, :, wo, :].add(wt[kh, kw])
        mats.append(m.reshape(LW, LW))
    return jnp.stack(mats, axis=0).astype(jnp.bfloat16)


def _conv1_block_weight(w):
    """w: (16, 1, 4, 4) -> (32, 128): row = kh*8 + padded_col, col = frame_col*16 + co."""
    m = jnp.zeros((4, 8, WP, C1), jnp.float32)
    for kh in range(4):
        for wo in range(W_IN):
            for kw in range(4):
                m = m.at[kh, wo + kw, wo + 1, :].add(w[:, 0, kh, kw])
    return m.reshape(32, LW).astype(jnp.bfloat16)


def _conv2_cat_weight(w):
    """w: (16, 16, 4, 4) -> (128, 64): row = frame_col*16 + ci, col = kh*16 + co."""
    m = jnp.zeros((WP, C1, 4, C1), jnp.float32)
    for kh in range(4):
        for kw in range(4):
            m = m.at[kw + 1, :, kh, :].add(jnp.transpose(w[:, :, kh, kw]))
    return m.reshape(LW, 4 * C1).astype(jnp.bfloat16)


def _conv_frame_bias(b):
    v = jnp.zeros((WP, C1), jnp.float32).at[1:1 + W_IN, :].set(jnp.broadcast_to(b, (W_IN, C1)))
    return v.reshape(1, LW)                                # f32 (added to f32 accumulator)


def _pick_b_blk(n):
    """Batch-block size: multiple of 16 (bf16 sublane tile), <=128, and aimed at >=2 grid
    blocks so the 'parallel' batch axis can be split across both v7x TensorCores."""
    half = -(-n // 2)
    bb = ((max(half, 1) + 15) // 16) * 16
    return max(16, min(128, bb))


def _conv1_patches(x, bb):
    """x: (N,1,40,4) -> row-tap patches (nb*40*bb, 32) bf16, row = h*bb + b (in-block),
    lane = kh*8 + padded_col (1 left pad, 4 data, 2 'same' right pad, 1 alignment col)."""
    N = x.shape[0]
    x2d = x[:, 0].astype(jnp.float32)                      # (N, 40, 4)
    xpad = jnp.pad(x2d, ((0, 0), (1, 2), (1, 3)))          # (N, 43, 8)
    p = jnp.concatenate([xpad[:, kh:kh + H_IN, :] for kh in range(4)], axis=-1)  # (N,40,32)
    p = p.astype(jnp.bfloat16)
    nb = -(-N // bb)
    p = jnp.pad(p, ((0, nb * bb - N), (0, 0), (0, 0)))
    p = p.reshape(nb, bb, H_IN, 32).transpose(0, 2, 1, 3)
    return p.reshape(nb * H_IN * bb, 32), nb


# ----------------------------- forward ----------------------------------------------
def bpnetalike_forward(x, params):
    """x: (N, 1, 40, 4) float32 (NCHW). Returns (N, 1) float32."""
    N = x.shape[0]
    bb = _pick_b_blk(N)
    p, nb = _conv1_patches(x, bb)

    w1 = _conv1_block_weight(params['conv1_w'])
    b1v = _conv_frame_bias(params['conv1_b'])
    wd1 = _fold_convd_weight(params['convd1_w'], (0, 1))    # pad (0,1): wi = wo + kw
    bd1v = _conv_frame_bias(params['convd1_b'])
    wd2 = _fold_convd_weight(params['convd2_w'], (-1, 1))   # dil=2, pad (1,1): wi = wo +/- 1
    bd2v = _conv_frame_bias(params['convd2_b'])
    w2 = _conv2_cat_weight(params['conv2_w'])
    b2v = params['conv2_b'].reshape(1, C1).astype(jnp.float32)

    # fc1 input permuted so feature index = h*16 + c (matches in-kernel flatten), padded to 640
    fw1 = jnp.transpose(params['fc1_w'].reshape(160, C1, H2), (2, 1, 0)).reshape(FLAT, 160)
    fw1 = jnp.pad(fw1, ((0, FLAT_PAD - FLAT), (0, 0))).astype(jnp.bfloat16)
    fb1 = params['fc1_b'].reshape(1, 160).astype(jnp.float32)
    fw2 = params['fc2_w'].T.astype(jnp.bfloat16)
    fb2 = params['fc2_b'].reshape(1, 80).astype(jnp.float32)
    # fc3/fc4 folded (no nonlinearity between them)
    w34 = jnp.dot(params['fc3_w'].T, params['fc4_w'].T, precision=lax.Precision.HIGHEST)
    b34 = jnp.dot(params['fc3_b'], params['fc4_w'].T, precision=lax.Precision.HIGHEST) \
        + params['fc4_b']
    fw34 = w34.astype(jnp.bfloat16)
    fb34 = b34.reshape(1, 1).astype(jnp.float32)

    const2 = lambda i: (0, 0)
    const3 = lambda i: (0, 0, 0)

    out = pl.pallas_call(
        _make_kernel(bb),
        out_shape=jax.ShapeDtypeStruct((nb * bb, 1), jnp.float32),
        grid_spec=pltpu.PrefetchScalarGridSpec(
            num_scalar_prefetch=0,
            grid=(nb,),
            in_specs=[
                pl.BlockSpec((H_IN * bb, 32), lambda i: (i, 0)),   # conv1 row-tap patches
                pl.BlockSpec((32, LW), const2),                    # conv1 block weight
                pl.BlockSpec((1, LW), const2),                     # conv1 bias (frame lanes)
                pl.BlockSpec((2, LW, LW), const3),                 # conv_d1 block weights
                pl.BlockSpec((1, LW), const2),
                pl.BlockSpec((2, LW, LW), const3),                 # conv_d2 block weights
                pl.BlockSpec((1, LW), const2),
                pl.BlockSpec((LW, 4 * C1), const2),                # conv2 fused tap weight
                pl.BlockSpec((1, C1), const2),
                pl.BlockSpec((FLAT_PAD, 160), const2),             # fc1 (permuted, padded)
                pl.BlockSpec((1, 160), const2),
                pl.BlockSpec((160, 80), const2),                   # fc2
                pl.BlockSpec((1, 80), const2),
                pl.BlockSpec((80, 1), const2),                     # fc3 @ fc4 folded
                pl.BlockSpec((1, 1), const2),
            ],
            out_specs=pl.BlockSpec((bb, 1), lambda i: (i, 0)),
            scratch_shapes=[
                pltpu.VMEM((HP * bb, LW), jnp.bfloat16),           # conv1 activation frame
                pltpu.VMEM((HP * bb, LW), jnp.bfloat16),           # conv_d1 activation frame
                pltpu.VMEM((HP * bb, LW), jnp.bfloat16),           # conv_d2 activation frame
                pltpu.VMEM((bb, FLAT_PAD), jnp.bfloat16),          # flattened features
            ],
        ),
        compiler_params=pltpu.CompilerParams(dimension_semantics=("parallel",)),
    )(p, w1, b1v, wd1, bd1v, wd2, bd2v, w2, b2v,
      fw1, fb1, fw2, fb2, fw34, fb34)
    return out[:N]


# ----------------------------- params / reference -----------------------------------
def init_params(key):
    ks = jax.random.split(key, 16)

    def u(k, shape, fan_in):
        bound = 1.0 / float(np.sqrt(fan_in))
        return jax.random.uniform(k, shape, jnp.float32, -bound, bound)

    return {
        'conv1_w': u(ks[0], (16, 1, 4, 4), 1 * 16), 'conv1_b': u(ks[1], (16,), 1 * 16),
        'convd1_w': u(ks[2], (16, 16, 2, 2), 16 * 4), 'convd1_b': u(ks[3], (16,), 16 * 4),
        'convd2_w': u(ks[4], (16, 16, 2, 2), 16 * 4), 'convd2_b': u(ks[5], (16,), 16 * 4),
        'conv2_w': u(ks[6], (16, 16, 4, 4), 16 * 16), 'conv2_b': u(ks[7], (16,), 16 * 16),
        'fc1_w': u(ks[8], (160, 592), 592), 'fc1_b': u(ks[9], (160,), 592),
        'fc2_w': u(ks[10], (80, 160), 160), 'fc2_b': u(ks[11], (80,), 160),
        'fc3_w': u(ks[12], (16, 80), 80), 'fc3_b': u(ks[13], (16,), 80),
        'fc4_w': u(ks[14], (1, 16), 16), 'fc4_b': u(ks[15], (1,), 16),
    }


def reference_forward(x, params):
    """Plain-JAX replica of the PyTorch forward (NCHW), used only for validation."""
    x = x.astype(jnp.float32)
    dn = ('NCHW', 'OIHW', 'NCHW')

    def conv(y, w, b, padding, dilation=(1, 1)):
        y = lax.conv_general_dilated(y, w, window_strides=(1, 1), padding=padding,
                                     rhs_dilation=dilation, dimension_numbers=dn,
                                     precision=lax.Precision.HIGHEST)
        return y + b[None, :, None, None]

    y = jax.nn.relu(conv(x, params['conv1_w'], params['conv1_b'], ((1, 2), (1, 2))))
    y = jax.nn.relu(conv(y, params['convd1_w'], params['convd1_b'], ((0, 1), (0, 1))))
    y = jax.nn.relu(conv(y, params['convd2_w'], params['convd2_b'], ((1, 1), (1, 1)), (2, 2)))
    y = jax.nn.relu(conv(y, params['conv2_w'], params['conv2_b'], ((0, 0), (0, 0))))
    y = y.reshape(y.shape[0], -1)

    def lin(z, w, b):
        return jnp.dot(z, w.T, precision=lax.Precision.HIGHEST) + b

    y = jax.nn.relu(lin(y, params['fc1_w'], params['fc1_b']))
    y = jax.nn.relu(lin(y, params['fc2_w'], params['fc2_b']))
    y = lin(y, params['fc3_w'], params['fc3_b'])
    y = lin(y, params['fc4_w'], params['fc4_b'])
    return y


if __name__ == "__main__":
    key = jax.random.PRNGKey(0)
    pkey, xkey, xkey2 = jax.random.split(key, 3)
    params = init_params(pkey)

    # spatial size (40, 4) is fixed by the module (flatten -> 592); batch = 2
    x = jax.random.normal(xkey, (2, 1, H_IN, W_IN), jnp.float32)
    fwd = jax.jit(bpnetalike_forward)
    out = jax.block_until_ready(fwd(x, params))
    assert out.shape == (2, 1), out.shape
    ref = jax.block_until_ready(reference_forward(x, params))
    if not np.allclose(np.asarray(out), np.asarray(ref), rtol=3e-2, atol=3e-2):
        raise AssertionError(f"Pallas/reference mismatch:\n{out}\nvs\n{ref}")

    # extra check: multi-block grid + ragged batch tail (exercises the B_BLK / padding path)
    x2 = jax.random.normal(xkey2, (24, 1, H_IN, W_IN), jnp.float32)
    out2 = jax.block_until_ready(fwd(x2, params))
    ref2 = jax.block_until_ready(reference_forward(x2, params))
    if not np.allclose(np.asarray(out2), np.asarray(ref2), rtol=3e-2, atol=3e-2):
        raise AssertionError("Pallas/reference mismatch on batch=24")

    print("KERNEL_OK")
</pallas_src>

<mosaic_0001>
module attributes {stable_mosaic.version = 11 : i64} {
  func.func @kernel(%arg0: i32, %arg1: memref<640x32xbf16, #tpu.memory_space<vmem>>, %arg2: memref<32x128xbf16, #tpu.memory_space<vmem>>, %arg3: memref<1x128xf32, #tpu.memory_space<vmem>>, %arg4: memref<2x128x128xbf16, #tpu.memory_space<vmem>>, %arg5: memref<1x128xf32, #tpu.memory_space<vmem>>, %arg6: memref<2x128x128xbf16, #tpu.memory_space<vmem>>, %arg7: memref<1x128xf32, #tpu.memory_space<vmem>>, %arg8: memref<128x64xbf16, #tpu.memory_space<vmem>>, %arg9: memref<1x16xf32, #tpu.memory_space<vmem>>, %arg10: memref<640x160xbf16, #tpu.memory_space<vmem>>, %arg11: memref<1x160xf32, #tpu.memory_space<vmem>>, %arg12: memref<160x80xbf16, #tpu.memory_space<vmem>>, %arg13: memref<1x80xf32, #tpu.memory_space<vmem>>, %arg14: memref<80x1xbf16, #tpu.memory_space<vmem>>, %arg15: memref<1x1xf32, #tpu.memory_space<vmem>>, %arg16: memref<16x1xf32, #tpu.memory_space<vmem>>, %arg17: memref<672x128xbf16, #tpu.memory_space<vmem>>, %arg18: memref<672x128xbf16, #tpu.memory_space<vmem>>, %arg19: memref<672x128xbf16, #tpu.memory_space<vmem>>, %arg20: memref<16x640xbf16, #tpu.memory_space<vmem>>) attributes {dimension_semantics = [#tpu.dimension_semantics<parallel>], iteration_bounds = array<i64: 1>, scalar_prefetch = 0 : i64, scratch_operands = 4 : i64, tpu.core_type = #tpu.core_type<tc>, window_params = [{transform_indices = @transform_0, window_bounds = array<i64: 640, 32>}, {pipeline_mode = #tpu.pipeline_mode<synchronous>, transform_indices = @transform_1, window_bounds = array<i64: 32, 128>}, {pipeline_mode = #tpu.pipeline_mode<synchronous>, transform_indices = @transform_2, window_bounds = array<i64: 1, 128>}, {pipeline_mode = #tpu.pipeline_mode<synchronous>, transform_indices = @transform_3, window_bounds = array<i64: 2, 128, 128>}, {pipeline_mode = #tpu.pipeline_mode<synchronous>, transform_indices = @transform_4, window_bounds = array<i64: 1, 128>}, {pipeline_mode = #tpu.pipeline_mode<synchronous>, transform_indices = @transform_5, window_bounds = array<i64: 2, 128, 128>}, {pipeline_mode = #tpu.pipeline_mode<synchronous>, transform_indices = @transform_6, window_bounds = array<i64: 1, 128>}, {pipeline_mode = #tpu.pipeline_mode<synchronous>, transform_indices = @transform_7, window_bounds = array<i64: 128, 64>}, {pipeline_mode = #tpu.pipeline_mode<synchronous>, transform_indices = @transform_8, window_bounds = array<i64: 1, 16>}, {pipeline_mode = #tpu.pipeline_mode<synchronous>, transform_indices = @transform_9, window_bounds = array<i64: 640, 160>}, {pipeline_mode = #tpu.pipeline_mode<synchronous>, transform_indices = @transform_10, window_bounds = array<i64: 1, 160>}, {pipeline_mode = #tpu.pipeline_mode<synchronous>, transform_indices = @transform_11, window_bounds = array<i64: 160, 80>}, {pipeline_mode = #tpu.pipeline_mode<synchronous>, transform_indices = @transform_12, window_bounds = array<i64: 1, 80>}, {pipeline_mode = #tpu.pipeline_mode<synchronous>, transform_indices = @transform_13, window_bounds = array<i64: 80, 1>}, {pipeline_mode = #tpu.pipeline_mode<synchronous>, transform_indices = @transform_14, window_bounds = array<i64: 1, 1>}, {transform_indices = @transform_15, window_bounds = array<i64: 16, 1>}]} {
    %cst = arith.constant 0.000000e+00 : bf16
    %0 = vector.broadcast %cst : bf16 to vector<16x128xbf16>
    %c656 = arith.constant 656 : index
    %c0 = arith.constant 0 : index
    %1 = vector.load %arg17[%c656, %c0] : memref<672x128xbf16, #tpu.memory_space<vmem>>, vector<16x128xbf16>
    tpu.vector_store %arg17[%c656, %c0], %0 {strides = array<i32>} : memref<672x128xbf16, #tpu.memory_space<vmem>>, vector<16x128xbf16>,
    %c0_0 = arith.constant 0 : index
    %c0_1 = arith.constant 0 : index
    %2 = vector.load %arg18[%c0_0, %c0_1] : memref<672x128xbf16, #tpu.memory_space<vmem>>, vector<16x128xbf16>
    tpu.vector_store %arg18[%c0_0, %c0_1], %0 {strides = array<i32>} : memref<672x128xbf16, #tpu.memory_space<vmem>>, vector<16x128xbf16>,
    %c656_2 = arith.constant 656 : index
    %c0_3 = arith.constant 0 : index
    %3 = vector.load %arg18[%c656_2, %c0_3] : memref<672x128xbf16, #tpu.memory_space<vmem>>, vector<16x128xbf16>
    tpu.vector_store %arg18[%c656_2, %c0_3], %0 {strides = array<i32>} : memref<672x128xbf16, #tpu.memory_space<vmem>>, vector<16x128xbf16>,
    %c0_4 = arith.constant 0 : index
    %c0_5 = arith.constant 0 : index
    %4 = vector.load %arg1[%c0_4, %c0_5] : memref<640x32xbf16, #tpu.memory_space<vmem>>, vector<640x32xbf16>
    %c0_6 = arith.constant 0 : index
    %c0_7 = arith.constant 0 : index
    %5 = vector.load %arg2[%c0_6, %c0_7] : memref<32x128xbf16, #tpu.memory_space<vmem>>, vector<32x128xbf16>
    %cst_8 = arith.constant dense<0.000000e+00> : vector<640x128xf32>
    %6 = tpu.matmul %4, %5, %cst_8 {dimension_numbers = #tpu.dot_dimension_numbers<[1], [0], [0], [1], [0, 0, 1, 1], [], []>} : vector<640x32xbf16>, vector<32x128xbf16>, vector<640x128xf32> -> vector<640x128xf32>
    %c0_9 = arith.constant 0 : index
    %c0_10 = arith.constant 0 : index
    %7 = vector.load %arg3[%c0_9, %c0_10] : memref<1x128xf32, #tpu.memory_space<vmem>>, vector<1x128xf32>
    %8 = vector.broadcast %7 : vector<1x128xf32> to vector<640x128xf32>
    %9 = arith.addf %6, %8 : vector<640x128xf32>
    %cst_11 = arith.constant 0.000000e+00 : f32
    %10 = vector.broadcast %cst_11 : f32 to vector<640x128xf32>
    %11 = arith.maximumf %9, %10 : vector<640x128xf32>
    %12 = arith.truncf %11 : vector<640x128xf32> to vector<640x128xbf16>
    %c16 = arith.constant 16 : index
    %c0_12 = arith.constant 0 : index
    %13 = vector.load %arg17[%c16, %c0_12] : memref<672x128xbf16, #tpu.memory_space<vmem>>, vector<640x128xbf16>
    tpu.vector_store %arg17[%c16, %c0_12], %12 {strides = array<i32>} : memref<672x128xbf16, #tpu.memory_space<vmem>>, vector<640x128xbf16>,
    %c16_13 = arith.constant 16 : index
    %c0_14 = arith.constant 0 : index
    %14 = vector.load %arg17[%c16_13, %c0_14] : memref<672x128xbf16, #tpu.memory_space<vmem>>, vector<640x128xbf16>
    %c0_15 = arith.constant 0 : index
    %c0_16 = arith.constant 0 : index
    %c0_17 = arith.constant 0 : index
    %15 = vector.load %arg4[%c0_15, %c0_16, %c0_17] : memref<2x128x128xbf16, #tpu.memory_space<vmem>>, vector<1x128x128xbf16>
    %16 = vector.shape_cast %15 : vector<1x128x128xbf16> to vector<128x128xbf16>
    %cst_18 = arith.constant dense<0.000000e+00> : vector<640x128xf32>
    %17 = tpu.matmul %14, %16, %cst_18 {dimension_numbers = #tpu.dot_dimension_numbers<[1], [0], [0], [1], [0, 0, 1, 1], [], []>} : vector<640x128xbf16>, vector<128x128xbf16>, vector<640x128xf32> -> vector<640x128xf32>
    %c32 = arith.constant 32 : index
    %c0_19 = arith.constant 0 : index
    %18 = vector.load %arg17[%c32, %c0_19] : memref<672x128xbf16, #tpu.memory_space<vmem>>, vector<640x128xbf16>
    %c1 = arith.constant 1 : index
    %c0_20 = arith.constant 0 : index
    %c0_21 = arith.constant 0 : index
    %19 = vector.load %arg4[%c1, %c0_20, %c0_21] : memref<2x128x128xbf16, #tpu.memory_space<vmem>>, vector<1x128x128xbf16>
    %20 = vector.shape_cast %19 : vector<1x128x128xbf16> to vector<128x128xbf16>
    %cst_22 = arith.constant dense<0.000000e+00> : vector<640x128xf32>
    %21 = tpu.matmul %18, %20, %cst_22 {dimension_numbers = #tpu.dot_dimension_numbers<[1], [0], [0], [1], [0, 0, 1, 1], [], []>} : vector<640x128xbf16>, vector<128x128xbf16>, vector<640x128xf32> -> vector<640x128xf32>
    %22 = arith.addf %17, %21 : vector<640x128xf32>
    %c0_23 = arith.constant 0 : index
    %c0_24 = arith.constant 0 : index
    %23 = vector.load %arg5[%c0_23, %c0_24] : memref<1x128xf32, #tpu.memory_space<vmem>>, vector<1x128xf32>
    %24 = vector.broadcast %23 : vector<1x128xf32> to vector<640x128xf32>
    %25 = arith.addf %22, %24 : vector<640x128xf32>
    %cst_25 = arith.constant 0.000000e+00 : f32
    %26 = vector.broadcast %cst_25 : f32 to vector<640x128xf32>
    %27 = arith.maximumf %25, %26 : vector<640x128xf32>
    %28 = arith.truncf %27 : vector<640x128xf32> to vector<640x128xbf16>
    %c16_26 = arith.constant 16 : index
    %c0_27 = arith.constant 0 : index
    %29 = vector.load %arg18[%c16_26, %c0_27] : memref<672x128xbf16, #tpu.memory_space<vmem>>, vector<640x128xbf16>
    tpu.vector_store %arg18[%c16_26, %c0_27], %28 {strides = array<i32>} : memref<672x128xbf16, #tpu.memory_space<vmem>>, vector<640x128xbf16>,
    %c0_28 = arith.constant 0 : index
    %c0_29 = arith.constant 0 : index
    %30 = vector.load %arg18[%c0_28, %c0_29] : memref<672x128xbf16, #tpu.memory_space<vmem>>, vector<640x128xbf16>
    %c0_30 = arith.constant 0 : index
    %c0_31 = arith.constant 0 : index
    %c0_32 = arith.constant 0 : index
    %31 = vector.load %arg6[%c0_30, %c0_31, %c0_32] : memref<2x128x128xbf16, #tpu.memory_space<vmem>>, vector<1x128x128xbf16>
    %32 = vector.shape_cast %31 : vector<1x128x128xbf16> to vector<128x128xbf16>
    %cst_33 = arith.constant dense<0.000000e+00> : vector<640x128xf32>
    %33 = tpu.matmul %30, %32, %cst_33 {dimension_numbers = #tpu.dot_dimension_numbers<[1], [0], [0], [1], [0, 0, 1, 1], [], []>} : vector<640x128xbf16>, vector<128x128xbf16>, vector<640x128xf32> -> vector<640x128xf32>
    %c32_34 = arith.constant 32 : index
    %c0_35 = arith.constant 0 : index
    %34 = vector.load %arg18[%c32_34, %c0_35] : memref<672x128xbf16, #tpu.memory_space<vmem>>, vector<640x128xbf16>
    %c1_36 = arith.constant 1 : index
    %c0_37 = arith.constant 0 : index
    %c0_38 = arith.constant 0 : index
    %35 = vector.load %arg6[%c1_36, %c0_37, %c0_38] : memref<2x128x128xbf16, #tpu.memory_space<vmem>>, vector<1x128x128xbf16>
    %36 = vector.shape_cast %35 : vector<1x128x128xbf16> to vector<128x128xbf16>
    %cst_39 = arith.constant dense<0.000000e+00> : vector<640x128xf32>
    %37 = tpu.matmul %34, %36, %cst_39 {dimension_numbers = #tpu.dot_dimension_numbers<[1], [0], [0], [1], [0, 0, 1, 1], [], []>} : vector<640x128xbf16>, vector<128x128xbf16>, vector<640x128xf32> -> vector<640x128xf32>
    %38 = arith.addf %33, %37 : vector<640x128xf32>
    %c0_40 = arith.constant 0 : index
    %c0_41 = arith.constant 0 : index
    %39 = vector.load %arg7[%c0_40, %c0_41] : memref<1x128xf32, #tpu.memory_space<vmem>>, vector<1x128xf32>
    %40 = vector.broadcast %39 : vector<1x128xf32> to vector<640x128xf32>
    %41 = arith.addf %38, %40 : vector<640x128xf32>
    %cst_42 = arith.constant 0.000000e+00 : f32
    %42 = vector.broadcast %cst_42 : f32 to vector<640x128xf32>
    %43 = arith.maximumf %41, %42 : vector<640x128xf32>
    %44 = arith.truncf %43 : vector<640x128xf32> to vector<640x128xbf16>
    %c16_43 = arith.constant 16 : index
    %c0_44 = arith.constant 0 : index
    %45 = vector.load %arg19[%c16_43, %c0_44] : memref<672x128xbf16, #tpu.memory_space<vmem>>, vector<640x128xbf16>
    tpu.vector_store %arg19[%c16_43, %c0_44], %44 {strides = array<i32>} : memref<672x128xbf16, #tpu.memory_space<vmem>>, vector<640x128xbf16>,
    %c16_45 = arith.constant 16 : index
    %c0_46 = arith.constant 0 : index
    %46 = vector.load %arg19[%c16_45, %c0_46] : memref<672x128xbf16, #tpu.memory_space<vmem>>, vector<640x128xbf16>
    %c0_47 = arith.constant 0 : index
    %c0_48 = arith.constant 0 : index
    %47 = vector.load %arg8[%c0_47, %c0_48] : memref<128x64xbf16, #tpu.memory_space<vmem>>, vector<128x64xbf16>
    %cst_49 = arith.constant dense<0.000000e+00> : vector<640x64xf32>
    %48 = tpu.matmul %46, %47, %cst_49 {dimension_numbers = #tpu.dot_dimension_numbers<[1], [0], [0], [1], [0, 0, 1, 1], [], []>} : vector<640x128xbf16>, vector<128x64xbf16>, vector<640x64xf32> -> vector<640x64xf32>
    %49 = vector.extract_strided_slice %48 {offsets = [0, 0], sizes = [592, 16], strides = [1, 1]} : vector<640x64xf32> to vector<592x16xf32>
    %50 = vector.extract_strided_slice %48 {offsets = [16, 16], sizes = [592, 16], strides = [1, 1]} : vector<640x64xf32> to vector<592x16xf32>
    %51 = arith.addf %49, %50 : vector<592x16xf32>
    %52 = vector.extract_strided_slice %48 {offsets = [32, 32], sizes = [592, 16], strides = [1, 1]} : vector<640x64xf32> to vector<592x16xf32>
    %53 = arith.addf %51, %52 : vector<592x16xf32>
    %54 = vector.extract_strided_slice %48 {offsets = [48, 48], sizes = [592, 16], strides = [1, 1]} : vector<640x64xf32> to vector<592x16xf32>
    %55 = arith.addf %53, %54 : vector<592x16xf32>
    %c0_50 = arith.constant 0 : index
    %c0_51 = arith.constant 0 : index
    %56 = vector.load %arg9[%c0_50, %c0_51] : memref<1x16xf32, #tpu.memory_space<vmem>>, vector<1x16xf32>
    %57 = vector.broadcast %56 : vector<1x16xf32> to vector<592x16xf32>
    %58 = arith.addf %55, %57 : vector<592x16xf32>
    %cst_52 = arith.constant 0.000000e+00 : f32
    %59 = vector.broadcast %cst_52 : f32 to vector<592x16xf32>
    %60 = arith.maximumf %58, %59 : vector<592x16xf32>
    %61 = arith.truncf %60 : vector<592x16xf32> to vector<592x16xbf16>
    %62 = vector.extract_strided_slice %61 {offsets = [0, 0], sizes = [16, 16], strides = [1, 1]} : vector<592x16xbf16> to vector<16x16xbf16>
    %63 = vector.extract_strided_slice %61 {offsets = [16, 0], sizes = [16, 16], strides = [1, 1]} : vector<592x16xbf16> to vector<16x16xbf16>
    %64 = vector.extract_strided_slice %61 {offsets = [32, 0], sizes = [16, 16], strides = [1, 1]} : vector<592x16xbf16> to vector<16x16xbf16>
    %65 = vector.extract_strided_slice %61 {offsets = [48, 0], sizes = [16, 16], strides = [1, 1]} : vector<592x16xbf16> to vector<16x16xbf16>
    %66 = vector.extract_strided_slice %61 {offsets = [64, 0], sizes = [16, 16], strides = [1, 1]} : vector<592x16xbf16> to vector<16x16xbf16>
    %67 = vector.extract_strided_slice %61 {offsets = [80, 0], sizes = [16, 16], strides = [1, 1]} : vector<592x16xbf16> to vector<16x16xbf16>
    %68 = vector.extract_strided_slice %61 {offsets = [96, 0], sizes = [16, 16], strides = [1, 1]} : vector<592x16xbf16> to vector<16x16xbf16>
    %69 = vector.extract_strided_slice %61 {offsets = [112, 0], sizes = [16, 16], strides = [1, 1]} : vector<592x16xbf16> to vector<16x16xbf16>
    %70 = tpu.concatenate %62, %63, %64, %65, %66, %67, %68, %69 in 1 : vector<16x16xbf16>, vector<16x16xbf16>, vector<16x16xbf16>, vector<16x16xbf16>, vector<16x16xbf16>, vector<16x16xbf16>, vector<16x16xbf16>, vector<16x16xbf16> -> vector<16x128xbf16>
    %c0_53 = arith.constant 0 : index
    %c0_54 = arith.constant 0 : index
    %71 = vector.load %arg20[%c0_53, %c0_54] : memref<16x640xbf16, #tpu.memory_space<vmem>>, vector<16x128xbf16>
    tpu.vector_store %arg20[%c0_53, %c0_54], %70 {strides = array<i32>} : memref<16x640xbf16, #tpu.memory_space<vmem>>, vector<16x128xbf16>,
    %72 = vector.extract_strided_slice %61 {offsets = [128, 0], sizes = [16, 16], strides = [1, 1]} : vector<592x16xbf16> to vector<16x16xbf16>
    %73 = vector.extract_strided_slice %61 {offsets = [144, 0], sizes = [16, 16], strides = [1, 1]} : vector<592x16xbf16> to vector<16x16xbf16>
    %74 = vector.extract_strided_slice %61 {offsets = [160, 0], sizes = [16, 16], strides = [1, 1]} : vector<592x16xbf16> to vector<16x16xbf16>
    %75 = vector.extract_strided_slice %61 {offsets = [176, 0], sizes = [16, 16], strides = [1, 1]} : vector<592x16xbf16> to vector<16x16xbf16>
    %76 = vector.extract_strided_slice %61 {offsets = [192, 0], sizes = [16, 16], strides = [1, 1]} : vector<592x16xbf16> to vector<16x16xbf16>
    %77 = vector.extract_strided_slice %61 {offsets = [208, 0], sizes = [16, 16], strides = [1, 1]} : vector<592x16xbf16> to vector<16x16xbf16>
    %78 = vector.extract_strided_slice %61 {offsets = [224, 0], sizes = [16, 16], strides = [1, 1]} : vector<592x16xbf16> to vector<16x16xbf16>
    %79 = vector.extract_strided_slice %61 {offsets = [240, 0], sizes = [16, 16], strides = [1, 1]} : vector<592x16xbf16> to vector<16x16xbf16>
    %80 = tpu.concatenate %72, %73, %74, %75, %76, %77, %78, %79 in 1 : vector<16x16xbf16>, vector<16x16xbf16>, vector<16x16xbf16>, vector<16x16xbf16>, vector<16x16xbf16>, vector<16x16xbf16>, vector<16x16xbf16>, vector<16x16xbf16> -> vector<16x128xbf16>
    %c0_55 = arith.constant 0 : index
    %c128 = arith.constant 128 : index
    %81 = vector.load %arg20[%c0_55, %c128] : memref<16x640xbf16, #tpu.memory_space<vmem>>, vector<16x128xbf16>
    tpu.vector_store %arg20[%c0_55, %c128], %80 {strides = array<i32>} : memref<16x640xbf16, #tpu.memory_space<vmem>>, vector<16x128xbf16>,
    %82 = vector.extract_strided_slice %61 {offsets = [256, 0], sizes = [16, 16], strides = [1, 1]} : vector<592x16xbf16> to vector<16x16xbf16>
    %83 = vector.extract_strided_slice %61 {offsets = [272, 0], sizes = [16, 16], strides = [1, 1]} : vector<592x16xbf16> to vector<16x16xbf16>
    %84 = vector.extract_strided_slice %61 {offsets = [288, 0], sizes = [16, 16], strides = [1, 1]} : vector<592x16xbf16> to vector<16x16xbf16>
    %85 = vector.extract_strided_slice %61 {offsets = [304, 0], sizes = [16, 16], strides = [1, 1]} : vector<592x16xbf16> to vector<16x16xbf16>
    %86 = vector.extract_strided_slice %61 {offsets = [320, 0], sizes = [16, 16], strides = [1, 1]} : vector<592x16xbf16> to vector<16x16xbf16>
    %87 = vector.extract_strided_slice %61 {offsets = [336, 0], sizes = [16, 16], strides = [1, 1]} : vector<592x16xbf16> to vector<16x16xbf16>
    %88 = vector.extract_strided_slice %61 {offsets = [352, 0], sizes = [16, 16], strides = [1, 1]} : vector<592x16xbf16> to vector<16x16xbf16>
    %89 = vector.extract_strided_slice %61 {offsets = [368, 0], sizes = [16, 16], strides = [1, 1]} : vector<592x16xbf16> to vector<16x16xbf16>
    %90 = tpu.concatenate %82, %83, %84, %85, %86, %87, %88, %89 in 1 : vector<16x16xbf16>, vector<16x16xbf16>, vector<16x16xbf16>, vector<16x16xbf16>, vector<16x16xbf16>, vector<16x16xbf16>, vector<16x16xbf16>, vector<16x16xbf16> -> vector<16x128xbf16>
    %c0_56 = arith.constant 0 : index
    %c256 = arith.constant 256 : index
    %91 = vector.load %arg20[%c0_56, %c256] : memref<16x640xbf16, #tpu.memory_space<vmem>>, vector<16x128xbf16>
    tpu.vector_store %arg20[%c0_56, %c256], %90 {strides = array<i32>} : memref<16x640xbf16, #tpu.memory_space<vmem>>, vector<16x128xbf16>,
    %92 = vector.extract_strided_slice %61 {offsets = [384, 0], sizes = [16, 16], strides = [1, 1]} : vector<592x16xbf16> to vector<16x16xbf16>
    %93 = vector.extract_strided_slice %61 {offsets = [400, 0], sizes = [16, 16], strides = [1, 1]} : vector<592x16xbf16> to vector<16x16xbf16>
    %94 = vector.extract_strided_slice %61 {offsets = [416, 0], sizes = [16, 16], strides = [1, 1]} : vector<592x16xbf16> to vector<16x16xbf16>
    %95 = vector.extract_strided_slice %61 {offsets = [432, 0], sizes = [16, 16], strides = [1, 1]} : vector<592x16xbf16> to vector<16x16xbf16>
    %96 = vector.extract_strided_slice %61 {offsets = [448, 0], sizes = [16, 16], strides = [1, 1]} : vector<592x16xbf16> to vector<16x16xbf16>
    %97 = vector.extract_strided_slice %61 {offsets = [464, 0], sizes = [16, 16], strides = [1, 1]} : vector<592x16xbf16> to vector<16x16xbf16>
    %98 = vector.extract_strided_slice %61 {offsets = [480, 0], sizes = [16, 16], strides = [1, 1]} : vector<592x16xbf16> to vector<16x16xbf16>
    %99 = vector.extract_strided_slice %61 {offsets = [496, 0], sizes = [16, 16], strides = [1, 1]} : vector<592x16xbf16> to vector<16x16xbf16>
    %100 = tpu.concatenate %92, %93, %94, %95, %96, %97, %98, %99 in 1 : vector<16x16xbf16>, vector<16x16xbf16>, vector<16x16xbf16>, vector<16x16xbf16>, vector<16x16xbf16>, vector<16x16xbf16>, vector<16x16xbf16>, vector<16x16xbf16> -> vector<16x128xbf16>
    %c0_57 = arith.constant 0 : index
    %c384 = arith.constant 384 : index
    %101 = vector.load %arg20[%c0_57, %c384] : memref<16x640xbf16, #tpu.memory_space<vmem>>, vector<16x128xbf16>
    tpu.vector_store %arg20[%c0_57, %c384], %100 {strides = array<i32>} : memref<16x640xbf16, #tpu.memory_space<vmem>>, vector<16x128xbf16>,
    %102 = vector.extract_strided_slice %61 {offsets = [512, 0], sizes = [16, 16], strides = [1, 1]} : vector<592x16xbf16> to vector<16x16xbf16>
    %103 = vector.extract_strided_slice %61 {offsets = [528, 0], sizes = [16, 16], strides = [1, 1]} : vector<592x16xbf16> to vector<16x16xbf16>
    %104 = vector.extract_strided_slice %61 {offsets = [544, 0], sizes = [16, 16], strides = [1, 1]} : vector<592x16xbf16> to vector<16x16xbf16>
    %105 = vector.extract_strided_slice %61 {offsets = [560, 0], sizes = [16, 16], strides = [1, 1]} : vector<592x16xbf16> to vector<16x16xbf16>
    %106 = vector.extract_strided_slice %61 {offsets = [576, 0], sizes = [16, 16], strides = [1, 1]} : vector<592x16xbf16> to vector<16x16xbf16>
    %cst_58 = arith.constant 0.000000e+00 : bf16
    %107 = vector.broadcast %cst_58 : bf16 to vector<16x48xbf16>
    %108 = tpu.concatenate %102, %103, %104, %105, %106, %107 in 1 : vector<16x16xbf16>, vector<16x16xbf16>, vector<16x16xbf16>, vector<16x16xbf16>, vector<16x16xbf16>, vector<16x48xbf16> -> vector<16x128xbf16>
    %c0_59 = arith.constant 0 : index
    %c512 = arith.constant 512 : index
    %109 = vector.load %arg20[%c0_59, %c512] : memref<16x640xbf16, #tpu.memory_space<vmem>>, vector<16x128xbf16>
    tpu.vector_store %arg20[%c0_59, %c512], %108 {strides = array<i32>} : memref<16x640xbf16, #tpu.memory_space<vmem>>, vector<16x128xbf16>,
    %c0_60 = arith.constant 0 : index
    %c0_61 = arith.constant 0 : index
    %110 = vector.load %arg20[%c0_60, %c0_61] : memref<16x640xbf16, #tpu.memory_space<vmem>>, vector<16x640xbf16>
    %c0_62 = arith.constant 0 : index
    %c0_63 = arith.constant 0 : index
    %111 = vector.load %arg10[%c0_62, %c0_63] : memref<640x160xbf16, #tpu.memory_space<vmem>>, vector<640x160xbf16>
    %cst_64 = arith.constant dense<0.000000e+00> : vector<16x160xf32>
    %112 = tpu.matmul %110, %111, %cst_64 {dimension_numbers = #tpu.dot_dimension_numbers<[1], [0], [0], [1], [0, 0, 1, 1], [], []>} : vector<16x640xbf16>, vector<640x160xbf16>, vector<16x160xf32> -> vector<16x160xf32>
    %c0_65 = arith.constant 0 : index
    %c0_66 = arith.constant 0 : index
    %113 = vector.load %arg11[%c0_65, %c0_66] : memref<1x160xf32, #tpu.memory_space<vmem>>, vector<1x160xf32>
    %114 = vector.broadcast %113 : vector<1x160xf32> to vector<16x160xf32>
    %115 = arith.addf %112, %114 : vector<16x160xf32>
    %cst_67 = arith.constant 0.000000e+00 : f32
    %116 = vector.broadcast %cst_67 : f32 to vector<16x160xf32>
    %117 = arith.maximumf %115, %116 : vector<16x160xf32>
    %118 = arith.truncf %117 : vector<16x160xf32> to vector<16x160xbf16>
    %c0_68 = arith.constant 0 : index
    %c0_69 = arith.constant 0 : index
    %119 = vector.load %arg12[%c0_68, %c0_69] : memref<160x80xbf16, #tpu.memory_space<vmem>>, vector<160x80xbf16>
    %cst_70 = arith.constant dense<0.000000e+00> : vector<16x80xf32>
    %120 = tpu.matmul %118, %119, %cst_70 {dimension_numbers = #tpu.dot_dimension_numbers<[1], [0], [0], [1], [0, 0, 1, 1], [], []>} : vector<16x160xbf16>, vector<160x80xbf16>, vector<16x80xf32> -> vector<16x80xf32>
    %c0_71 = arith.constant 0 : index
    %c0_72 = arith.constant 0 : index
    %121 = vector.load %arg13[%c0_71, %c0_72] : memref<1x80xf32, #tpu.memory_space<vmem>>, vector<1x80xf32>
    %122 = vector.broadcast %121 : vector<1x80xf32> to vector<16x80xf32>
    %123 = arith.addf %120, %122 : vector<16x80xf32>
    %cst_73 = arith.constant 0.000000e+00 : f32
    %124 = vector.broadcast %cst_73 : f32 to vector<16x80xf32>
    %125 = arith.maximumf %123, %124 : vector<16x80xf32>
    %126 = arith.truncf %125 : vector<16x80xf32> to vector<16x80xbf16>
    %c0_74 = arith.constant 0 : index
    %c0_75 = arith.constant 0 : index
    %127 = vector.load %arg14[%c0_74, %c0_75] : memref<80x1xbf16, #tpu.memory_space<vmem>>, vector<80x1xbf16>
    %cst_76 = arith.constant dense<0.000000e+00> : vector<16x1xf32>
    %128 = tpu.matmul %126, %127, %cst_76 {dimension_numbers = #tpu.dot_dimension_numbers<[1], [0], [0], [1], [0, 0, 1, 1], [], []>} : vector<16x80xbf16>, vector<80x1xbf16>, vector<16x1xf32> -> vector<16x1xf32>
    %c0_77 = arith.constant 0 : index
    %c0_78 = arith.constant 0 : index
    %129 = vector.load %arg15[%c0_77, %c0_78] : memref<1x1xf32, #tpu.memory_space<vmem>>, vector<1x1xf32>
    %130 = vector.broadcast %129 : vector<1x1xf32> to vector<16x1xf32>
    %131 = arith.addf %128, %130 : vector<16x1xf32>
    %c0_79 = arith.constant 0 : index
    %c0_80 = arith.constant 0 : index
    %132 = vector.load %arg16[%c0_79, %c0_80] : memref<16x1xf32, #tpu.memory_space<vmem>>, vector<16x1xf32>
    tpu.vector_store %arg16[%c0_79, %c0_80], %131 {strides = array<i32>} : memref<16x1xf32, #tpu.memory_space<vmem>>, vector<16x1xf32>,
    return
  }
  func.func @transform_0(%arg0: i32) -> (i32, i32) {
    %c0_i32 = arith.constant 0 : i32
    %c0_i32_0 = arith.constant 0 : i32
    return %arg0, %c0_i32 : i32, i32
  }
  func.func @transform_1(%arg0: i32) -> (i32, i32) {
    %c0_i32 = arith.constant 0 : i32
    %c0_i32_0 = arith.constant 0 : i32
    %c0_i32_1 = arith.constant 0 : i32
    return %c0_i32, %c0_i32_0 : i32, i32
  }
  func.func @transform_2(%arg0: i32) -> (i32, i32) {
    %c0_i32 = arith.constant 0 : i32
    %c0_i32_0 = arith.constant 0 : i32
    %c0_i32_1 = arith.constant 0 : i32
    return %c0_i32, %c0_i32_0 : i32, i32
  }
  func.func @transform_3(%arg0: i32) -> (i32, i32, i32) {
    %c0_i32 = arith.constant 0 : i32
    %c0_i32_0 = arith.constant 0 : i32
    %c0_i32_1 = arith.constant 0 : i32
    %c0_i32_2 = arith.constant 0 : i32
    return %c0_i32, %c0_i32_0, %c0_i32_1 : i32, i32, i32
  }
  func.func @transform_4(%arg0: i32) -> (i32, i32) {
    %c0_i32 = arith.constant 0 : i32
    %c0_i32_0 = arith.constant 0 : i32
    %c0_i32_1 = arith.constant 0 : i32
    return %c0_i32, %c0_i32_0 : i32, i32
  }
  func.func @transform_5(%arg0: i32) -> (i32, i32, i32) {
    %c0_i32 = arith.constant 0 : i32
    %c0_i32_0 = arith.constant 0 : i32
    %c0_i32_1 = arith.constant 0 : i32
    %c0_i32_2 = arith.constant 0 : i32
    return %c0_i32, %c0_i32_0, %c0_i32_1 : i32, i32, i32
  }
  func.func @transform_6(%arg0: i32) -> (i32, i32) {
    %c0_i32 = arith.constant 0 : i32
    %c0_i32_0 = arith.constant 0 : i32
    %c0_i32_1 = arith.constant 0 : i32
    return %c0_i32, %c0_i32_0 : i32, i32
  }
  func.func @transform_7(%arg0: i32) -> (i32, i32) {
    %c0_i32 = arith.constant 0 : i32
    %c0_i32_0 = arith.constant 0 : i32
    %c0_i32_1 = arith.constant 0 : i32
    return %c0_i32, %c0_i32_0 : i32, i32
  }
  func.func @transform_8(%arg0: i32) -> (i32, i32) {
    %c0_i32 = arith.constant 0 : i32
    %c0_i32_0 = arith.constant 0 : i32
    %c0_i32_1 = arith.constant 0 : i32
    return %c0_i32, %c0_i32_0 : i32, i32
  }
  func.func @transform_9(%arg0: i32) -> (i32, i32) {
    %c0_i32 = arith.constant 0 : i32
    %c0_i32_0 = arith.constant 0 : i32
    %c0_i32_1 = arith.constant 0 : i32
    return %c0_i32, %c0_i32_0 : i32, i32
  }
  func.func @transform_10(%arg0: i32) -> (i32, i32) {
    %c0_i32 = arith.constant 0 : i32
    %c0_i32_0 = arith.constant 0 : i32
    %c0_i32_1 = arith.constant 0 : i32
    return %c0_i32, %c0_i32_0 : i32, i32
  }
  func.func @transform_11(%arg0: i32) -> (i32, i32) {
    %c0_i32 = arith.constant 0 : i32
    %c0_i32_0 = arith.constant 0 : i32
    %c0_i32_1 = arith.constant 0 : i32
    return %c0_i32, %c0_i32_0 : i32, i32
  }
  func.func @transform_12(%arg0: i32) -> (i32, i32) {
    %c0_i32 = arith.constant 0 : i32
    %c0_i32_0 = arith.constant 0 : i32
    %c0_i32_1 = arith.constant 0 : i32
    return %c0_i32, %c0_i32_0 : i32, i32
  }
  func.func @transform_13(%arg0: i32) -> (i32, i32) {
    %c0_i32 = arith.constant 0 : i32
    %c0_i32_0 = arith.constant 0 : i32
    %c0_i32_1 = arith.constant 0 : i32
    return %c0_i32, %c0_i32_0 : i32, i32
  }
  func.func @transform_14(%arg0: i32) -> (i32, i32) {
    %c0_i32 = arith.constant 0 : i32
    %c0_i32_0 = arith.constant 0 : i32
    %c0_i32_1 = arith.constant 0 : i32
    return %c0_i32, %c0_i32_0 : i32, i32
  }
  func.func @transform_15(%arg0: i32) -> (i32, i32) {
    %c0_i32 = arith.constant 0 : i32
    %c0_i32_0 = arith.constant 0 : i32
    return %arg0, %c0_i32 : i32, i32
  }
}

</mosaic_0001>

<bundles_post_ra>
// kernel: bpnetalike_forward.1
= control target key start
LH: loop header
LB: loop body
LE: loop exit
PB: predicated region body
PF: predicated region fallthrough
CT: control target
= control target key end

     0   :  { %vm362_vm0 = vcmask 261120   ;;  %s11382_s20 = smov 96   ;;  %s11383_s21 = smov 80   ;;  %vm7316_vm1 = vcmask 130048   ;;  %vm7322_vm2 = vcmask 392192   ;;  %vm7325_vm3 = vcmask 523264   ;;  %s13762_s1 = inlined_call_operand.vmem [shape: bf16[32,128], index: 1, kind: input, shape index: {}]   ;;  %s13763_s0 = inlined_call_operand.vmem [shape: bf16[640,32], index: 0, kind: input, shape index: {}]   ;;  %s13764_s3 = inlined_call_operand.vmem [shape: bf16[2,128,128], index: 3, kind: input, shape index: {}]   ;;  %s13765_s5 = inlined_call_operand.vmem [shape: bf16[2,128,128], index: 5, kind: input, shape index: {}]   ;;  %s13766_s2 = inlined_call_operand.vmem [shape: f32[1,128], index: 2, kind: input, shape index: {}]   ;;  %s13767_s7 = inlined_call_operand.vmem [shape: bf16[128,64], index: 7, kind: input, shape index: {}]   ;;  %s13768_s4 = inlined_call_operand.vmem [shape: f32[1,128], index: 4, kind: input, shape index: {}]   ;;  %s13769_s6 = inlined_call_operand.vmem [shape: f32[1,128], index: 6, kind: input, shape index: {}]   ;;  %s13770_s9 = inlined_call_operand.vmem [shape: bf16[640,160], index: 9, kind: input, shape index: {}]   ;;  %s13771_s8 = inlined_call_operand.vmem [shape: f32[1,16], index: 8, kind: input, shape index: {}]   ;;  %s13772_s11 = inlined_call_operand.vmem [shape: bf16[160,80], index: 11, kind: input, shape index: {}]   ;;  %s13773_s13 = inlined_call_operand.vmem [shape: bf16[80,1], index: 13, kind: input, shape index: {}]   ;;  %s13774_s10 = inlined_call_operand.vmem [shape: f32[1,160], index: 10, kind: input, shape index: {}]   ;;  %s13775_s14 = inlined_call_operand.<no memory space> [shape: f32[1,1], index: 14, kind: input, shape index: {}]   ;;  %s13776_s12 = inlined_call_operand.vmem [shape: f32[1,80], index: 12, kind: input, shape index: {}]   ;;  %s13777_s15 = inlined_call_operand.vmem [shape: f32[16,1], index: 15, kind: output, shape index: {}]  }
   0x1   :  { %v10952_v0 = vld [vmem:[%s13762_s1 + $0x8] sm:$0xff]   ;;  %v10953_v1 = vld [vmem:[%s13762_s1] sm:$0xff]   ;;  %v10956_v4 = vld [vmem:[%s13763_s0 + $0x10] sm:$0xff]   ;;  %s11385_s30 = smov 32   ;;  %s11386_s19 = smov 48   ;;  %vm7328_vm4 = vcmask 654336  }
   0x2   :  { %10364 = vmatprep.subr.bf16.mxu0 %v10952_v0  ;;  %v10954_v2 = vld [vmem:[%s13763_s0] sm:$0xff]   ;;  %v10955_v3 = vld [vmem:[%s13763_s0 + $0x8] sm:$0xff]   ;;  %v10957_v5 = vld [vmem:[%s13763_s0 + $0x18] sm:$0xff]   ;;  %s11387_s27 = smov 64   ;;  %vm7331_vm5 = vcmask 785408   ;;  %vm7334_vm6 = vcmask 916480  }
   0x3   :  { %10365 = vmatpush3.bf16.msra.mxu0 %v10952_v0  ;;  %10368 = vmatprep.mubr.msk.bf16.mxu0 %vm362_vm0, %v10954_v2  ;;  %v10958_v6 = vld [vmem:[%s13763_s0 + $0x20] sm:$0xff]   ;;  %v10970_v7 = vld [vmem:[%s13764_s3 + $0x38] sm:$0xff]   ;;  %v10973_v8 = vld [vmem:[%s13764_s3 + $0x30] sm:$0xff]   ;;  %vm11389_vm7 = vmmov 0   ;;  %vm8397_vm8 = vcmask 7168  }
   0x4   :  { %10366 = vmatprep.subr.bf16.mxu0 %v10953_v1  ;;  %v10959_v9 = vld [vmem:[%s13763_s0 + $0x28] sm:$0xff]   ;;  %v10960_v10 = vld [vmem:[%s13763_s0 + $0x30] sm:$0xff]   ;;  %v10961_v12 = vld [vmem:[%s13763_s0 + $0x38] sm:$0xff]  }
   0x5   :  { %v10978_v11 = vld [vmem:[%s13764_s3 + $0x28] sm:$0xff]   ;;  %v10962_v13 = vld [vmem:[%s13763_s0 + $0x40] sm:$0xff]   ;;  %v10990_v16 = vld [vmem:[%s13764_s3 + $0x18] sm:$0xff]  }
   0x6   :  { %v10985_v14 = vld [vmem:[%s13764_s3 + $0x20] sm:$0xff]   ;;  %v10963_v15 = vld [vmem:[%s13763_s0 + $0x48] sm:$0xff]   ;;  %v10964_v17 = vld [vmem:[%s13763_s0 + $0x50] sm:$0xff]  }
   0x7   :  { %10367 = vmatpush3.bf16.msra.mxu0 %v10953_v1  ;;  %v10997_v18 = vld [vmem:[%s13764_s3 + $0x10] sm:$0xff]   ;;  %v10965_v19 = vld [vmem:[%s13763_s0 + $0x58] sm:$0xff]   ;;  %v10966_v20 = vld [vmem:[%s13763_s0 + $0x60] sm:$0xff]  }
   0x8   :  { %10544 = vmatprep.subr.bf16.mxu0 %v10970_v7  ;;  %v11000_v21 = vld [vmem:[%s13764_s3 + $0x8] sm:$0xff]   ;;  %v11001_v22 = vld [vmem:[%s13764_s3 + $0x78] sm:$0xff]   ;;  %v10968_v24 = vld [vmem:[%s13763_s0 + $0x70] sm:$0xff]  }
   0x9   :  { %10448 = vmatprep.subr.bf16.mxu1 %v11001_v22  ;;  %v10967_v23 = vld [vmem:[%s13763_s0 + $0x68] sm:$0xff]   ;;  %v10969_v25 = vld [vmem:[%s13763_s0 + $0x78] sm:$0xff]   ;;  %v10971_v26 = vld [vmem:[%s13763_s0 + $0x80] sm:$0xff]  }
   0xa   :  { %10369 = vmatmul.mubr.msk.bf16.vlgmr.msra.gmra.mxu0 %vm362_vm0, %v10955_v3  ;;  %10449 = vmatpush3.bf16.msra.mxu1 %v11001_v22  ;;  %v10972_v27 = vld [vmem:[%s13763_s0 + $0x88] sm:$0xff]   ;;  %v10974_v28 = vld [vmem:[%s13763_s0 + $0x90] sm:$0xff]   ;;  %v10975_v30 = vld [vmem:[%s13763_s0 + $0x98] sm:$0xff]  }
   0xb   :  { %10372 = vmatprep.mubr.msk.bf16.mxu0 %vm362_vm0, %v10956_v4  ;;  %10545 = vmatpush3.bf16.msra.mxu0 %v10970_v7  ;;  %v11002_v29 = vld [vmem:[%s13764_s3 + $0x70] sm:$0xff]   ;;  %v11003_v31 = vld [vmem:[%s13764_s3 + $0x68] sm:$0xff]   ;;  %v10976_v32 = vld [vmem:[%s13763_s0 + $0xa0] sm:$0xff]  }
   0xc   :  { %10546 = vmatprep.subr.bf16.mxu0 %v10973_v8  ;;  %10450 = vmatprep.subr.bf16.mxu1 %v11002_v29  ;;  %v11005_v33 = vld [vmem:[%s13764_s3 + $0x60] sm:$0xff]   ;;  %v10977_v34 = vld [vmem:[%s13763_s0 + $0xa8] sm:$0xff]   ;;  %v11006_v35 = vld [vmem:[%s13764_s3 + $0x58] sm:$0xff]  }
   0xd   :  { %v10979_v36 = vld [vmem:[%s13763_s0 + $0xb0] sm:$0xff]   ;;  %v11004_v37 = vld [vmem:[%s13764_s3] sm:$0xff]   ;;  %v10980_v39 = vld [vmem:[%s13763_s0 + $0xb8] sm:$0xff]  }
   0xe   :  { %10451 = vmatpush3.bf16.msra.mxu1 %v11002_v29  ;;  %v11007_v38 = vld [vmem:[%s13764_s3 + $0x50] sm:$0xff]   ;;  %v11009_v40 = vld [vmem:[%s13764_s3 + $0x48] sm:$0xff]   ;;  %v10981_v41 = vld [vmem:[%s13763_s0 + $0xc0] sm:$0xff]  }
   0xf   :  { %10547 = vmatpush3.bf16.msra.mxu0 %v10973_v8  ;;  %10452 = vmatprep.subr.bf16.mxu1 %v11003_v31  ;;  %v11012_v42 = vld [vmem:[%s13764_s3 + $0x40] sm:$0xff]   ;;  %v10982_v43 = vld [vmem:[%s13763_s0 + $0xc8] sm:$0xff]   ;;  %v10983_v44 = vld [vmem:[%s13763_s0 + $0xd0] sm:$0xff]  }
  0x10   :  { %10548 = vmatprep.subr.bf16.mxu0 %v10978_v11  ;;  %v10984_v45 = vld [vmem:[%s13763_s0 + $0xd8] sm:$0xff]   ;;  %v10986_v46 = vld [vmem:[%s13763_s0 + $0xe0] sm:$0xff]   ;;  %v10987_v47 = vld [vmem:[%s13763_s0 + $0xe8] sm:$0xff]  }
  0x11   :  { %v10988_v48 = vld [vmem:[%s13763_s0 + $0xf0] sm:$0xff]   ;;  %v10989_v49 = vld [vmem:[%s13763_s0 + $0xf8] sm:$0xff]   ;;  %v10991_v50 = vld [vmem:[%s13763_s0 + $0x100] sm:$0xff]  }
  0x12   :  { %10373 = vmatmul.mubr.msk.bf16.gmra.mxu0 %vm362_vm0, %v10957_v5  ;;  %10453 = vmatpush3.bf16.msra.mxu1 %v11003_v31  ;;  %v10992_v51 = vld [vmem:[%s13763_s0 + $0x108] sm:$0xff]   ;;  %v10993_v52 = vld [vmem:[%s13763_s0 + $0x110] sm:$0xff]   ;;  %v10994_v53 = vld [vmem:[%s13763_s0 + $0x118] sm:$0xff]  }
  0x13   :  { %10376 = vmatprep.mubr.msk.bf16.mxu0 %vm362_vm0, %v10958_v6  ;;  %10549 = vmatpush3.bf16.msra.mxu0 %v10978_v11  ;;  %v10995_v54 = vld [vmem:[%s13763_s0 + $0x120] sm:$0xff]   ;;  %v10996_v55 = vld [vmem:[%s13763_s0 + $0x128] sm:$0xff]   ;;  %v10998_v56 = vld [vmem:[%s13763_s0 + $0x130] sm:$0xff]  }
  0x14   :  { %10550 = vmatprep.subr.bf16.mxu0 %v10985_v14  ;;  %10454 = vmatprep.subr.bf16.mxu1 %v11005_v33  ;;  %v10999_v57 = vld [vmem:[%s13763_s0 + $0x138] sm:$0xff]   ;;  %v11696_v61 = vld [vmem:[%s13766_s2] ss:$0 sm:$0xff] }
  0x15   :  { %v11686_v58 = vld [vmem:[%s13765_s5 + $0x78] sm:$0xff]  }
  0x16   :  { %10455 = vmatpush3.bf16.msra.mxu1 %v11005_v33  ;;  %v11043_v59 = vld [vmem:[%s13765_s5 + $0x38] sm:$0xff]  }
  0x17   :  { %10551 = vmatpush3.bf16.msra.mxu0 %v10985_v14  ;;  %10456 = vmatprep.subr.bf16.mxu1 %v11006_v35 }
  0x18   :  { %10552 = vmatprep.subr.bf16.mxu0 %v10990_v16 }
  0x1a   :  { %10377 = vmatmul.mubr.msk.bf16.gmra.mxu0 %vm362_vm0, %v10959_v9  ;;  %10457 = vmatpush3.bf16.msra.mxu1 %v11006_v35 }
  0x1b   :  { %10380 = vmatprep.mubr.msk.bf16.mxu0 %vm362_vm0, %v10960_v10  ;;  %10553 = vmatpush3.bf16.msra.mxu0 %v10990_v16 }
  0x1c   :  { %10554 = vmatprep.subr.bf16.mxu0 %v10997_v18  ;;  %10458 = vmatprep.subr.bf16.mxu1 %v11007_v38 }
  0x1e   :  { %10459 = vmatpush3.bf16.msra.mxu1 %v11007_v38 }
  0x1f   :  { %10555 = vmatpush3.bf16.msra.mxu0 %v10997_v18  ;;  %10460 = vmatprep.subr.bf16.mxu1 %v11009_v40 }
  0x20   :  { %10556 = vmatprep.subr.bf16.mxu0 %v11000_v21 }
  0x22   :  { %10381 = vmatmul.mubr.msk.bf16.gmra.mxu0 %vm362_vm0, %v10961_v12  ;;  %10461 = vmatpush3.bf16.msra.mxu1 %v11009_v40 }
  0x23   :  { %10384 = vmatprep.mubr.msk.bf16.mxu0 %vm362_vm0, %v10962_v13  ;;  %10557 = vmatpush3.bf16.msra.mxu0 %v11000_v21 }
  0x24   :  { %10558 = vmatprep.subr.bf16.mxu0 %v11004_v37  ;;  %10462 = vmatprep.subr.bf16.mxu1 %v11012_v42 }
  0x26   :  { %10463 = vmatpush3.bf16.msra.mxu1 %v11012_v42 }
  0x27   :  { %10559 = vmatpush3.bf16.msra.mxu0 %v11004_v37  ;;  %10640 = vmatprep.subr.bf16.mxu1 %v11686_v58 }
  0x28   :  { %10736 = vmatprep.subr.bf16.mxu0 %v11043_v59 }
  0x2a   :  { %10385 = vmatmul.mubr.msk.bf16.gmra.mxu0 %vm362_vm0, %v10963_v15 }
  0x2b   :  { %10388 = vmatprep.mubr.msk.bf16.mxu0 %vm362_vm0, %v10964_v17 }
  0x32   :  { %10389 = vmatmul.mubr.msk.bf16.gmra.mxu0 %vm362_vm0, %v10965_v19 }
  0x33   :  { %10392 = vmatprep.mubr.msk.bf16.mxu0 %vm362_vm0, %v10966_v20 }
  0x3a   :  { %10393 = vmatmul.mubr.msk.bf16.gmra.mxu0 %vm362_vm0, %v10967_v23 }
  0x3b   :  { %10396 = vmatprep.mubr.msk.bf16.mxu0 %vm362_vm0, %v10968_v24 }
  0x42   :  { %10397 = vmatmul.mubr.msk.bf16.gmra.mxu0 %vm362_vm0, %v10969_v25 }
  0x43   :  { %10400 = vmatprep.mubr.msk.bf16.mxu0 %vm362_vm0, %v10971_v26 }
  0x4a   :  { %10401 = vmatmul.mubr.msk.bf16.gmra.mxu0 %vm362_vm0, %v10972_v27 }
  0x4b   :  { %10404 = vmatprep.mubr.msk.bf16.mxu0 %vm362_vm0, %v10974_v28 }
  0x52   :  { %10405 = vmatmul.mubr.msk.bf16.gmra.mxu0 %vm362_vm0, %v10975_v30 }
  0x53   :  { %10408 = vmatprep.mubr.msk.bf16.mxu0 %vm362_vm0, %v10976_v32 }
  0x5a   :  { %10409 = vmatmul.mubr.msk.bf16.gmra.mxu0 %vm362_vm0, %v10977_v34  ;;  %v11049_v34 = vld [vmem:[%s13765_s5 + $0x30] sm:$0xff]  }
  0x5b   :  { %10412 = vmatprep.mubr.msk.bf16.mxu0 %vm362_vm0, %v10979_v36 }
  0x62   :  { %10413 = vmatmul.mubr.msk.bf16.gmra.mxu0 %vm362_vm0, %v10980_v39 }
  0x63   :  { %10416 = vmatprep.mubr.msk.bf16.mxu0 %vm362_vm0, %v10981_v41 }
  0x6a   :  { %10417 = vmatmul.mubr.msk.bf16.gmra.mxu0 %vm362_vm0, %v10982_v43  ;;  %v11061_v43 = vld [vmem:[%s13765_s5 + $0x28] sm:$0xff]  }
  0x6b   :  { %10420 = vmatprep.mubr.msk.bf16.mxu0 %vm362_vm0, %v10983_v44 }
  0x72   :  { %10421 = vmatmul.mubr.msk.bf16.gmra.mxu0 %vm362_vm0, %v10984_v45 }
  0x73   :  { %10424 = vmatprep.mubr.msk.bf16.mxu0 %vm362_vm0, %v10986_v46 }
  0x7a   :  { %10425 = vmatmul.mubr.msk.bf16.gmra.mxu0 %vm362_vm0, %v10987_v47 }
  0x7b   :  { %10428 = vmatprep.mubr.msk.bf16.mxu0 %vm362_vm0, %v10988_v48  ;;  %v11048_v48 = vld [vmem:[%s13765_s5 + $0x70] sm:$0xff]  }
  0x82   :  { %10429 = vmatmul.mubr.msk.bf16.gmra.mxu0 %vm362_vm0, %v10989_v49 }
  0x83   :  { %10432 = vmatprep.mubr.msk.bf16.mxu0 %vm362_vm0, %v10991_v50 }
  0x8a   :  { %10433 = vmatmul.mubr.msk.bf16.gmra.mxu0 %vm362_vm0, %v10992_v51 }
  0x8b   :  { %10436 = vmatprep.mubr.msk.bf16.mxu0 %vm362_vm0, %v10993_v52 }
  0x92   :  { %10437 = vmatmul.mubr.msk.bf16.gmra.mxu0 %vm362_vm0, %v10994_v53 }
  0x93   :  { %10440 = vmatprep.mubr.msk.bf16.mxu0 %vm362_vm0, %v10995_v54 }
  0x9a   :  { %10441 = vmatmul.mubr.msk.bf16.gmra.mxu0 %vm362_vm0, %v10996_v55 }
  0x9b   :  { %10444 = vmatprep.mubr.msk.bf16.mxu0 %vm362_vm0, %v10998_v56  ;;  %v11073_v56 = vld [vmem:[%s13765_s5 + $0x20] sm:$0xff]  }
  0xa2   :  { %10445 = vmatmul.mubr.msk.bf16.gmra.mxu0 %vm362_vm0, %v10999_v57 }
  0xca   :  { %v10370_v60 = vpop.f32.mrf.mxu0 }
  0xcb   :  { %v526_v63 = vadd.f32 %v10370_v60, %v11696_v61 }
  0xcc   :  { %v517_v62 = vpop.f32.mrf.mxu0 }
  0xcd   :  { %v518_v1 = vadd.f32 %v11696_v61, %v517_v62  ;;  %v838_v4 = vmax.f32 %v526_v63, 0.0 }
  0xce   :  { %v10371_v0 = vpop.f32.mrf.mxu0 }
  0xcf   :  { %v529_v2 = vadd.f32 %v10371_v0, %v11696_v61  ;;  %v836_v8 = vmax.f32 %v518_v1, 0.0 }
  0xd0   :  { %v520_v3 = vpop.f32.mrf.mxu0 }
  0xd1   :  { %v839_v5 = vmax.f32 %v529_v2, 0.0  ;;  %v521_v6 = vadd.f32 %v11696_v61, %v520_v3  ;;  %v11060_v3 = vld [vmem:[%s13765_s5 + $0x68] sm:$0xff]  }
  0xd2   :  { %v10374_v7 = vpop.f32.mrf.mxu0 }
  0xd3   :  { %v9364_v9 = vpack.c.bf16 %v839_v5, %v838_v4  ;;  %v837_v10 = vmax.f32 %v521_v6, 0.0  ;;  %v542_v13 = vadd.f32 %v10374_v7, %v11696_v61 }
  0xd4   :  { %v533_v11 = vpop.f32.mrf.mxu0 }
  0xd5   :  { %9957 = vst [vmem:[#allocation2 + $0x10] sm:$0xff] %v9364_v9   ;;  %v9359_v12 = vpack.c.bf16 %v837_v10, %v836_v8  ;;  %v534_v15 = vadd.f32 %v11696_v61, %v533_v11  ;;  %v842_v18 = vmax.f32 %v542_v13, 0.0 }
  0xd6   :  { %v10375_v14 = vpop.f32.mrf.mxu0 }
  0xd7   :  { %9956 = vst [vmem:[#allocation2 + $0x8] sm:$0xff] %v9359_v12   ;;  %v545_v16 = vadd.f32 %v10375_v14, %v11696_v61  ;;  %v840_v22 = vmax.f32 %v534_v15, 0.0  ;;  %v11085_v15 = vld [vmem:[%s13765_s5 + $0x18] sm:$0xff]  }
  0xd8   :  { %v536_v17 = vpop.f32.mrf.mxu0 }
  0xd9   :  { %v843_v19 = vmax.f32 %v545_v16, 0.0  ;;  %v537_v20 = vadd.f32 %v11696_v61, %v536_v17 }
  0xda   :  { %v10378_v21 = vpop.f32.mrf.mxu0 }
  0xdb   :  { %v9374_v23 = vpack.c.bf16 %v843_v19, %v842_v18  ;;  %v841_v24 = vmax.f32 %v537_v20, 0.0  ;;  %v558_v28 = vadd.f32 %v10378_v21, %v11696_v61 }
  0xdc   :  { %v549_v25 = vpop.f32.mrf.mxu0  ;;  %v11008_v26 = vld [vmem:[#allocation2 + $0x10] sm:$0xff]  }
  0xdd   :  { %9959 = vst [vmem:[#allocation2 + $0x20] sm:$0xff] %v9374_v23   ;;  %v9369_v27 = vpack.c.bf16 %v841_v24, %v840_v22  ;;  %10464 = vmatprep.mubr.bf16.mxu1 %v11008_v26  ;;  %v550_v31 = vadd.f32 %v11696_v61, %v549_v25  ;;  %v11011_v33 = vld [vmem:[#allocation2 + $0x10] sm:$0xff]   ;;  %v846_v36 = vmax.f32 %v558_v28, 0.0  ;;  %v11084_v23 = vld [vmem:[%s13765_s5 + $0x58] sm:$0xff]  }
  0xde   :  { %v10379_v29 = vpop.f32.mrf.mxu0  ;;  %v11010_v30 = vld [vmem:[#allocation2 + $0x8] sm:$0xff]  }
  0xdf   :  { %9958 = vst [vmem:[#allocation2 + $0x18] sm:$0xff] %v9369_v27   ;;  %v561_v32 = vadd.f32 %v10379_v29, %v11696_v61  ;;  %10560 = vmatprep.mubr.bf16.mxu0 %v11010_v30  ;;  %v844_v40 = vmax.f32 %v550_v31, 0.0 }
  0xe0   :  { %v552_v35 = vpop.f32.mrf.mxu0  ;;  %10561 = vmatmul.mubr.bf16.vlgmr.msra.gmra.mxu0 %v11011_v33 }
  0xe1   :  { %v847_v37 = vmax.f32 %v561_v32, 0.0  ;;  %v553_v38 = vadd.f32 %v11696_v61, %v552_v35  ;;  %10737 = vmatpush3.bf16.msra.mxu0 %v11043_v59  ;;  %v11096_v35 = vld [vmem:[%s13765_s5 + $0x50] sm:$0xff]  }
  0xe2   :  { %v10382_v39 = vpop.f32.mrf.mxu0  ;;  %10738 = vmatprep.subr.bf16.mxu0 %v11049_v34 }
  0xe3   :  { %v9384_v41 = vpack.c.bf16 %v847_v37, %v846_v36  ;;  %v845_v42 = vmax.f32 %v553_v38, 0.0  ;;  %v574_v46 = vadd.f32 %v10382_v39, %v11696_v61  ;;  %v11097_v36 = vld [vmem:[%s13765_s5 + $0x10] sm:$0xff]  }
  0xe4   :  { %v565_v44 = vpop.f32.mrf.mxu0  ;;  %v11015_v47 = vld [vmem:[#allocation2 + $0x20] sm:$0xff]  }
  0xe5   :  { %9961 = vst [vmem:[#allocation2 + $0x30] sm:$0xff] %v9384_v41   ;;  %v9379_v45 = vpack.c.bf16 %v845_v42, %v844_v40  ;;  %10739 = vmatpush3.bf16.msra.mxu0 %v11049_v34  ;;  %v566_v51 = vadd.f32 %v11696_v61, %v565_v44  ;;  %v11016_v55 = vld [vmem:[#allocation2 + $0x20] sm:$0xff]   ;;  %v850_v57 = vmax.f32 %v574_v46, 0.0  ;;  %v13778_v41 = vmov 0  }
  0xe6   :  { %v10383_v49 = vpop.f32.mrf.mxu0  ;;  %v11013_v50 = vld [vmem:[#allocation2 + $0x18] sm:$0xff]   ;;  %10740 = vmatprep.subr.bf16.mxu0 %v11061_v43  ;;  %53 = vst [vmem:[#allocation2 + $0x148] sm:$0xf] %v13778_v41  ;;  %54 = vst [vmem:[#allocation2 + $0x14c] sm:$0xf] %v13778_v41 }
  0xe7   :  { %9960 = vst [vmem:[#allocation2 + $0x28] sm:$0xff] %v9379_v45   ;;  %v577_v52 = vadd.f32 %v10383_v49, %v11696_v61  ;;  %v11014_v53 = vld [vmem:[#allocation2 + $0x18] sm:$0xff]   ;;  %10465 = vmatmul.mubr.bf16.vlgmr.msra.gmra.mxu1 %v11013_v50  ;;  %v848_v63 = vmax.f32 %v566_v51, 0.0  ;;  %55 = vst [vmem:[#allocation3] sm:$0xf] %v13778_v41 }
  0xe8   :  { %v568_v54 = vpop.f32.mrf.mxu0  ;;  %10564 = vmatprep.mubr.bf16.mxu0 %v11014_v53  ;;  %10468 = vmatprep.mubr.bf16.mxu1 %v11015_v47  ;;  %56 = vst [vmem:[#allocation3 + $0x4] sm:$0xf] %v13778_v41  ;;  %57 = vst [vmem:[#allocation3 + $0x148] sm:$0xf] %v13778_v41 }
  0xe9   :  { %v851_v59 = vmax.f32 %v577_v52, 0.0  ;;  %v569_v60 = vadd.f32 %v11696_v61, %v568_v54  ;;  %10565 = vmatmul.mubr.bf16.gmra.mxu0 %v11016_v55  ;;  %10641 = vmatpush3.bf16.msra.mxu1 %v11686_v58  ;;  %v11072_v58 = vld [vmem:[%s13765_s5 + $0x60] sm:$0xff]   ;;  %58 = vst [vmem:[#allocation3 + $0x14c] sm:$0xf] %v13778_v41 }
  0xea   :  { %v10386_v62 = vpop.f32.mrf.mxu0  ;;  %10642 = vmatprep.subr.bf16.mxu1 %v11048_v48  ;;  %10741 = vmatpush3.bf16.msra.mxu0 %v11061_v43 }
  0xeb   :  { %v9394_v0 = vpack.c.bf16 %v851_v59, %v850_v57  ;;  %v849_v1 = vmax.f32 %v569_v60, 0.0  ;;  %v590_v2 = vadd.f32 %v10386_v62, %v11696_v61  ;;  %10742 = vmatprep.subr.bf16.mxu0 %v11073_v56  ;;  %v11103_v57 = vld [vmem:[%s13765_s5 + $0x8] sm:$0xff]  }
  0xec   :  { %v581_v4 = vpop.f32.mrf.mxu0  ;;  %v11019_v7 = vld [vmem:[#allocation2 + $0x30] sm:$0xff]  }
  0xed   :  { %9963 = vst [vmem:[#allocation2 + $0x40] sm:$0xff] %v9394_v0   ;;  %v9389_v5 = vpack.c.bf16 %v849_v1, %v848_v63  ;;  %v582_v6 = vadd.f32 %v11696_v61, %v581_v4  ;;  %10643 = vmatpush3.bf16.msra.mxu1 %v11048_v48  ;;  %v854_v10 = vmax.f32 %v590_v2, 0.0  ;;  %v11020_v14 = vld [vmem:[#allocation2 + $0x30] sm:$0xff]  }
  0xee   :  { %v10387_v8 = vpop.f32.mrf.mxu0  ;;  %v11017_v9 = vld [vmem:[#allocation2 + $0x28] sm:$0xff]   ;;  %10644 = vmatprep.subr.bf16.mxu1 %v11060_v3  ;;  %10743 = vmatpush3.bf16.msra.mxu0 %v11073_v56 }
  0xef   :  { %9962 = vst [vmem:[#allocation2 + $0x38] sm:$0xff] %v9389_v5   ;;  %v593_v11 = vadd.f32 %v10387_v8, %v11696_v61  ;;  %v11018_v12 = vld [vmem:[#allocation2 + $0x28] sm:$0xff]   ;;  %10469 = vmatmul.mubr.bf16.gmra.mxu1 %v11017_v9  ;;  %v852_v16 = vmax.f32 %v582_v6, 0.0  ;;  %10744 = vmatprep.subr.bf16.mxu0 %v11085_v15 }
  0xf0   :  { %v584_v13 = vpop.f32.mrf.mxu0  ;;  %10568 = vmatprep.mubr.bf16.mxu0 %v11018_v12  ;;  %10472 = vmatprep.mubr.bf16.mxu1 %v11019_v7  ;;  %v11102_v56 = vld [vmem:[%s13765_s5 + $0x48] sm:$0xff]  }
  0xf1   :  { %v855_v17 = vmax.f32 %v593_v11, 0.0  ;;  %v585_v18 = vadd.f32 %v11696_v61, %v584_v13  ;;  %10569 = vmatmul.mubr.bf16.gmra.mxu0 %v11020_v14  ;;  %10645 = vmatpush3.bf16.msra.mxu1 %v11060_v3 }
  0xf2   :  { %v10390_v19 = vpop.f32.mrf.mxu0  ;;  %10646 = vmatprep.subr.bf16.mxu1 %v11072_v58  ;;  %10745 = vmatpush3.bf16.msra.mxu0 %v11085_v15 }
  0xf3   :  { %v9404_v20 = vpack.c.bf16 %v855_v17, %v854_v10  ;;  %v853_v21 = vmax.f32 %v585_v18, 0.0  ;;  %v606_v22 = vadd.f32 %v10390_v19, %v11696_v61  ;;  %10746 = vmatprep.subr.bf16.mxu0 %v11097_v36 }
  0xf4   :  { %v597_v24 = vpop.f32.mrf.mxu0  ;;  %v11023_v27 = vld [vmem:[#allocation2 + $0x40] sm:$0xff]  }
  0xf5   :  { %9965 = vst [vmem:[#allocation2 + $0x50] sm:$0xff] %v9404_v20   ;;  %v9399_v25 = vpack.c.bf16 %v853_v21, %v852_v16  ;;  %v598_v26 = vadd.f32 %v11696_v61, %v597_v24  ;;  %10647 = vmatpush3.bf16.msra.mxu1 %v11072_v58  ;;  %v858_v30 = vmax.f32 %v606_v22, 0.0  ;;  %v11024_v34 = vld [vmem:[#allocation2 + $0x40] sm:$0xff]  }
  0xf6   :  { %v10391_v28 = vpop.f32.mrf.mxu0  ;;  %v11021_v29 = vld [vmem:[#allocation2 + $0x38] sm:$0xff]   ;;  %10648 = vmatprep.subr.bf16.mxu1 %v11084_v23  ;;  %10747 = vmatpush3.bf16.msra.mxu0 %v11097_v36 }
  0xf7   :  { %9964 = vst [vmem:[#allocation2 + $0x48] sm:$0xff] %v9399_v25   ;;  %v609_v31 = vadd.f32 %v10391_v28, %v11696_v61  ;;  %v11022_v32 = vld [vmem:[#allocation2 + $0x38] sm:$0xff]   ;;  %10473 = vmatmul.mubr.bf16.gmra.mxu1 %v11021_v29  ;;  %v856_v37 = vmax.f32 %v598_v26, 0.0  ;;  %10748 = vmatprep.subr.bf16.mxu0 %v11103_v57 }
  0xf8   :  { %v600_v33 = vpop.f32.mrf.mxu0  ;;  %10572 = vmatprep.mubr.bf16.mxu0 %v11022_v32  ;;  %10476 = vmatprep.mubr.bf16.mxu1 %v11023_v27 }
  0xf9   :  { %v859_v38 = vmax.f32 %v609_v31, 0.0  ;;  %v601_v39 = vadd.f32 %v11696_v61, %v600_v33  ;;  %10573 = vmatmul.mubr.bf16.gmra.mxu0 %v11024_v34  ;;  %10649 = vmatpush3.bf16.msra.mxu1 %v11084_v23 }
  0xfa   :  { %v10394_v40 = vpop.f32.mrf.mxu0  ;;  %10650 = vmatprep.subr.bf16.mxu1 %v11096_v35  ;;  %10749 = vmatpush3.bf16.msra.mxu0 %v11103_v57 }
  0xfb   :  { %v9414_v42 = vpack.c.bf16 %v859_v38, %v858_v30  ;;  %v857_v43 = vmax.f32 %v601_v39, 0.0  ;;  %v622_v44 = vadd.f32 %v10394_v40, %v11696_v61 }
  0xfc   :  { %v613_v45 = vpop.f32.mrf.mxu0  ;;  %v11027_v46 = vld [vmem:[#allocation2 + $0x50] sm:$0xff]  }
  0xfd   :  { %9967 = vst [vmem:[#allocation2 + $0x60] sm:$0xff] %v9414_v42   ;;  %v9409_v47 = vpack.c.bf16 %v857_v43, %v856_v37  ;;  %v614_v48 = vadd.f32 %v11696_v61, %v613_v45  ;;  %v11028_v49 = vld [vmem:[#allocation2 + $0x50] sm:$0xff]   ;;  %10651 = vmatpush3.bf16.msra.mxu1 %v11096_v35  ;;  %v862_v52 = vmax.f32 %v622_v44, 0.0 }
  0xfe   :  { %v10395_v50 = vpop.f32.mrf.mxu0  ;;  %v11025_v51 = vld [vmem:[#allocation2 + $0x48] sm:$0xff]   ;;  %10652 = vmatprep.subr.bf16.mxu1 %v11102_v56 }
  0xff   :  { %9966 = vst [vmem:[#allocation2 + $0x58] sm:$0xff] %v9409_v47   ;;  %v625_v53 = vadd.f32 %v10395_v50, %v11696_v61  ;;  %v11026_v54 = vld [vmem:[#allocation2 + $0x48] sm:$0xff]   ;;  %10477 = vmatmul.mubr.bf16.gmra.mxu1 %v11025_v51  ;;  %v860_v59 = vmax.f32 %v614_v48, 0.0 }
 0x100   :  { %v616_v55 = vpop.f32.mrf.mxu0  ;;  %10576 = vmatprep.mubr.bf16.mxu0 %v11026_v54  ;;  %10480 = vmatprep.mubr.bf16.mxu1 %v11028_v49 }
 0x101   :  { %v863_v60 = vmax.f32 %v625_v53, 0.0  ;;  %v617_v62 = vadd.f32 %v11696_v61, %v616_v55  ;;  %10577 = vmatmul.mubr.bf16.gmra.mxu0 %v11027_v46  ;;  %10653 = vmatpush3.bf16.msra.mxu1 %v11102_v56 }
 0x102   :  { %v10398_v63 = vpop.f32.mrf.mxu0 }
 0x103   :  { %v9424_v0 = vpack.c.bf16 %v863_v60, %v862_v52  ;;  %v861_v1 = vmax.f32 %v617_v62, 0.0  ;;  %v638_v2 = vadd.f32 %v10398_v63, %v11696_v61 }
 0x104   :  { %v629_v3 = vpop.f32.mrf.mxu0  ;;  %v11030_v4 = vld [vmem:[#allocation2 + $0x60] sm:$0xff]  }
 0x105   :  { %9969 = vst [vmem:[#allocation2 + $0x70] sm:$0xff] %v9424_v0   ;;  %v9419_v5 = vpack.c.bf16 %v861_v1, %v860_v59  ;;  %v630_v6 = vadd.f32 %v11696_v61, %v629_v3  ;;  %v11033_v7 = vld [vmem:[#allocation2 + $0x60] sm:$0xff]   ;;  %v866_v9 = vmax.f32 %v638_v2, 0.0 }
 0x106   :  { %v10399_v58 = vpop.f32.mrf.mxu0  ;;  %v11029_v8 = vld [vmem:[#allocation2 + $0x58] sm:$0xff]  }
 0x107   :  { %9968 = vst [vmem:[#allocation2 + $0x68] sm:$0xff] %v9419_v5   ;;  %v641_v10 = vadd.f32 %v10399_v58, %v11696_v61  ;;  %v11031_v11 = vld [vmem:[#allocation2 + $0x58] sm:$0xff]   ;;  %10481 = vmatmul.mubr.bf16.gmra.mxu1 %v11029_v8  ;;  %v864_v13 = vmax.f32 %v630_v6, 0.0 }
 0x108   :  { %v632_v12 = vpop.f32.mrf.mxu0  ;;  %10484 = vmatprep.mubr.bf16.mxu1 %v11030_v4  ;;  %10580 = vmatprep.mubr.bf16.mxu0 %v11031_v11 }
 0x109   :  { %v867_v14 = vmax.f32 %v641_v10, 0.0  ;;  %v633_v15 = vadd.f32 %v11696_v61, %v632_v12  ;;  %10581 = vmatmul.mubr.bf16.gmra.mxu0 %v11033_v7 }
 0x10a   :  { %v10402_v16 = vpop.f32.mrf.mxu0 }
 0x10b   :  { %v9434_v17 = vpack.c.bf16 %v867_v14, %v866_v9  ;;  %v865_v18 = vmax.f32 %v633_v15, 0.0  ;;  %v654_v19 = vadd.f32 %v10402_v16, %v11696_v61 }
 0x10c   :  { %v645_v20 = vpop.f32.mrf.mxu0  ;;  %v11034_v21 = vld [vmem:[#allocation2 + $0x70] sm:$0xff]  }
 0x10d   :  { %9971 = vst [vmem:[#allocation2 + $0x80] sm:$0xff] %v9434_v17   ;;  %v9429_v22 = vpack.c.bf16 %v865_v18, %v864_v13  ;;  %v646_v23 = vadd.f32 %v11696_v61, %v645_v20  ;;  %v11037_v24 = vld [vmem:[#allocation2 + $0x70] sm:$0xff]   ;;  %v870_v27 = vmax.f32 %v654_v19, 0.0 }
 0x10e   :  { %v10403_v25 = vpop.f32.mrf.mxu0  ;;  %v11032_v26 = vld [vmem:[#allocation2 + $0x68] sm:$0xff]  }
 0x10f   :  { %9970 = vst [vmem:[#allocation2 + $0x78] sm:$0xff] %v9429_v22   ;;  %v657_v28 = vadd.f32 %v10403_v25, %v11696_v61  ;;  %v11035_v29 = vld [vmem:[#allocation2 + $0x68] sm:$0xff]   ;;  %10485 = vmatmul.mubr.bf16.gmra.mxu1 %v11032_v26  ;;  %v868_v31 = vmax.f32 %v646_v23, 0.0 }
 0x110   :  { %v648_v30 = vpop.f32.mrf.mxu0  ;;  %10488 = vmatprep.mubr.bf16.mxu1 %v11034_v21  ;;  %10584 = vmatprep.mubr.bf16.mxu0 %v11035_v29 }
 0x111   :  { %v871_v32 = vmax.f32 %v657_v28, 0.0  ;;  %v649_v33 = vadd.f32 %v11696_v61, %v648_v30  ;;  %10585 = vmatmul.mubr.bf16.gmra.mxu0 %v11037_v24 }
 0x112   :  { %v10406_v34 = vpop.f32.mrf.mxu0 }
 0x113   :  { %v9444_v35 = vpack.c.bf16 %v871_v32, %v870_v27  ;;  %v869_v36 = vmax.f32 %v649_v33, 0.0  ;;  %v670_v37 = vadd.f32 %v10406_v34, %v11696_v61 }
 0x114   :  { %v11038_v38 = vld [vmem:[#allocation2 + $0x80] sm:$0xff]   ;;  %v661_v39 = vpop.f32.mrf.mxu0 }
 0x115   :  { %9973 = vst [vmem:[#allocation2 + $0x90] sm:$0xff] %v9444_v35   ;;  %v9439_v40 = vpack.c.bf16 %v869_v36, %v868_v31  ;;  %v11041_v42 = vld [vmem:[#allocation2 + $0x80] sm:$0xff]   ;;  %v662_v43 = vadd.f32 %v11696_v61, %v661_v39  ;;  %v874_v47 = vmax.f32 %v670_v37, 0.0 }
 0x116   :  { %v11036_v44 = vld [vmem:[#allocation2 + $0x78] sm:$0xff]   ;;  %v10407_v45 = vpop.f32.mrf.mxu0 }
 0x117   :  { %9972 = vst [vmem:[#allocation2 + $0x88] sm:$0xff] %v9439_v40   ;;  %v11039_v46 = vld [vmem:[#allocation2 + $0x78] sm:$0xff]   ;;  %v673_v48 = vadd.f32 %v10407_v45, %v11696_v61  ;;  %10489 = vmatmul.mubr.bf16.gmra.mxu1 %v11036_v44  ;;  %v872_v50 = vmax.f32 %v662_v43, 0.0 }
 0x118   :  { %v664_v49 = vpop.f32.mrf.mxu0  ;;  %10492 = vmatprep.mubr.bf16.mxu1 %v11038_v38  ;;  %10588 = vmatprep.mubr.bf16.mxu0 %v11039_v46 }
 0x119   :  { %v875_v51 = vmax.f32 %v673_v48, 0.0  ;;  %v665_v52 = vadd.f32 %v11696_v61, %v664_v49  ;;  %10589 = vmatmul.mubr.bf16.gmra.mxu0 %v11041_v42 }
 0x11a   :  { %v10410_v53 = vpop.f32.mrf.mxu0 }
 0x11b   :  { %v9454_v54 = vpack.c.bf16 %v875_v51, %v874_v47  ;;  %v873_v55 = vmax.f32 %v665_v52, 0.0  ;;  %v686_v56 = vadd.f32 %v10410_v53, %v11696_v61 }
 0x11c   :  { %v677_v57 = vpop.f32.mrf.mxu0  ;;  %v11044_v59 = vld [vmem:[#allocation2 + $0x90] sm:$0xff]  }
 0x11d   :  { %9975 = vst [vmem:[#allocation2 + $0xa0] sm:$0xff] %v9454_v54   ;;  %v9449_v60 = vpack.c.bf16 %v873_v55, %v872_v50  ;;  %v678_v62 = vadd.f32 %v11696_v61, %v677_v57  ;;  %v11047_v63 = vld [vmem:[#allocation2 + $0x90] sm:$0xff]   ;;  %v878_v2 = vmax.f32 %v686_v56, 0.0 }
 0x11e   :  { %v11040_v0 = vld [vmem:[#allocation2 + $0x88] sm:$0xff]   ;;  %v10411_v1 = vpop.f32.mrf.mxu0 }
 0x11f   :  { %9974 = vst [vmem:[#allocation2 + $0x98] sm:$0xff] %v9449_v60   ;;  %v689_v3 = vadd.f32 %v10411_v1, %v11696_v61  ;;  %v11045_v4 = vld [vmem:[#allocation2 + $0x88] sm:$0xff]   ;;  %10493 = vmatmul.mubr.bf16.gmra.mxu1 %v11040_v0  ;;  %v876_v6 = vmax.f32 %v678_v62, 0.0 }
 0x120   :  { %v680_v5 = vpop.f32.mrf.mxu0  ;;  %10496 = vmatprep.mubr.bf16.mxu1 %v11044_v59  ;;  %10592 = vmatprep.mubr.bf16.mxu0 %v11045_v4 }
 0x121   :  { %v879_v7 = vmax.f32 %v689_v3, 0.0  ;;  %v681_v58 = vadd.f32 %v11696_v61, %v680_v5  ;;  %10593 = vmatmul.mubr.bf16.gmra.mxu0 %v11047_v63  ;;  %v11105_v5 = vld [vmem:[%s13765_s5] sm:$0xff]  }
 0x122   :  { %v10414_v8 = vpop.f32.mrf.mxu0  ;;  %10750 = vmatprep.subr.bf16.mxu0 %v11105_v5 }
 0x123   :  { %v9464_v9 = vpack.c.bf16 %v879_v7, %v878_v2  ;;  %v877_v10 = vmax.f32 %v681_v58, 0.0  ;;  %v702_v11 = vadd.f32 %v10414_v8, %v11696_v61  ;;  %10751 = vmatpush3.bf16.msra.mxu0 %v11105_v5 }
 0x124   :  { %v693_v12 = vpop.f32.mrf.mxu0  ;;  %v11050_v13 = vld [vmem:[#allocation2 + $0xa0] sm:$0xff]  }
 0x125   :  { %9977 = vst [vmem:[#allocation2 + $0xb0] sm:$0xff] %v9464_v9   ;;  %v9459_v14 = vpack.c.bf16 %v877_v10, %v876_v6  ;;  %v694_v15 = vadd.f32 %v11696_v61, %v693_v12  ;;  %v11053_v16 = vld [vmem:[#allocation2 + $0xa0] sm:$0xff]   ;;  %v882_v19 = vmax.f32 %v702_v11, 0.0 }
 0x126   :  { %v10415_v17 = vpop.f32.mrf.mxu0  ;;  %v11046_v18 = vld [vmem:[#allocation2 + $0x98] sm:$0xff]  }
 0x127   :  { %9976 = vst [vmem:[#allocation2 + $0xa8] sm:$0xff] %v9459_v14   ;;  %v705_v20 = vadd.f32 %v10415_v17, %v11696_v61  ;;  %v11051_v21 = vld [vmem:[#allocation2 + $0x98] sm:$0xff]   ;;  %10497 = vmatmul.mubr.bf16.gmra.mxu1 %v11046_v18  ;;  %v880_v23 = vmax.f32 %v694_v15, 0.0 }
 0x128   :  { %v696_v22 = vpop.f32.mrf.mxu0  ;;  %10500 = vmatprep.mubr.bf16.mxu1 %v11050_v13  ;;  %10596 = vmatprep.mubr.bf16.mxu0 %v11051_v21 }
 0x129   :  { %v883_v24 = vmax.f32 %v705_v20, 0.0  ;;  %v697_v25 = vadd.f32 %v11696_v61, %v696_v22  ;;  %10597 = vmatmul.mubr.bf16.gmra.mxu0 %v11053_v16  ;;  %v11104_v16 = vld [vmem:[%s13765_s5 + $0x40] sm:$0xff]   ;;  %s11384_s5 = smov 16  }
 0x12a   :  { %v10418_v26 = vpop.f32.mrf.mxu0  ;;  %10654 = vmatprep.subr.bf16.mxu1 %v11104_v16 }
 0x12b   :  { %v9474_v27 = vpack.c.bf16 %v883_v24, %v882_v19  ;;  %v881_v28 = vmax.f32 %v697_v25, 0.0  ;;  %v718_v29 = vadd.f32 %v10418_v26, %v11696_v61  ;;  %10655 = vmatpush3.bf16.msra.mxu1 %v11104_v16 }
 0x12c   :  { %v709_v30 = vpop.f32.mrf.mxu0  ;;  %v11054_v31 = vld [vmem:[#allocation2 + $0xb0] sm:$0xff]  }
 0x12d   :  { %9979 = vst [vmem:[#allocation2 + $0xc0] sm:$0xff] %v9474_v27   ;;  %v9469_v32 = vpack.c.bf16 %v881_v28, %v880_v23  ;;  %v710_v33 = vadd.f32 %v11696_v61, %v709_v30  ;;  %v11057_v34 = vld [vmem:[#allocation2 + $0xb0] sm:$0xff]   ;;  %v886_v37 = vmax.f32 %v718_v29, 0.0 }
 0x12e   :  { %v10419_v35 = vpop.f32.mrf.mxu0  ;;  %v11052_v36 = vld [vmem:[#allocation2 + $0xa8] sm:$0xff]  }
 0x12f   :  { %9978 = vst [vmem:[#allocation2 + $0xb8] sm:$0xff] %v9469_v32   ;;  %v721_v38 = vadd.f32 %v10419_v35, %v11696_v61  ;;  %v11055_v39 = vld [vmem:[#allocation2 + $0xa8] sm:$0xff]   ;;  %10501 = vmatmul.mubr.bf16.gmra.mxu1 %v11052_v36  ;;  %v884_v42 = vmax.f32 %v710_v33, 0.0  ;;  %v11812_v32 = vld [vmem:[%s13766_s2] ss:$0 sm:$0xff] }
 0x130   :  { %v712_v40 = vpop.f32.mrf.mxu0  ;;  %10504 = vmatprep.mubr.bf16.mxu1 %v11054_v31  ;;  %10600 = vmatprep.mubr.bf16.mxu0 %v11055_v39 }
 0x131   :  { %v887_v43 = vmax.f32 %v721_v38, 0.0  ;;  %v713_v44 = vadd.f32 %v11696_v61, %v712_v40  ;;  %10601 = vmatmul.mubr.bf16.gmra.mxu0 %v11057_v34 }
 0x132   :  { %v10422_v45 = vpop.f32.mrf.mxu0 }
 0x133   :  { %v9484_v46 = vpack.c.bf16 %v887_v43, %v886_v37  ;;  %v885_v47 = vmax.f32 %v713_v44, 0.0  ;;  %v734_v48 = vadd.f32 %v10422_v45, %v11696_v61 }
 0x134   :  { %v725_v49 = vpop.f32.mrf.mxu0  ;;  %v11058_v50 = vld [vmem:[#allocation2 + $0xc0] sm:$0xff]  }
 0x135   :  { %9981 = vst [vmem:[#allocation2 + $0xd0] sm:$0xff] %v9484_v46   ;;  %v9479_v51 = vpack.c.bf16 %v885_v47, %v884_v42  ;;  %v726_v52 = vadd.f32 %v11696_v61, %v725_v49  ;;  %v11063_v53 = vld [vmem:[#allocation2 + $0xc0] sm:$0xff]   ;;  %v890_v56 = vmax.f32 %v734_v48, 0.0 }
 0x136   :  { %v10423_v54 = vpop.f32.mrf.mxu0  ;;  %v11056_v55 = vld [vmem:[#allocation2 + $0xb8] sm:$0xff]  }
 0x137   :  { %9980 = vst [vmem:[#allocation2 + $0xc8] sm:$0xff] %v9479_v51   ;;  %v737_v57 = vadd.f32 %v10423_v54, %v11696_v61  ;;  %v11059_v59 = vld [vmem:[#allocation2 + $0xb8] sm:$0xff]   ;;  %10505 = vmatmul.mubr.bf16.gmra.mxu1 %v11056_v55  ;;  %v888_v62 = vmax.f32 %v726_v52, 0.0 }
 0x138   :  { %v728_v60 = vpop.f32.mrf.mxu0  ;;  %10508 = vmatprep.mubr.bf16.mxu1 %v11058_v50  ;;  %10604 = vmatprep.mubr.bf16.mxu0 %v11059_v59 }
 0x139   :  { %v891_v63 = vmax.f32 %v737_v57, 0.0  ;;  %v729_v0 = vadd.f32 %v11696_v61, %v728_v60  ;;  %10605 = vmatmul.mubr.bf16.gmra.mxu0 %v11063_v53 }
 0x13a   :  { %v10426_v1 = vpop.f32.mrf.mxu0 }
 0x13b   :  { %v9494_v2 = vpack.c.bf16 %v891_v63, %v890_v56  ;;  %v889_v3 = vmax.f32 %v729_v0, 0.0  ;;  %v750_v4 = vadd.f32 %v10426_v1, %v11696_v61 }
 0x13c   :  { %v741_v6 = vpop.f32.mrf.mxu0  ;;  %v11064_v7 = vld [vmem:[#allocation2 + $0xd0] sm:$0xff]  }
 0x13d   :  { %9983 = vst [vmem:[#allocation2 + $0xe0] sm:$0xff] %v9494_v2   ;;  %v9489_v58 = vpack.c.bf16 %v889_v3, %v888_v62  ;;  %v742_v8 = vadd.f32 %v11696_v61, %v741_v6  ;;  %v11067_v9 = vld [vmem:[#allocation2 + $0xd0] sm:$0xff]   ;;  %v894_v12 = vmax.f32 %v750_v4, 0.0 }
 0x13e   :  { %v10427_v10 = vpop.f32.mrf.mxu0  ;;  %v11062_v11 = vld [vmem:[#allocation2 + $0xc8] sm:$0xff]  }
 0x13f   :  { %9982 = vst [vmem:[#allocation2 + $0xd8] sm:$0xff] %v9489_v58   ;;  %v753_v13 = vadd.f32 %v10427_v10, %v11696_v61  ;;  %v11065_v14 = vld [vmem:[#allocation2 + $0xc8] sm:$0xff]   ;;  %10509 = vmatmul.mubr.bf16.gmra.mxu1 %v11062_v11  ;;  %v892_v17 = vmax.f32 %v742_v8, 0.0 }
 0x140   :  { %v744_v15 = vpop.f32.mrf.mxu0  ;;  %10512 = vmatprep.mubr.bf16.mxu1 %v11064_v7  ;;  %10608 = vmatprep.mubr.bf16.mxu0 %v11065_v14 }
 0x141   :  { %v895_v18 = vmax.f32 %v753_v13, 0.0  ;;  %v745_v19 = vadd.f32 %v11696_v61, %v744_v15  ;;  %10609 = vmatmul.mubr.bf16.gmra.mxu0 %v11067_v9 }
 0x142   :  { %v10430_v20 = vpop.f32.mrf.mxu0 }
 0x143   :  { %v9504_v21 = vpack.c.bf16 %v895_v18, %v894_v12  ;;  %v893_v22 = vmax.f32 %v745_v19, 0.0  ;;  %v766_v23 = vadd.f32 %v10430_v20, %v11696_v61 }
 0x144   :  { %v757_v24 = vpop.f32.mrf.mxu0  ;;  %v11068_v25 = vld [vmem:[#allocation2 + $0xe0] sm:$0xff]  }
 0x145   :  { %9985 = vst [vmem:[#allocation2 + $0xf0] sm:$0xff] %v9504_v21   ;;  %v9499_v26 = vpack.c.bf16 %v893_v22, %v892_v17  ;;  %v758_v27 = vadd.f32 %v11696_v61, %v757_v24  ;;  %v11071_v28 = vld [vmem:[#allocation2 + $0xe0] sm:$0xff]   ;;  %v898_v31 = vmax.f32 %v766_v23, 0.0 }
 0x146   :  { %v10431_v29 = vpop.f32.mrf.mxu0  ;;  %v11066_v30 = vld [vmem:[#allocation2 + $0xd8] sm:$0xff]  }
 0x147   :  { %9984 = vst [vmem:[#allocation2 + $0xe8] sm:$0xff] %v9499_v26   ;;  %v769_v33 = vadd.f32 %v11812_v32, %v10431_v29  ;;  %v11069_v34 = vld [vmem:[#allocation2 + $0xd8] sm:$0xff]   ;;  %10513 = vmatmul.mubr.bf16.gmra.mxu1 %v11066_v30  ;;  %v896_v36 = vmax.f32 %v758_v27, 0.0 }
 0x148   :  { %v760_v35 = vpop.f32.mrf.mxu0  ;;  %10516 = vmatprep.mubr.bf16.mxu1 %v11068_v25  ;;  %10612 = vmatprep.mubr.bf16.mxu0 %v11069_v34 }
 0x149   :  { %v899_v37 = vmax.f32 %v769_v33, 0.0  ;;  %v761_v38 = vadd.f32 %v11812_v32, %v760_v35  ;;  %10613 = vmatmul.mubr.bf16.gmra.mxu0 %v11071_v28 }
 0x14a   :  { %v10434_v61 = vpop.f32.mrf.mxu0 }
 0x14b   :  { %v9514_v39 = vpack.c.bf16 %v899_v37, %v898_v31  ;;  %v897_v40 = vmax.f32 %v761_v38, 0.0  ;;  %v782_v42 = vadd.f32 %v11812_v32, %v10434_v61 }
 0x14c   :  { %v773_v43 = vpop.f32.mrf.mxu0  ;;  %v11074_v44 = vld [vmem:[#allocation2 + $0xf0] sm:$0xff]  }
 0x14d   :  { %9987 = vst [vmem:[#allocation2 + $0x100] sm:$0xff] %v9514_v39   ;;  %v9509_v45 = vpack.c.bf16 %v897_v40, %v896_v36  ;;  %v774_v46 = vadd.f32 %v11812_v32, %v773_v43  ;;  %v11077_v47 = vld [vmem:[#allocation2 + $0xf0] sm:$0xff]   ;;  %v902_v50 = vmax.f32 %v782_v42, 0.0 }
 0x14e   :  { %v10435_v48 = vpop.f32.mrf.mxu0  ;;  %v11070_v49 = vld [vmem:[#allocation2 + $0xe8] sm:$0xff]  }
 0x14f   :  { %9986 = vst [vmem:[#allocation2 + $0xf8] sm:$0xff] %v9509_v45   ;;  %v785_v51 = vadd.f32 %v11812_v32, %v10435_v48  ;;  %v11075_v52 = vld [vmem:[#allocation2 + $0xe8] sm:$0xff]   ;;  %10517 = vmatmul.mubr.bf16.gmra.mxu1 %v11070_v49  ;;  %v900_v54 = vmax.f32 %v774_v46, 0.0 }
 0x150   :  { %v776_v53 = vpop.f32.mrf.mxu0  ;;  %10520 = vmatprep.mubr.bf16.mxu1 %v11074_v44  ;;  %10616 = vmatprep.mubr.bf16.mxu0 %v11075_v52 }
 0x151   :  { %v903_v55 = vmax.f32 %v785_v51, 0.0  ;;  %v777_v56 = vadd.f32 %v11812_v32, %v776_v53  ;;  %10617 = vmatmul.mubr.bf16.gmra.mxu0 %v11077_v47 }
 0x152   :  { %v10438_v57 = vpop.f32.mrf.mxu0 }
 0x153   :  { %v9524_v59 = vpack.c.bf16 %v903_v55, %v902_v50  ;;  %v901_v60 = vmax.f32 %v777_v56, 0.0  ;;  %v798_v62 = vadd.f32 %v11812_v32, %v10438_v57 }
 0x154   :  { %v789_v63 = vpop.f32.mrf.mxu0  ;;  %v11078_v0 = vld [vmem:[#allocation2 + $0x100] sm:$0xff]  }
 0x155   :  { %9989 = vst [vmem:[#allocation2 + $0x110] sm:$0xff] %v9524_v59   ;;  %v9519_v1 = vpack.c.bf16 %v901_v60, %v900_v54  ;;  %v790_v2 = vadd.f32 %v11812_v32, %v789_v63  ;;  %v11081_v3 = vld [vmem:[#allocation2 + $0x100] sm:$0xff]   ;;  %v906_v6 = vmax.f32 %v798_v62, 0.0  ;;  %v11107_v59 = vld [vmem:[#allocation3] sm:$0xff]   ;;  %v11835_v62 = vld [vmem:[%s13767_s7 + $0x38] sm:$0xff]  }
 0x156   :  { %v10439_v4 = vpop.f32.mrf.mxu0  ;;  %v11076_v5 = vld [vmem:[#allocation2 + $0xf8] sm:$0xff]   ;;  %v11100_v63 = vld [vmem:[#allocation2 + $0x148] sm:$0xff]   ;;  %10832 = vmatprep.subr.bf16.mxu1 %v11835_v62 }
 0x157   :  { %9988 = vst [vmem:[#allocation2 + $0x108] sm:$0xff] %v9519_v1   ;;  %v801_v7 = vadd.f32 %v11812_v32, %v10439_v4  ;;  %v11079_v58 = vld [vmem:[#allocation2 + $0xf8] sm:$0xff]   ;;  %10521 = vmatmul.mubr.bf16.gmra.mxu1 %v11076_v5  ;;  %v904_v9 = vmax.f32 %v790_v2, 0.0 }
 0x158   :  { %v792_v8 = vpop.f32.mrf.mxu0  ;;  %10524 = vmatprep.mubr.bf16.mxu1 %v11078_v0  ;;  %10620 = vmatprep.mubr.bf16.mxu0 %v11079_v58 }
 0x159   :  { %v907_v10 = vmax.f32 %v801_v7, 0.0  ;;  %v793_v11 = vadd.f32 %v11812_v32, %v792_v8  ;;  %10621 = vmatmul.mubr.bf16.gmra.mxu0 %v11081_v3 }
 0x15a   :  { %v10442_v12 = vpop.f32.mrf.mxu0 }
 0x15b   :  { %v9534_v13 = vpack.c.bf16 %v907_v10, %v906_v6  ;;  %v905_v14 = vmax.f32 %v793_v11, 0.0  ;;  %v814_v15 = vadd.f32 %v11812_v32, %v10442_v12  ;;  %v11841_v6 = vld [vmem:[%s13768_s4] ss:$0 sm:$0xff] }
 0x15c   :  { %v805_v16 = vpop.f32.mrf.mxu0  ;;  %v11082_v17 = vld [vmem:[#allocation2 + $0x110] sm:$0xff]  }
 0x15d   :  { %9991 = vst [vmem:[#allocation2 + $0x120] sm:$0xff] %v9534_v13   ;;  %v9529_v18 = vpack.c.bf16 %v905_v14, %v904_v9  ;;  %v806_v19 = vadd.f32 %v11812_v32, %v805_v16  ;;  %v11087_v20 = vld [vmem:[#allocation2 + $0x110] sm:$0xff]   ;;  %v910_v23 = vmax.f32 %v814_v15, 0.0 }
 0x15e   :  { %v10443_v21 = vpop.f32.mrf.mxu0  ;;  %v11080_v22 = vld [vmem:[#allocation2 + $0x108] sm:$0xff]  }
 0x15f   :  { %9990 = vst [vmem:[#allocation2 + $0x118] sm:$0xff] %v9529_v18   ;;  %v817_v24 = vadd.f32 %v11812_v32, %v10443_v21  ;;  %v11083_v25 = vld [vmem:[#allocation2 + $0x108] sm:$0xff]   ;;  %10525 = vmatmul.mubr.bf16.gmra.mxu1 %v11080_v22  ;;  %v908_v27 = vmax.f32 %v806_v19, 0.0 }
 0x160   :  { %v808_v26 = vpop.f32.mrf.mxu0  ;;  %10528 = vmatprep.mubr.bf16.mxu1 %v11082_v17  ;;  %10624 = vmatprep.mubr.bf16.mxu0 %v11083_v25 }
 0x161   :  { %v911_v28 = vmax.f32 %v817_v24, 0.0  ;;  %v809_v29 = vadd.f32 %v11812_v32, %v808_v26  ;;  %10625 = vmatmul.mubr.bf16.gmra.mxu0 %v11087_v20 }
 0x162   :  { %v10446_v30 = vpop.f32.mrf.mxu0 }
 0x163   :  { %v9544_v31 = vpack.c.bf16 %v911_v28, %v910_v23  ;;  %v909_v33 = vmax.f32 %v809_v29, 0.0  ;;  %v830_v34 = vadd.f32 %v11812_v32, %v10446_v30 }
 0x164   :  { %v821_v35 = vpop.f32.mrf.mxu0  ;;  %v11088_v36 = vld [vmem:[#allocation2 + $0x120] sm:$0xff]  }
 0x165   :  { %9993 = vst [vmem:[#allocation2 + $0x130] sm:$0xff] %v9544_v31   ;;  %v9539_v37 = vpack.c.bf16 %v909_v33, %v908_v27  ;;  %v822_v38 = vadd.f32 %v11812_v32, %v821_v35  ;;  %v11091_v61 = vld [vmem:[#allocation2 + $0x120] sm:$0xff]   ;;  %v914_v42 = vmax.f32 %v830_v34, 0.0 }
 0x166   :  { %v10447_v39 = vpop.f32.mrf.mxu0  ;;  %v11086_v40 = vld [vmem:[#allocation2 + $0x118] sm:$0xff]  }
 0x167   :  { %9992 = vst [vmem:[#allocation2 + $0x128] sm:$0xff] %v9539_v37   ;;  %v833_v43 = vadd.f32 %v11812_v32, %v10447_v39  ;;  %v11089_v44 = vld [vmem:[#allocation2 + $0x118] sm:$0xff]   ;;  %10529 = vmatmul.mubr.bf16.gmra.mxu1 %v11086_v40  ;;  %v912_v46 = vmax.f32 %v822_v38, 0.0 }
 0x168   :  { %v824_v45 = vpop.f32.mrf.mxu0  ;;  %10532 = vmatprep.mubr.bf16.mxu1 %v11088_v36  ;;  %10628 = vmatprep.mubr.bf16.mxu0 %v11089_v44 }
 0x169   :  { %v915_v47 = vmax.f32 %v833_v43, 0.0  ;;  %v825_v48 = vadd.f32 %v11812_v32, %v824_v45  ;;  %10629 = vmatmul.mubr.bf16.gmra.mxu0 %v11091_v61 }
 0x16b   :  { %v9554_v49 = vpack.c.bf16 %v915_v47, %v914_v42  ;;  %v913_v50 = vmax.f32 %v825_v48, 0.0 }
 0x16c   :  { %v11092_v51 = vld [vmem:[#allocation2 + $0x130] sm:$0xff]  }
 0x16d   :  { %9995 = vst [vmem:[#allocation2 + $0x140] sm:$0xff] %v9554_v49   ;;  %v9549_v52 = vpack.c.bf16 %v913_v50, %v912_v46  ;;  %v11095_v53 = vld [vmem:[#allocation2 + $0x130] sm:$0xff]  }
 0x16e   :  { %v11090_v54 = vld [vmem:[#allocation2 + $0x128] sm:$0xff]  }
 0x16f   :  { %9994 = vst [vmem:[#allocation2 + $0x138] sm:$0xff] %v9549_v52   ;;  %v11093_v55 = vld [vmem:[#allocation2 + $0x128] sm:$0xff]   ;;  %10533 = vmatmul.mubr.bf16.gmra.mxu1 %v11090_v54 }
 0x170   :  { %10536 = vmatprep.mubr.bf16.mxu1 %v11092_v51  ;;  %10632 = vmatprep.mubr.bf16.mxu0 %v11093_v55 }
 0x171   :  { %10633 = vmatmul.mubr.bf16.gmra.mxu0 %v11095_v53 }
 0x174   :  { %v11098_v56 = vld [vmem:[#allocation2 + $0x140] sm:$0xff]  }
 0x175   :  { %v11101_v57 = vld [vmem:[#allocation2 + $0x140] sm:$0xff]  }
 0x176   :  { %v11094_v32 = vld [vmem:[#allocation2 + $0x138] sm:$0xff]  }
 0x177   :  { %v11099_v60 = vld [vmem:[#allocation2 + $0x138] sm:$0xff]   ;;  %10537 = vmatmul.mubr.bf16.gmra.mxu1 %v11094_v32 }
 0x178   :  { %10540 = vmatprep.mubr.bf16.mxu1 %v11098_v56  ;;  %10636 = vmatprep.mubr.bf16.mxu0 %v11099_v60 }
 0x179   :  { %10637 = vmatmul.mubr.bf16.gmra.mxu0 %v11101_v57 }
 0x17a   :  { %10752 = vmatprep.mubr.bf16.mxu0 %v11107_v59 }
 0x17f   :  { %10541 = vmatmul.mubr.bf16.gmra.mxu1 %v11100_v63 }
 0x1a0   :  { %v10562_v0 = vpop.f32.mrf.mxu0 }
 0x1a2   :  { %v2472_v1 = vpop.f32.mrf.mxu0 }
 0x1a4   :  { %v10563_v2 = vpop.f32.mrf.mxu0 }
 0x1a6   :  { %v2475_v3 = vpop.f32.mrf.mxu0 }
 0x1a7   :  { %v10466_v4 = vpop.f32.mrf.mxu1 }
 0x1a8   :  { %v2481_v5 = vadd.f32 %v10562_v0, %v10466_v4 }
 0x1a9   :  { %v10566_v7 = vpop.f32.mrf.mxu0  ;;  %v1831_v58 = vpop.f32.mrf.mxu1 }
 0x1aa   :  { %v2473_v8 = vadd.f32 %v2472_v1, %v1831_v58  ;;  %v2800_v11 = vadd.f32 %v11841_v6, %v2481_v5 }
 0x1ab   :  { %v2488_v9 = vpop.f32.mrf.mxu0  ;;  %v10467_v10 = vpop.f32.mrf.mxu1 }
 0x1ac   :  { %v2484_v12 = vadd.f32 %v10563_v2, %v10467_v10  ;;  %v2798_v15 = vadd.f32 %v11841_v6, %v2473_v8  ;;  %v2880_v20 = vmax.f32 %v2800_v11, 0.0 }
 0x1ad   :  { %v10567_v13 = vpop.f32.mrf.mxu0  ;;  %v1834_v14 = vpop.f32.mrf.mxu1 }
 0x1ae   :  { %v2801_v16 = vadd.f32 %v11841_v6, %v2484_v12  ;;  %v2476_v17 = vadd.f32 %v2475_v3, %v1834_v14  ;;  %v2878_v26 = vmax.f32 %v2798_v15, 0.0 }
 0x1af   :  { %v2491_v18 = vpop.f32.mrf.mxu0  ;;  %v10470_v19 = vpop.f32.mrf.mxu1 }
 0x1b0   :  { %v2881_v21 = vmax.f32 %v2801_v16, 0.0  ;;  %v2799_v22 = vadd.f32 %v11841_v6, %v2476_v17  ;;  %v2497_v23 = vadd.f32 %v10566_v7, %v10470_v19 }
 0x1b1   :  { %v10570_v24 = vpop.f32.mrf.mxu0  ;;  %v1847_v25 = vpop.f32.mrf.mxu1 }
 0x1b2   :  { %v9564_v27 = vpack.c.bf16 %v2881_v21, %v2880_v20  ;;  %v2879_v28 = vmax.f32 %v2799_v22, 0.0  ;;  %v2489_v29 = vadd.f32 %v2488_v9, %v1847_v25  ;;  %v2804_v34 = vadd.f32 %v11841_v6, %v2497_v23  ;;  %v11139_v22 = vld [vmem:[%s13767_s7 + $0x30] sm:$0xff]  }
 0x1b3   :  { %v2504_v30 = vpop.f32.mrf.mxu0  ;;  %v10471_v31 = vpop.f32.mrf.mxu1 }
 0x1b4   :  { %9997 = vst [vmem:[#allocation3 + $0x10] sm:$0xff] %v9564_v27   ;;  %v9559_v33 = vpack.c.bf16 %v2879_v28, %v2878_v26  ;;  %v2500_v35 = vadd.f32 %v10567_v13, %v10471_v31  ;;  %v2802_v38 = vadd.f32 %v11841_v6, %v2489_v29  ;;  %v2884_v43 = vmax.f32 %v2804_v34, 0.0 }
 0x1b5   :  { %v10571_v36 = vpop.f32.mrf.mxu0  ;;  %v1850_v37 = vpop.f32.mrf.mxu1 }
 0x1b6   :  { %9996 = vst [vmem:[#allocation3 + $0x8] sm:$0xff] %v9559_v33   ;;  %v2805_v61 = vadd.f32 %v11841_v6, %v2500_v35  ;;  %v2492_v39 = vadd.f32 %v2491_v18, %v1850_v37  ;;  %v2882_v49 = vmax.f32 %v2802_v38, 0.0 }
 0x1b7   :  { %v2507_v40 = vpop.f32.mrf.mxu0  ;;  %v10474_v42 = vpop.f32.mrf.mxu1 }
 0x1b8   :  { %v2885_v44 = vmax.f32 %v2805_v61, 0.0  ;;  %v2803_v45 = vadd.f32 %v11841_v6, %v2492_v39  ;;  %v2513_v46 = vadd.f32 %v10570_v24, %v10474_v42 }
 0x1b9   :  { %v10574_v47 = vpop.f32.mrf.mxu0  ;;  %v1863_v48 = vpop.f32.mrf.mxu1 }
 0x1ba   :  { %v9574_v50 = vpack.c.bf16 %v2885_v44, %v2884_v43  ;;  %v2883_v51 = vmax.f32 %v2803_v45, 0.0  ;;  %v2505_v52 = vadd.f32 %v2504_v30, %v1863_v48  ;;  %v2808_v57 = vadd.f32 %v11841_v6, %v2513_v46  ;;  %v11152_v44 = vld [vmem:[%s13767_s7 + $0x28] sm:$0xff]  }
 0x1bb   :  { %v2520_v53 = vpop.f32.mrf.mxu0  ;;  %v10475_v54 = vpop.f32.mrf.mxu1  ;;  %v11106_v55 = vld [vmem:[#allocation3 + $0x10] sm:$0xff]  }
 0x1bc   :  { %9999 = vst [vmem:[#allocation3 + $0x20] sm:$0xff] %v9574_v50   ;;  %v9569_v56 = vpack.c.bf16 %v2883_v51, %v2882_v49  ;;  %v2516_v59 = vadd.f32 %v10571_v36, %v10475_v54  ;;  %10656 = vmatprep.mubr.bf16.mxu1 %v11106_v55  ;;  %v2806_v0 = vadd.f32 %v11841_v6, %v2505_v52  ;;  %v11109_v3 = vld [vmem:[#allocation3 + $0x10] sm:$0xff]   ;;  %v2888_v7 = vmax.f32 %v2808_v57, 0.0 }
 0x1bd   :  { %v10575_v32 = vpop.f32.mrf.mxu0  ;;  %v1866_v60 = vpop.f32.mrf.mxu1  ;;  %v11108_v63 = vld [vmem:[#allocation3 + $0x8] sm:$0xff]  }
 0x1be   :  { %9998 = vst [vmem:[#allocation3 + $0x18] sm:$0xff] %v9569_v56   ;;  %v2809_v1 = vadd.f32 %v11841_v6, %v2516_v59  ;;  %v2508_v2 = vadd.f32 %v2507_v40, %v1866_v60  ;;  %10753 = vmatmul.mubr.bf16.vlgmr.msra.gmra.mxu0 %v11108_v63  ;;  %v2886_v12 = vmax.f32 %v2806_v0, 0.0 }
 0x1bf   :  { %v2523_v4 = vpop.f32.mrf.mxu0  ;;  %v10478_v5 = vpop.f32.mrf.mxu1  ;;  %10756 = vmatprep.mubr.bf16.mxu0 %v11109_v3 }
 0x1c0   :  { %v2889_v58 = vmax.f32 %v2809_v1, 0.0  ;;  %v2807_v8 = vadd.f32 %v11841_v6, %v2508_v2  ;;  %v2529_v9 = vadd.f32 %v10574_v47, %v10478_v5 }
 0x1c1   :  { %v10578_v10 = vpop.f32.mrf.mxu0  ;;  %v1879_v11 = vpop.f32.mrf.mxu1 }
 0x1c2   :  { %v9584_v13 = vpack.c.bf16 %v2889_v58, %v2888_v7  ;;  %v2887_v14 = vmax.f32 %v2807_v8, 0.0  ;;  %v2521_v15 = vadd.f32 %v2520_v53, %v1879_v11  ;;  %v2812_v19 = vadd.f32 %v11841_v6, %v2529_v9 }
 0x1c3   :  { %v2536_v16 = vpop.f32.mrf.mxu0  ;;  %v10479_v17 = vpop.f32.mrf.mxu1  ;;  %v11112_v21 = vld [vmem:[#allocation3 + $0x20] sm:$0xff]  }
 0x1c4   :  { %10001 = vst [vmem:[#allocation3 + $0x30] sm:$0xff] %v9584_v13   ;;  %v9579_v18 = vpack.c.bf16 %v2887_v14, %v2886_v12  ;;  %v2532_v20 = vadd.f32 %v10575_v32, %v10479_v17  ;;  %v2810_v26 = vadd.f32 %v11841_v6, %v2521_v15  ;;  %v11113_v33 = vld [vmem:[#allocation3 + $0x20] sm:$0xff]   ;;  %v2892_v34 = vmax.f32 %v2812_v19, 0.0 }
 0x1c5   :  { %v10579_v23 = vpop.f32.mrf.mxu0  ;;  %v1882_v24 = vpop.f32.mrf.mxu1  ;;  %v11110_v25 = vld [vmem:[#allocation3 + $0x18] sm:$0xff]   ;;  %v11183_v17 = vld [vmem:[%s13767_s7 + $0x10] sm:$0xff]  }
 0x1c6   :  { %10000 = vst [vmem:[#allocation3 + $0x28] sm:$0xff] %v9579_v18   ;;  %v2813_v27 = vadd.f32 %v11841_v6, %v2532_v20  ;;  %v2524_v28 = vadd.f32 %v2523_v4, %v1882_v24  ;;  %v11111_v29 = vld [vmem:[#allocation3 + $0x18] sm:$0xff]   ;;  %10657 = vmatmul.mubr.bf16.vlgmr.msra.gmra.mxu1 %v11110_v25  ;;  %v2890_v39 = vmax.f32 %v2810_v26, 0.0 }
 0x1c7   :  { %v2539_v30 = vpop.f32.mrf.mxu0  ;;  %v10482_v31 = vpop.f32.mrf.mxu1  ;;  %10757 = vmatmul.mubr.bf16.gmra.mxu0 %v11111_v29  ;;  %10660 = vmatprep.mubr.bf16.mxu1 %v11112_v21 }
 0x1c8   :  { %v2893_v35 = vmax.f32 %v2813_v27, 0.0  ;;  %v2811_v36 = vadd.f32 %v11841_v6, %v2524_v28  ;;  %v2545_v37 = vadd.f32 %v10578_v10, %v10482_v31  ;;  %10760 = vmatprep.mubr.bf16.mxu0 %v11113_v33  ;;  %10833 = vmatpush3.bf16.msra.mxu1 %v11835_v62  ;;  %v11161_v62 = vld [vmem:[%s13767_s7 + $0x20] sm:$0xff]   ;;  %v11174_v10 = vld [vmem:[%s13767_s7 + $0x18] sm:$0xff]  }
 0x1c9   :  { %v1895_v38 = vpop.f32.mrf.mxu1  ;;  %v10582_v61 = vpop.f32.mrf.mxu0  ;;  %10834 = vmatprep.subr.bf16.mxu1 %v11139_v22 }
 0x1ca   :  { %v9594_v40 = vpack.c.bf16 %v2893_v35, %v2892_v34  ;;  %v2891_v42 = vmax.f32 %v2811_v36, 0.0  ;;  %v2537_v43 = vadd.f32 %v2536_v16, %v1895_v38  ;;  %v2816_v48 = vadd.f32 %v11841_v6, %v2545_v37 }
 0x1cb   :  { %v10483_v45 = vpop.f32.mrf.mxu1  ;;  %v2552_v46 = vpop.f32.mrf.mxu0  ;;  %v11116_v50 = vld [vmem:[#allocation3 + $0x30] sm:$0xff]  }
 0x1cc   :  { %10003 = vst [vmem:[#allocation3 + $0x40] sm:$0xff] %v9594_v40   ;;  %v9589_v47 = vpack.c.bf16 %v2891_v42, %v2890_v39  ;;  %v2548_v49 = vadd.f32 %v10579_v23, %v10483_v45  ;;  %v2814_v51 = vadd.f32 %v11841_v6, %v2537_v43  ;;  %10835 = vmatpush3.bf16.msra.mxu1 %v11139_v22  ;;  %v11117_v32 = vld [vmem:[#allocation3 + $0x30] sm:$0xff]   ;;  %v2896_v63 = vmax.f32 %v2816_v48, 0.0 }
 0x1cd   :  { %v1898_v52 = vpop.f32.mrf.mxu1  ;;  %v11114_v53 = vld [vmem:[#allocation3 + $0x28] sm:$0xff]   ;;  %v10583_v54 = vpop.f32.mrf.mxu0  ;;  %10836 = vmatprep.subr.bf16.mxu1 %v11152_v44 }
 0x1ce   :  { %10002 = vst [vmem:[#allocation3 + $0x38] sm:$0xff] %v9589_v47   ;;  %v2817_v55 = vadd.f32 %v11841_v6, %v2548_v49  ;;  %v2540_v56 = vadd.f32 %v2539_v30, %v1898_v52  ;;  %v11115_v57 = vld [vmem:[#allocation3 + $0x28] sm:$0xff]   ;;  %10661 = vmatmul.mubr.bf16.gmra.mxu1 %v11114_v53  ;;  %v2894_v3 = vmax.f32 %v2814_v51, 0.0 }
 0x1cf   :  { %v10486_v59 = vpop.f32.mrf.mxu1  ;;  %v2555_v60 = vpop.f32.mrf.mxu0  ;;  %10761 = vmatmul.mubr.bf16.gmra.mxu0 %v11115_v57  ;;  %10664 = vmatprep.mubr.bf16.mxu1 %v11116_v50 }
 0x1d0   :  { %v2897_v0 = vmax.f32 %v2817_v55, 0.0  ;;  %v2815_v1 = vadd.f32 %v11841_v6, %v2540_v56  ;;  %v2561_v2 = vadd.f32 %v10582_v61, %v10486_v59  ;;  %10764 = vmatprep.mubr.bf16.mxu0 %v11117_v32  ;;  %10837 = vmatpush3.bf16.msra.mxu1 %v11152_v44 }
 0x1d1   :  { %v1911_v4 = vpop.f32.mrf.mxu1  ;;  %v10586_v5 = vpop.f32.mrf.mxu0  ;;  %10838 = vmatprep.subr.bf16.mxu1 %v11161_v62 }
 0x1d2   :  { %v9604_v7 = vpack.c.bf16 %v2897_v0, %v2896_v63  ;;  %v2895_v58 = vmax.f32 %v2815_v1, 0.0  ;;  %v2820_v8 = vadd.f32 %v11841_v6, %v2561_v2  ;;  %v2553_v9 = vadd.f32 %v2552_v46, %v1911_v4 }
 0x1d3   :  { %v10487_v11 = vpop.f32.mrf.mxu1  ;;  %v2568_v12 = vpop.f32.mrf.mxu0  ;;  %v11120_v16 = vld [vmem:[#allocation3 + $0x40] sm:$0xff]  }
 0x1d4   :  { %10005 = vst [vmem:[#allocation3 + $0x50] sm:$0xff] %v9604_v7   ;;  %v9599_v13 = vpack.c.bf16 %v2895_v58, %v2894_v3  ;;  %v2818_v14 = vadd.f32 %v11841_v6, %v2553_v9  ;;  %v2564_v15 = vadd.f32 %v10583_v54, %v10487_v11  ;;  %10839 = vmatpush3.bf16.msra.mxu1 %v11161_v62  ;;  %v2900_v21 = vmax.f32 %v2820_v8, 0.0  ;;  %v11121_v26 = vld [vmem:[#allocation3 + $0x40] sm:$0xff]   ;;  %v11192_v54 = vld [vmem:[%s13767_s7 + $0x8] sm:$0xff]  }
 0x1d5   :  { %v1914_v18 = vpop.f32.mrf.mxu1  ;;  %v11118_v19 = vld [vmem:[#allocation3 + $0x38] sm:$0xff]   ;;  %v10587_v20 = vpop.f32.mrf.mxu0  ;;  %10840 = vmatprep.subr.bf16.mxu1 %v11174_v10 }
 0x1d6   :  { %10004 = vst [vmem:[#allocation3 + $0x48] sm:$0xff] %v9599_v13   ;;  %v2821_v22 = vadd.f32 %v11841_v6, %v2564_v15  ;;  %v2556_v23 = vadd.f32 %v2555_v60, %v1914_v18  ;;  %v11119_v24 = vld [vmem:[#allocation3 + $0x38] sm:$0xff]   ;;  %10665 = vmatmul.mubr.bf16.gmra.mxu1 %v11118_v19  ;;  %v2898_v28 = vmax.f32 %v2818_v14, 0.0 }
 0x1d7   :  { %v10490_v25 = vpop.f32.mrf.mxu1  ;;  %v2571_v27 = vpop.f32.mrf.mxu0  ;;  %10765 = vmatmul.mubr.bf16.gmra.mxu0 %v11119_v24  ;;  %10668 = vmatprep.mubr.bf16.mxu1 %v11120_v16 }
 0x1d8   :  { %v2901_v29 = vmax.f32 %v2821_v22, 0.0  ;;  %v2819_v30 = vadd.f32 %v11841_v6, %v2556_v23  ;;  %v2577_v31 = vadd.f32 %v10586_v5, %v10490_v25  ;;  %10768 = vmatprep.mubr.bf16.mxu0 %v11121_v26  ;;  %10841 = vmatpush3.bf16.msra.mxu1 %v11174_v10 }
 0x1d9   :  { %v1927_v33 = vpop.f32.mrf.mxu1  ;;  %v10590_v34 = vpop.f32.mrf.mxu0  ;;  %10842 = vmatprep.subr.bf16.mxu1 %v11183_v17 }
 0x1da   :  { %v9614_v35 = vpack.c.bf16 %v2901_v29, %v2900_v21  ;;  %v2899_v36 = vmax.f32 %v2819_v30, 0.0  ;;  %v2824_v37 = vadd.f32 %v11841_v6, %v2577_v31  ;;  %v2569_v38 = vadd.f32 %v2568_v12, %v1927_v33 }
 0x1db   :  { %v10491_v61 = vpop.f32.mrf.mxu1  ;;  %v2584_v39 = vpop.f32.mrf.mxu0  ;;  %v11124_v44 = vld [vmem:[#allocation3 + $0x50] sm:$0xff]  }
 0x1dc   :  { %10007 = vst [vmem:[#allocation3 + $0x60] sm:$0xff] %v9614_v35   ;;  %v9609_v40 = vpack.c.bf16 %v2899_v36, %v2898_v28  ;;  %v2822_v42 = vadd.f32 %v11841_v6, %v2569_v38  ;;  %v2580_v43 = vadd.f32 %v10587_v20, %v10491_v61  ;;  %10843 = vmatpush3.bf16.msra.mxu1 %v11183_v17  ;;  %v2904_v48 = vmax.f32 %v2824_v37, 0.0  ;;  %v11125_v52 = vld [vmem:[#allocation3 + $0x50] sm:$0xff]  }
 0x1dd   :  { %v1930_v45 = vpop.f32.mrf.mxu1  ;;  %v11122_v46 = vld [vmem:[#allocation3 + $0x48] sm:$0xff]   ;;  %v10591_v47 = vpop.f32.mrf.mxu0  ;;  %10844 = vmatprep.subr.bf16.mxu1 %v11192_v54 }
 0x1de   :  { %10006 = vst [vmem:[#allocation3 + $0x58] sm:$0xff] %v9609_v40   ;;  %v2825_v49 = vadd.f32 %v11841_v6, %v2580_v43  ;;  %v2572_v50 = vadd.f32 %v2571_v27, %v1930_v45  ;;  %v11123_v62 = vld [vmem:[#allocation3 + $0x48] sm:$0xff]   ;;  %10669 = vmatmul.mubr.bf16.gmra.mxu1 %v11122_v46  ;;  %v2902_v55 = vmax.f32 %v2822_v42, 0.0 }
 0x1df   :  { %v10494_v51 = vpop.f32.mrf.mxu1  ;;  %v2587_v53 = vpop.f32.mrf.mxu0  ;;  %10769 = vmatmul.mubr.bf16.gmra.mxu0 %v11123_v62  ;;  %10672 = vmatprep.mubr.bf16.mxu1 %v11124_v44 }
 0x1e0   :  { %v2905_v56 = vmax.f32 %v2825_v49, 0.0  ;;  %v2823_v57 = vadd.f32 %v11841_v6, %v2572_v50  ;;  %v2593_v59 = vadd.f32 %v10590_v34, %v10494_v51  ;;  %10772 = vmatprep.mubr.bf16.mxu0 %v11125_v52  ;;  %10845 = vmatpush3.bf16.msra.mxu1 %v11192_v54 }
 0x1e1   :  { %v1943_v32 = vpop.f32.mrf.mxu1  ;;  %v10594_v60 = vpop.f32.mrf.mxu0 }
 0x1e2   :  { %v9624_v63 = vpack.c.bf16 %v2905_v56, %v2904_v48  ;;  %v2903_v0 = vmax.f32 %v2823_v57, 0.0  ;;  %v2828_v1 = vadd.f32 %v11841_v6, %v2593_v59  ;;  %v2585_v2 = vadd.f32 %v2584_v39, %v1943_v32 }
 0x1e3   :  { %v10495_v3 = vpop.f32.mrf.mxu1  ;;  %v11128_v4 = vld [vmem:[#allocation3 + $0x60] sm:$0xff]   ;;  %v2600_v5 = vpop.f32.mrf.mxu0 }
 0x1e4   :  { %10009 = vst [vmem:[#allocation3 + $0x70] sm:$0xff] %v9624_v63   ;;  %v9619_v7 = vpack.c.bf16 %v2903_v0, %v2902_v55  ;;  %v2826_v58 = vadd.f32 %v11841_v6, %v2585_v2  ;;  %v2596_v8 = vadd.f32 %v10591_v47, %v10495_v3  ;;  %v11129_v9 = vld [vmem:[#allocation3 + $0x60] sm:$0xff]   ;;  %v2908_v13 = vmax.f32 %v2828_v1, 0.0 }
 0x1e5   :  { %v1946_v10 = vpop.f32.mrf.mxu1  ;;  %v11126_v11 = vld [vmem:[#allocation3 + $0x58] sm:$0xff]   ;;  %v10595_v12 = vpop.f32.mrf.mxu0 }
 0x1e6   :  { %10008 = vst [vmem:[#allocation3 + $0x68] sm:$0xff] %v9619_v7   ;;  %v2829_v14 = vadd.f32 %v11841_v6, %v2596_v8  ;;  %v2588_v15 = vadd.f32 %v2587_v53, %v1946_v10  ;;  %v11127_v16 = vld [vmem:[#allocation3 + $0x58] sm:$0xff]   ;;  %10673 = vmatmul.mubr.bf16.gmra.mxu1 %v11126_v11  ;;  %v2906_v19 = vmax.f32 %v2826_v58, 0.0 }
 0x1e7   :  { %v10498_v17 = vpop.f32.mrf.mxu1  ;;  %v2603_v18 = vpop.f32.mrf.mxu0  ;;  %10773 = vmatmul.mubr.bf16.gmra.mxu0 %v11127_v16  ;;  %10676 = vmatprep.mubr.bf16.mxu1 %v11128_v4 }
 0x1e8   :  { %v2909_v20 = vmax.f32 %v2829_v14, 0.0  ;;  %v2827_v21 = vadd.f32 %v11841_v6, %v2588_v15  ;;  %v2609_v22 = vadd.f32 %v10594_v60, %v10498_v17  ;;  %10776 = vmatprep.mubr.bf16.mxu0 %v11129_v9 }
 0x1e9   :  { %v1959_v23 = vpop.f32.mrf.mxu1  ;;  %v10598_v24 = vpop.f32.mrf.mxu0 }
 0x1ea   :  { %v9634_v25 = vpack.c.bf16 %v2909_v20, %v2908_v13  ;;  %v2907_v26 = vmax.f32 %v2827_v21, 0.0  ;;  %v2832_v27 = vadd.f32 %v11841_v6, %v2609_v22  ;;  %v2601_v28 = vadd.f32 %v2600_v5, %v1959_v23 }
 0x1eb   :  { %v11131_v29 = vld [vmem:[#allocation3 + $0x70] sm:$0xff]   ;;  %v10499_v30 = vpop.f32.mrf.mxu1  ;;  %v2616_v31 = vpop.f32.mrf.mxu0 }
 0x1ec   :  { %10011 = vst [vmem:[#allocation3 + $0x80] sm:$0xff] %v9634_v25   ;;  %v9629_v33 = vpack.c.bf16 %v2907_v26, %v2906_v19  ;;  %v2830_v34 = vadd.f32 %v11841_v6, %v2601_v28  ;;  %v2612_v35 = vadd.f32 %v10595_v12, %v10499_v30  ;;  %v11135_v36 = vld [vmem:[#allocation3 + $0x70] sm:$0xff]   ;;  %v2912_v39 = vmax.f32 %v2832_v27, 0.0 }
 0x1ed   :  { %v11130_v37 = vld [vmem:[#allocation3 + $0x68] sm:$0xff]   ;;  %v1962_v38 = vpop.f32.mrf.mxu1  ;;  %v10599_v61 = vpop.f32.mrf.mxu0 }
 0x1ee   :  { %10010 = vst [vmem:[#allocation3 + $0x78] sm:$0xff] %v9629_v33   ;;  %v11133_v40 = vld [vmem:[#allocation3 + $0x68] sm:$0xff]   ;;  %v2833_v42 = vadd.f32 %v11841_v6, %v2612_v35  ;;  %v2604_v43 = vadd.f32 %v2603_v18, %v1962_v38  ;;  %10677 = vmatmul.mubr.bf16.gmra.mxu1 %v11130_v37  ;;  %v2910_v46 = vmax.f32 %v2830_v34, 0.0 }
 0x1ef   :  { %v10502_v44 = vpop.f32.mrf.mxu1  ;;  %v2619_v45 = vpop.f32.mrf.mxu0  ;;  %10680 = vmatprep.mubr.bf16.mxu1 %v11131_v29  ;;  %10777 = vmatmul.mubr.bf16.gmra.mxu0 %v11133_v40 }
 0x1f0   :  { %v2913_v47 = vmax.f32 %v2833_v42, 0.0  ;;  %v2831_v48 = vadd.f32 %v11841_v6, %v2604_v43  ;;  %v2625_v49 = vadd.f32 %v10598_v24, %v10502_v44  ;;  %10780 = vmatprep.mubr.bf16.mxu0 %v11135_v36 }
 0x1f1   :  { %v1975_v50 = vpop.f32.mrf.mxu1  ;;  %v10602_v62 = vpop.f32.mrf.mxu0 }
 0x1f2   :  { %v9644_v51 = vpack.c.bf16 %v2913_v47, %v2912_v39  ;;  %v2911_v52 = vmax.f32 %v2831_v48, 0.0  ;;  %v2836_v53 = vadd.f32 %v11841_v6, %v2625_v49  ;;  %v2617_v54 = vadd.f32 %v2616_v31, %v1975_v50 }
 0x1f3   :  { %v10503_v55 = vpop.f32.mrf.mxu1  ;;  %v2632_v56 = vpop.f32.mrf.mxu0  ;;  %v11136_v57 = vld [vmem:[#allocation3 + $0x80] sm:$0xff]  }
 0x1f4   :  { %10013 = vst [vmem:[#allocation3 + $0x90] sm:$0xff] %v9644_v51   ;;  %v9639_v59 = vpack.c.bf16 %v2911_v52, %v2910_v46  ;;  %v2834_v32 = vadd.f32 %v11841_v6, %v2617_v54  ;;  %v2628_v60 = vadd.f32 %v10599_v61, %v10503_v55  ;;  %v11141_v63 = vld [vmem:[#allocation3 + $0x80] sm:$0xff]   ;;  %v2916_v3 = vmax.f32 %v2836_v53, 0.0 }
 0x1f5   :  { %v11132_v0 = vld [vmem:[#allocation3 + $0x78] sm:$0xff]   ;;  %v1978_v1 = vpop.f32.mrf.mxu1  ;;  %v10603_v2 = vpop.f32.mrf.mxu0 }
 0x1f6   :  { %10012 = vst [vmem:[#allocation3 + $0x88] sm:$0xff] %v9639_v59   ;;  %v2837_v4 = vadd.f32 %v11841_v6, %v2628_v60  ;;  %v2620_v5 = vadd.f32 %v2619_v45, %v1978_v1  ;;  %v11138_v7 = vld [vmem:[#allocation3 + $0x78] sm:$0xff]   ;;  %10681 = vmatmul.mubr.bf16.gmra.mxu1 %v11132_v0  ;;  %v2914_v9 = vmax.f32 %v2834_v32, 0.0 }
 0x1f7   :  { %v10506_v58 = vpop.f32.mrf.mxu1  ;;  %v2635_v8 = vpop.f32.mrf.mxu0  ;;  %10684 = vmatprep.mubr.bf16.mxu1 %v11136_v57  ;;  %10781 = vmatmul.mubr.bf16.gmra.mxu0 %v11138_v7 }
 0x1f8   :  { %v2917_v10 = vmax.f32 %v2837_v4, 0.0  ;;  %v2835_v11 = vadd.f32 %v11841_v6, %v2620_v5  ;;  %v2641_v12 = vadd.f32 %v10602_v62, %v10506_v58  ;;  %10784 = vmatprep.mubr.bf16.mxu0 %v11141_v63 }
 0x1f9   :  { %v1991_v13 = vpop.f32.mrf.mxu1  ;;  %v10606_v14 = vpop.f32.mrf.mxu0 }
 0x1fa   :  { %v9654_v15 = vpack.c.bf16 %v2917_v10, %v2916_v3  ;;  %v2915_v16 = vmax.f32 %v2835_v11, 0.0  ;;  %v2840_v17 = vadd.f32 %v11841_v6, %v2641_v12  ;;  %v2633_v18 = vadd.f32 %v2632_v56, %v1991_v13 }
 0x1fb   :  { %v10507_v19 = vpop.f32.mrf.mxu1  ;;  %v2648_v20 = vpop.f32.mrf.mxu0  ;;  %v11140_v21 = vld [vmem:[#allocation3 + $0x90] sm:$0xff]  }
 0x1fc   :  { %10015 = vst [vmem:[#allocation3 + $0xa0] sm:$0xff] %v9654_v15   ;;  %v9649_v22 = vpack.c.bf16 %v2915_v16, %v2914_v9  ;;  %v2838_v23 = vadd.f32 %v11841_v6, %v2633_v18  ;;  %v2644_v24 = vadd.f32 %v10603_v2, %v10507_v19  ;;  %v11145_v25 = vld [vmem:[#allocation3 + $0x90] sm:$0xff]   ;;  %v2920_v29 = vmax.f32 %v2840_v17, 0.0 }
 0x1fd   :  { %v1994_v26 = vpop.f32.mrf.mxu1  ;;  %v11137_v27 = vld [vmem:[#allocation3 + $0x88] sm:$0xff]   ;;  %v10607_v28 = vpop.f32.mrf.mxu0 }
 0x1fe   :  { %10014 = vst [vmem:[#allocation3 + $0x98] sm:$0xff] %v9649_v22   ;;  %v2841_v30 = vadd.f32 %v11841_v6, %v2644_v24  ;;  %v2636_v31 = vadd.f32 %v2635_v8, %v1994_v26  ;;  %v11143_v33 = vld [vmem:[#allocation3 + $0x88] sm:$0xff]   ;;  %10685 = vmatmul.mubr.bf16.gmra.mxu1 %v11137_v27  ;;  %v2918_v36 = vmax.f32 %v2838_v23, 0.0 }
 0x1ff   :  { %v10510_v34 = vpop.f32.mrf.mxu1  ;;  %v2651_v35 = vpop.f32.mrf.mxu0  ;;  %10688 = vmatprep.mubr.bf16.mxu1 %v11140_v21  ;;  %10785 = vmatmul.mubr.bf16.gmra.mxu0 %v11143_v33 }
 0x200   :  { %v2921_v37 = vmax.f32 %v2841_v30, 0.0  ;;  %v2839_v38 = vadd.f32 %v11841_v6, %v2636_v31  ;;  %v2657_v61 = vadd.f32 %v10606_v14, %v10510_v34  ;;  %10788 = vmatprep.mubr.bf16.mxu0 %v11145_v25 }
 0x201   :  { %v2007_v39 = vpop.f32.mrf.mxu1  ;;  %v10610_v40 = vpop.f32.mrf.mxu0 }
 0x202   :  { %v9664_v42 = vpack.c.bf16 %v2921_v37, %v2920_v29  ;;  %v2919_v43 = vmax.f32 %v2839_v38, 0.0  ;;  %v2844_v44 = vadd.f32 %v11841_v6, %v2657_v61  ;;  %v2649_v45 = vadd.f32 %v2648_v20, %v2007_v39  ;;  %v11918_v39 = vld [vmem:[%s13768_s4] ss:$0 sm:$0xff] }
 0x203   :  { %v10511_v46 = vpop.f32.mrf.mxu1  ;;  %v2664_v47 = vpop.f32.mrf.mxu0  ;;  %v11144_v48 = vld [vmem:[#allocation3 + $0xa0] sm:$0xff]  }
 0x204   :  { %10017 = vst [vmem:[#allocation3 + $0xb0] sm:$0xff] %v9664_v42   ;;  %v9659_v49 = vpack.c.bf16 %v2919_v43, %v2918_v36  ;;  %v2842_v50 = vadd.f32 %v11841_v6, %v2649_v45  ;;  %v2660_v62 = vadd.f32 %v10607_v28, %v10511_v46  ;;  %v11149_v51 = vld [vmem:[#allocation3 + $0xa0] sm:$0xff]   ;;  %v2924_v55 = vmax.f32 %v2844_v44, 0.0 }
 0x205   :  { %v2010_v52 = vpop.f32.mrf.mxu1  ;;  %v11142_v53 = vld [vmem:[#allocation3 + $0x98] sm:$0xff]   ;;  %v10611_v54 = vpop.f32.mrf.mxu0 }
 0x206   :  { %10016 = vst [vmem:[#allocation3 + $0xa8] sm:$0xff] %v9659_v49   ;;  %v2845_v56 = vadd.f32 %v11841_v6, %v2660_v62  ;;  %v2652_v57 = vadd.f32 %v2651_v35, %v2010_v52  ;;  %v11147_v59 = vld [vmem:[#allocation3 + $0x98] sm:$0xff]   ;;  %10689 = vmatmul.mubr.bf16.gmra.mxu1 %v11142_v53  ;;  %v2922_v63 = vmax.f32 %v2842_v50, 0.0 }
 0x207   :  { %v10514_v32 = vpop.f32.mrf.mxu1  ;;  %v2667_v60 = vpop.f32.mrf.mxu0  ;;  %10692 = vmatprep.mubr.bf16.mxu1 %v11144_v48  ;;  %10789 = vmatmul.mubr.bf16.gmra.mxu0 %v11147_v59 }
 0x208   :  { %v2925_v0 = vmax.f32 %v2845_v56, 0.0  ;;  %v2843_v1 = vadd.f32 %v11841_v6, %v2652_v57  ;;  %v2673_v2 = vadd.f32 %v10610_v40, %v10514_v32  ;;  %10792 = vmatprep.mubr.bf16.mxu0 %v11149_v51  ;;  %v11193_v51 = vld [vmem:[%s13767_s7] sm:$0xff]  }
 0x209   :  { %v2023_v3 = vpop.f32.mrf.mxu1  ;;  %v10614_v4 = vpop.f32.mrf.mxu0  ;;  %10846 = vmatprep.subr.bf16.mxu1 %v11193_v51 }
 0x20a   :  { %v9674_v5 = vpack.c.bf16 %v2925_v0, %v2924_v55  ;;  %v2923_v7 = vmax.f32 %v2843_v1, 0.0  ;;  %v2848_v58 = vadd.f32 %v11841_v6, %v2673_v2  ;;  %v2665_v8 = vadd.f32 %v2664_v47, %v2023_v3  ;;  %10847 = vmatpush3.bf16.msra.mxu1 %v11193_v51 }
 0x20b   :  { %v10515_v9 = vpop.f32.mrf.mxu1  ;;  %v2680_v10 = vpop.f32.mrf.mxu0  ;;  %v11148_v11 = vld [vmem:[#allocation3 + $0xb0] sm:$0xff]  }
 0x20c   :  { %10019 = vst [vmem:[#allocation3 + $0xc0] sm:$0xff] %v9674_v5   ;;  %v9669_v12 = vpack.c.bf16 %v2923_v7, %v2922_v63  ;;  %v2846_v13 = vadd.f32 %v11841_v6, %v2665_v8  ;;  %v2676_v14 = vadd.f32 %v10611_v54, %v10515_v9  ;;  %v11154_v15 = vld [vmem:[#allocation3 + $0xb0] sm:$0xff]   ;;  %v2928_v19 = vmax.f32 %v2848_v58, 0.0 }
 0x20d   :  { %v2026_v16 = vpop.f32.mrf.mxu1  ;;  %v11146_v17 = vld [vmem:[#allocation3 + $0xa8] sm:$0xff]   ;;  %v10615_v18 = vpop.f32.mrf.mxu0 }
 0x20e   :  { %10018 = vst [vmem:[#allocation3 + $0xb8] sm:$0xff] %v9669_v12   ;;  %v2849_v20 = vadd.f32 %v11841_v6, %v2676_v14  ;;  %v2668_v21 = vadd.f32 %v2667_v60, %v2026_v16  ;;  %v11151_v22 = vld [vmem:[#allocation3 + $0xa8] sm:$0xff]   ;;  %10693 = vmatmul.mubr.bf16.gmra.mxu1 %v11146_v17  ;;  %v2926_v25 = vmax.f32 %v2846_v13, 0.0 }
 0x20f   :  { %v10518_v23 = vpop.f32.mrf.mxu1  ;;  %v2683_v24 = vpop.f32.mrf.mxu0  ;;  %10696 = vmatprep.mubr.bf16.mxu1 %v11148_v11  ;;  %10793 = vmatmul.mubr.bf16.gmra.mxu0 %v11151_v22 }
 0x210   :  { %v2929_v26 = vmax.f32 %v2849_v20, 0.0  ;;  %v2847_v27 = vadd.f32 %v11841_v6, %v2668_v21  ;;  %v2689_v28 = vadd.f32 %v10614_v4, %v10518_v23  ;;  %10796 = vmatprep.mubr.bf16.mxu0 %v11154_v15 }
 0x211   :  { %v2039_v29 = vpop.f32.mrf.mxu1  ;;  %v10618_v30 = vpop.f32.mrf.mxu0 }
 0x212   :  { %v9684_v31 = vpack.c.bf16 %v2929_v26, %v2928_v19  ;;  %v2927_v33 = vmax.f32 %v2847_v27, 0.0  ;;  %v2852_v34 = vadd.f32 %v11841_v6, %v2689_v28  ;;  %v2681_v35 = vadd.f32 %v2680_v10, %v2039_v29 }
 0x213   :  { %v10519_v36 = vpop.f32.mrf.mxu1  ;;  %v2696_v37 = vpop.f32.mrf.mxu0  ;;  %v11153_v38 = vld [vmem:[#allocation3 + $0xc0] sm:$0xff]  }
 0x214   :  { %10021 = vst [vmem:[#allocation3 + $0xd0] sm:$0xff] %v9684_v31   ;;  %v9679_v61 = vpack.c.bf16 %v2927_v33, %v2926_v25  ;;  %v2850_v40 = vadd.f32 %v11918_v39, %v2681_v35  ;;  %v2692_v42 = vadd.f32 %v10615_v18, %v10519_v36  ;;  %v11158_v43 = vld [vmem:[#allocation3 + $0xc0] sm:$0xff]   ;;  %v2932_v6 = vmax.f32 %v2852_v34, 0.0 }
 0x215   :  { %v2042_v44 = vpop.f32.mrf.mxu1  ;;  %v11150_v45 = vld [vmem:[#allocation3 + $0xb8] sm:$0xff]   ;;  %v10619_v46 = vpop.f32.mrf.mxu0 }
 0x216   :  { %10020 = vst [vmem:[#allocation3 + $0xc8] sm:$0xff] %v9679_v61   ;;  %v2853_v47 = vadd.f32 %v11918_v39, %v2692_v42  ;;  %v2684_v48 = vadd.f32 %v2683_v24, %v2042_v44  ;;  %v11156_v49 = vld [vmem:[#allocation3 + $0xb8] sm:$0xff]   ;;  %10697 = vmatmul.mubr.bf16.gmra.mxu1 %v11150_v45  ;;  %v2930_v52 = vmax.f32 %v2850_v40, 0.0 }
 0x217   :  { %v10522_v50 = vpop.f32.mrf.mxu1  ;;  %v2699_v62 = vpop.f32.mrf.mxu0  ;;  %10700 = vmatprep.mubr.bf16.mxu1 %v11153_v38  ;;  %10797 = vmatmul.mubr.bf16.gmra.mxu0 %v11156_v49 }
 0x218   :  { %v2933_v53 = vmax.f32 %v2853_v47, 0.0  ;;  %v2851_v54 = vadd.f32 %v11918_v39, %v2684_v48  ;;  %v2705_v55 = vadd.f32 %v10618_v30, %v10522_v50  ;;  %10800 = vmatprep.mubr.bf16.mxu0 %v11158_v43 }
 0x219   :  { %v2055_v56 = vpop.f32.mrf.mxu1  ;;  %v10622_v57 = vpop.f32.mrf.mxu0 }
 0x21a   :  { %v9694_v59 = vpack.c.bf16 %v2933_v53, %v2932_v6  ;;  %v2931_v32 = vmax.f32 %v2851_v54, 0.0  ;;  %v2856_v60 = vadd.f32 %v11918_v39, %v2705_v55  ;;  %v2697_v63 = vadd.f32 %v2696_v37, %v2055_v56 }
 0x21b   :  { %v10523_v0 = vpop.f32.mrf.mxu1  ;;  %v2712_v1 = vpop.f32.mrf.mxu0  ;;  %v11157_v2 = vld [vmem:[#allocation3 + $0xd0] sm:$0xff]  }
 0x21c   :  { %10023 = vst [vmem:[#allocation3 + $0xe0] sm:$0xff] %v9694_v59   ;;  %v9689_v3 = vpack.c.bf16 %v2931_v32, %v2930_v52  ;;  %v2854_v4 = vadd.f32 %v11918_v39, %v2697_v63  ;;  %v2708_v5 = vadd.f32 %v10619_v46, %v10523_v0  ;;  %v11163_v7 = vld [vmem:[#allocation3 + $0xd0] sm:$0xff]   ;;  %v2936_v10 = vmax.f32 %v2856_v60, 0.0 }
 0x21d   :  { %v2058_v58 = vpop.f32.mrf.mxu1  ;;  %v11155_v8 = vld [vmem:[#allocation3 + $0xc8] sm:$0xff]   ;;  %v10623_v9 = vpop.f32.mrf.mxu0 }
 0x21e   :  { %10022 = vst [vmem:[#allocation3 + $0xd8] sm:$0xff] %v9689_v3   ;;  %v2857_v11 = vadd.f32 %v11918_v39, %v2708_v5  ;;  %v2700_v12 = vadd.f32 %v2699_v62, %v2058_v58  ;;  %v11160_v13 = vld [vmem:[#allocation3 + $0xc8] sm:$0xff]   ;;  %10701 = vmatmul.mubr.bf16.gmra.mxu1 %v11155_v8  ;;  %v2934_v16 = vmax.f32 %v2854_v4, 0.0 }
 0x21f   :  { %v10526_v14 = vpop.f32.mrf.mxu1  ;;  %v2715_v15 = vpop.f32.mrf.mxu0  ;;  %10704 = vmatprep.mubr.bf16.mxu1 %v11157_v2  ;;  %10801 = vmatmul.mubr.bf16.gmra.mxu0 %v11160_v13 }
 0x220   :  { %v2937_v17 = vmax.f32 %v2857_v11, 0.0  ;;  %v2855_v18 = vadd.f32 %v11918_v39, %v2700_v12  ;;  %v2721_v19 = vadd.f32 %v10622_v57, %v10526_v14  ;;  %10804 = vmatprep.mubr.bf16.mxu0 %v11163_v7 }
 0x221   :  { %v2071_v20 = vpop.f32.mrf.mxu1  ;;  %v10626_v21 = vpop.f32.mrf.mxu0 }
 0x222   :  { %v9704_v22 = vpack.c.bf16 %v2937_v17, %v2936_v10  ;;  %v2935_v23 = vmax.f32 %v2855_v18, 0.0  ;;  %v2860_v24 = vadd.f32 %v11918_v39, %v2721_v19  ;;  %v2713_v25 = vadd.f32 %v2712_v1, %v2071_v20 }
 0x223   :  { %v10527_v26 = vpop.f32.mrf.mxu1  ;;  %v2728_v27 = vpop.f32.mrf.mxu0  ;;  %v11162_v28 = vld [vmem:[#allocation3 + $0xe0] sm:$0xff]  }
 0x224   :  { %10025 = vst [vmem:[#allocation3 + $0xf0] sm:$0xff] %v9704_v22   ;;  %v9699_v29 = vpack.c.bf16 %v2935_v23, %v2934_v16  ;;  %v2858_v30 = vadd.f32 %v11918_v39, %v2713_v25  ;;  %v2724_v31 = vadd.f32 %v10623_v9, %v10527_v26  ;;  %v11167_v33 = vld [vmem:[#allocation3 + $0xe0] sm:$0xff]   ;;  %v2940_v37 = vmax.f32 %v2860_v24, 0.0 }
 0x225   :  { %v2074_v34 = vpop.f32.mrf.mxu1  ;;  %v11159_v35 = vld [vmem:[#allocation3 + $0xd8] sm:$0xff]   ;;  %v10627_v36 = vpop.f32.mrf.mxu0 }
 0x226   :  { %10024 = vst [vmem:[#allocation3 + $0xe8] sm:$0xff] %v9699_v29   ;;  %v2861_v38 = vadd.f32 %v11918_v39, %v2724_v31  ;;  %v2716_v61 = vadd.f32 %v2715_v15, %v2074_v34  ;;  %v11165_v40 = vld [vmem:[#allocation3 + $0xd8] sm:$0xff]   ;;  %10705 = vmatmul.mubr.bf16.gmra.mxu1 %v11159_v35  ;;  %v2938_v44 = vmax.f32 %v2858_v30, 0.0 }
 0x227   :  { %v10530_v42 = vpop.f32.mrf.mxu1  ;;  %v2731_v43 = vpop.f32.mrf.mxu0  ;;  %10708 = vmatprep.mubr.bf16.mxu1 %v11162_v28  ;;  %10805 = vmatmul.mubr.bf16.gmra.mxu0 %v11165_v40 }
 0x228   :  { %v2941_v45 = vmax.f32 %v2861_v38, 0.0  ;;  %v2859_v46 = vadd.f32 %v11918_v39, %v2716_v61  ;;  %v2737_v6 = vadd.f32 %v10626_v21, %v10530_v42  ;;  %10808 = vmatprep.mubr.bf16.mxu0 %v11167_v33 }
 0x229   :  { %v2087_v47 = vpop.f32.mrf.mxu1  ;;  %v10630_v48 = vpop.f32.mrf.mxu0 }
 0x22a   :  { %v9714_v49 = vpack.c.bf16 %v2941_v45, %v2940_v37  ;;  %v2939_v50 = vmax.f32 %v2859_v46, 0.0  ;;  %v2864_v62 = vadd.f32 %v11918_v39, %v2737_v6  ;;  %v2729_v51 = vadd.f32 %v2728_v27, %v2087_v47 }
 0x22b   :  { %v10531_v52 = vpop.f32.mrf.mxu1  ;;  %v2744_v53 = vpop.f32.mrf.mxu0  ;;  %v11166_v54 = vld [vmem:[#allocation3 + $0xf0] sm:$0xff]  }
 0x22c   :  { %10027 = vst [vmem:[#allocation3 + $0x100] sm:$0xff] %v9714_v49   ;;  %v9709_v55 = vpack.c.bf16 %v2939_v50, %v2938_v44  ;;  %v2862_v56 = vadd.f32 %v11918_v39, %v2729_v51  ;;  %v2740_v57 = vadd.f32 %v10627_v36, %v10531_v52  ;;  %v11171_v59 = vld [vmem:[#allocation3 + $0xf0] sm:$0xff]   ;;  %v2944_v0 = vmax.f32 %v2864_v62, 0.0 }
 0x22d   :  { %v2090_v32 = vpop.f32.mrf.mxu1  ;;  %v11164_v60 = vld [vmem:[#allocation3 + $0xe8] sm:$0xff]   ;;  %v10631_v63 = vpop.f32.mrf.mxu0 }
 0x22e   :  { %10026 = vst [vmem:[#allocation3 + $0xf8] sm:$0xff] %v9709_v55   ;;  %v2865_v1 = vadd.f32 %v11918_v39, %v2740_v57  ;;  %v2732_v2 = vadd.f32 %v2731_v43, %v2090_v32  ;;  %v11169_v3 = vld [vmem:[#allocation3 + $0xe8] sm:$0xff]   ;;  %10709 = vmatmul.mubr.bf16.gmra.mxu1 %v11164_v60  ;;  %v2942_v7 = vmax.f32 %v2862_v56, 0.0 }
 0x22f   :  { %v10534_v4 = vpop.f32.mrf.mxu1  ;;  %v2747_v5 = vpop.f32.mrf.mxu0  ;;  %10712 = vmatprep.mubr.bf16.mxu1 %v11166_v54  ;;  %10809 = vmatmul.mubr.bf16.gmra.mxu0 %v11169_v3 }
 0x230   :  { %v2945_v58 = vmax.f32 %v2865_v1, 0.0  ;;  %v2863_v8 = vadd.f32 %v11918_v39, %v2732_v2  ;;  %v2753_v9 = vadd.f32 %v10630_v48, %v10534_v4  ;;  %10812 = vmatprep.mubr.bf16.mxu0 %v11171_v59 }
 0x231   :  { %v2103_v10 = vpop.f32.mrf.mxu1  ;;  %v10634_v11 = vpop.f32.mrf.mxu0 }
 0x232   :  { %v9724_v12 = vpack.c.bf16 %v2945_v58, %v2944_v0  ;;  %v2943_v13 = vmax.f32 %v2863_v8, 0.0  ;;  %v2868_v14 = vadd.f32 %v11918_v39, %v2753_v9  ;;  %v2745_v15 = vadd.f32 %v2744_v53, %v2103_v10 }
 0x233   :  { %v10535_v16 = vpop.f32.mrf.mxu1  ;;  %v2760_v17 = vpop.f32.mrf.mxu0  ;;  %v11170_v18 = vld [vmem:[#allocation3 + $0x100] sm:$0xff]  }
 0x234   :  { %10029 = vst [vmem:[#allocation3 + $0x110] sm:$0xff] %v9724_v12   ;;  %v9719_v19 = vpack.c.bf16 %v2943_v13, %v2942_v7  ;;  %v2866_v20 = vadd.f32 %v11918_v39, %v2745_v15  ;;  %v2756_v21 = vadd.f32 %v10631_v63, %v10535_v16  ;;  %v11176_v22 = vld [vmem:[#allocation3 + $0x100] sm:$0xff]   ;;  %v2948_v26 = vmax.f32 %v2868_v14, 0.0 }
 0x235   :  { %v2106_v23 = vpop.f32.mrf.mxu1  ;;  %v11168_v24 = vld [vmem:[#allocation3 + $0xf8] sm:$0xff]   ;;  %v10635_v25 = vpop.f32.mrf.mxu0 }
 0x236   :  { %10028 = vst [vmem:[#allocation3 + $0x108] sm:$0xff] %v9719_v19   ;;  %v2869_v27 = vadd.f32 %v11918_v39, %v2756_v21  ;;  %v2748_v28 = vadd.f32 %v2747_v5, %v2106_v23  ;;  %v11173_v29 = vld [vmem:[#allocation3 + $0xf8] sm:$0xff]   ;;  %10713 = vmatmul.mubr.bf16.gmra.mxu1 %v11168_v24  ;;  %v2946_v33 = vmax.f32 %v2866_v20, 0.0 }
 0x237   :  { %v10538_v30 = vpop.f32.mrf.mxu1  ;;  %v2763_v31 = vpop.f32.mrf.mxu0  ;;  %10716 = vmatprep.mubr.bf16.mxu1 %v11170_v18  ;;  %10813 = vmatmul.mubr.bf16.gmra.mxu0 %v11173_v29 }
 0x238   :  { %v2949_v34 = vmax.f32 %v2869_v27, 0.0  ;;  %v2867_v35 = vadd.f32 %v11918_v39, %v2748_v28  ;;  %v2769_v36 = vadd.f32 %v10634_v11, %v10538_v30  ;;  %10816 = vmatprep.mubr.bf16.mxu0 %v11176_v22 }
 0x239   :  { %v2119_v37 = vpop.f32.mrf.mxu1  ;;  %v10638_v38 = vpop.f32.mrf.mxu0 }
 0x23a   :  { %v9734_v61 = vpack.c.bf16 %v2949_v34, %v2948_v26  ;;  %v2947_v40 = vmax.f32 %v2867_v35, 0.0  ;;  %v2872_v42 = vadd.f32 %v11918_v39, %v2769_v36  ;;  %v2761_v43 = vadd.f32 %v2760_v17, %v2119_v37 }
 0x23b   :  { %v10539_v44 = vpop.f32.mrf.mxu1  ;;  %v2776_v45 = vpop.f32.mrf.mxu0  ;;  %v11175_v46 = vld [vmem:[#allocation3 + $0x110] sm:$0xff]  }
 0x23c   :  { %10031 = vst [vmem:[#allocation3 + $0x120] sm:$0xff] %v9734_v61   ;;  %v9729_v6 = vpack.c.bf16 %v2947_v40, %v2946_v33  ;;  %v2870_v47 = vadd.f32 %v11918_v39, %v2761_v43  ;;  %v2772_v48 = vadd.f32 %v10635_v25, %v10539_v44  ;;  %v11180_v49 = vld [vmem:[#allocation3 + $0x110] sm:$0xff]   ;;  %v2952_v51 = vmax.f32 %v2872_v42, 0.0 }
 0x23d   :  { %v2122_v50 = vpop.f32.mrf.mxu1  ;;  %v11172_v62 = vld [vmem:[#allocation3 + $0x108] sm:$0xff]   ;;  %v10639_v56 = vpop.f32.mrf.mxu0 }
 0x23e   :  { %10030 = vst [vmem:[#allocation3 + $0x118] sm:$0xff] %v9729_v6   ;;  %v2873_v52 = vadd.f32 %v11918_v39, %v2772_v48  ;;  %v2764_v53 = vadd.f32 %v2763_v31, %v2122_v50  ;;  %v11178_v54 = vld [vmem:[#allocation3 + $0x108] sm:$0xff]   ;;  %10717 = vmatmul.mubr.bf16.gmra.mxu1 %v11172_v62  ;;  %v2950_v57 = vmax.f32 %v2870_v47, 0.0 }
 0x23f   :  { %v10542_v55 = vpop.f32.mrf.mxu1  ;;  %10720 = vmatprep.mubr.bf16.mxu1 %v11175_v46  ;;  %10817 = vmatmul.mubr.bf16.gmra.mxu0 %v11178_v54  ;;  %v2779_v5 = vpop.f32.mrf.mxu0 }
 0x240   :  { %v2953_v59 = vmax.f32 %v2873_v52, 0.0  ;;  %v2871_v32 = vadd.f32 %v11918_v39, %v2764_v53  ;;  %v2785_v60 = vadd.f32 %v10638_v38, %v10542_v55  ;;  %10820 = vmatprep.mubr.bf16.mxu0 %v11180_v49  ;;  %v11953_v38 = vld [vmem:[%s13769_s6] ss:$0 sm:$0xff] }
 0x241   :  { %v2135_v63 = vpop.f32.mrf.mxu1 }
 0x242   :  { %v9744_v0 = vpack.c.bf16 %v2953_v59, %v2952_v51  ;;  %v2951_v1 = vmax.f32 %v2871_v32, 0.0  ;;  %v2876_v2 = vadd.f32 %v11918_v39, %v2785_v60  ;;  %v2777_v3 = vadd.f32 %v2776_v45, %v2135_v63 }
 0x243   :  { %v10543_v4 = vpop.f32.mrf.mxu1  ;;  %v11179_v7 = vld [vmem:[#allocation3 + $0x120] sm:$0xff]  }
 0x244   :  { %10033 = vst [vmem:[#allocation3 + $0x130] sm:$0xff] %v9744_v0   ;;  %v9739_v58 = vpack.c.bf16 %v2951_v1, %v2950_v57  ;;  %v2874_v8 = vadd.f32 %v11918_v39, %v2777_v3  ;;  %v2788_v9 = vadd.f32 %v10639_v56, %v10543_v4  ;;  %v11185_v10 = vld [vmem:[#allocation3 + $0x120] sm:$0xff]   ;;  %v2956_v13 = vmax.f32 %v2876_v2, 0.0 }
 0x245   :  { %v2138_v11 = vpop.f32.mrf.mxu1  ;;  %v11177_v12 = vld [vmem:[#allocation3 + $0x118] sm:$0xff]  }
 0x246   :  { %10032 = vst [vmem:[#allocation3 + $0x128] sm:$0xff] %v9739_v58   ;;  %v2877_v14 = vadd.f32 %v11918_v39, %v2788_v9  ;;  %v2780_v15 = vadd.f32 %v2779_v5, %v2138_v11  ;;  %v11182_v16 = vld [vmem:[#allocation3 + $0x118] sm:$0xff]   ;;  %10721 = vmatmul.mubr.bf16.gmra.mxu1 %v11177_v12  ;;  %v2954_v17 = vmax.f32 %v2874_v8, 0.0 }
 0x247   :  { %10724 = vmatprep.mubr.bf16.mxu1 %v11179_v7  ;;  %10821 = vmatmul.mubr.bf16.gmra.mxu0 %v11182_v16 }
 0x248   :  { %v2957_v18 = vmax.f32 %v2877_v14, 0.0  ;;  %v2875_v19 = vadd.f32 %v11918_v39, %v2780_v15  ;;  %10824 = vmatprep.mubr.bf16.mxu0 %v11185_v10  ;;  %v11190_v39 = vld [vmem:[#allocation3 + $0x148] sm:$0xff]  }
 0x24a   :  { %v9754_v20 = vpack.c.bf16 %v2957_v18, %v2956_v13  ;;  %v2955_v21 = vmax.f32 %v2875_v19, 0.0 }
 0x24b   :  { %v11184_v22 = vld [vmem:[#allocation3 + $0x130] sm:$0xff]  }
 0x24c   :  { %10035 = vst [vmem:[#allocation3 + $0x140] sm:$0xff] %v9754_v20   ;;  %v9749_v23 = vpack.c.bf16 %v2955_v21, %v2954_v17  ;;  %v11189_v24 = vld [vmem:[#allocation3 + $0x130] sm:$0xff]  }
 0x24d   :  { %v11181_v25 = vld [vmem:[#allocation3 + $0x128] sm:$0xff]  }
 0x24e   :  { %10034 = vst [vmem:[#allocation3 + $0x138] sm:$0xff] %v9749_v23   ;;  %v11187_v26 = vld [vmem:[#allocation3 + $0x128] sm:$0xff]   ;;  %10725 = vmatmul.mubr.bf16.gmra.mxu1 %v11181_v25 }
 0x24f   :  { %10728 = vmatprep.mubr.bf16.mxu1 %v11184_v22  ;;  %10825 = vmatmul.mubr.bf16.gmra.mxu0 %v11187_v26 }
 0x250   :  { %10828 = vmatprep.mubr.bf16.mxu0 %v11189_v24 }
 0x253   :  { %v11188_v27 = vld [vmem:[#allocation3 + $0x140] sm:$0xff]  }
 0x255   :  { %v11186_v28 = vld [vmem:[#allocation3 + $0x138] sm:$0xff]  }
 0x256   :  { %v11191_v29 = vld [vmem:[#allocation3 + $0x138] sm:$0xff]   ;;  %10729 = vmatmul.mubr.bf16.gmra.mxu1 %v11186_v28 }
 0x257   :  { %10732 = vmatprep.mubr.bf16.mxu1 %v11188_v27  ;;  %10829 = vmatmul.mubr.bf16.gmra.mxu0 %v11191_v29 }
 0x25e   :  { %10733 = vmatmul.mubr.bf16.gmra.mxu1 %v11190_v39 }
 0x27e   :  { %v10754_v30 = vpop.f32.mrf.mxu0 }
 0x280   :  { %v4514_v31 = vpop.f32.mrf.mxu0 }
 0x282   :  { %v10755_v33 = vpop.f32.mrf.mxu0 }
 0x284   :  { %v4517_v34 = vpop.f32.mrf.mxu0 }
 0x286   :  { %v10658_v35 = vpop.f32.mrf.mxu1 }
 0x287   :  { %v4523_v36 = vadd.f32 %v10754_v30, %v10658_v35  ;;  %v10758_v37 = vpop.f32.mrf.mxu0 }
 0x288   :  { %v3873_v61 = vpop.f32.mrf.mxu1 }
 0x289   :  { %v4515_v40 = vadd.f32 %v4514_v31, %v3873_v61  ;;  %v4530_v42 = vpop.f32.mrf.mxu0  ;;  %v4842_v44 = vadd.f32 %v11953_v38, %v4523_v36 }
 0x28a   :  { %v10659_v43 = vpop.f32.mrf.mxu1 }
 0x28b   :  { %v4526_v45 = vadd.f32 %v10755_v33, %v10659_v43  ;;  %v10759_v46 = vpop.f32.mrf.mxu0  ;;  %v4840_v47 = vadd.f32 %v11953_v38, %v4515_v40  ;;  %v4922_v51 = vmax.f32 %v4842_v44, 0.0 }
 0x28c   :  { %v3876_v6 = vpop.f32.mrf.mxu1 }
 0x28d   :  { %v4843_v48 = vadd.f32 %v11953_v38, %v4526_v45  ;;  %v4518_v49 = vadd.f32 %v4517_v34, %v3876_v6  ;;  %v4533_v50 = vpop.f32.mrf.mxu0  ;;  %v4920_v57 = vmax.f32 %v4840_v47, 0.0 }
 0x28e   :  { %v10662_v62 = vpop.f32.mrf.mxu1 }
 0x28f   :  { %v4923_v52 = vmax.f32 %v4843_v48, 0.0  ;;  %v4841_v53 = vadd.f32 %v11953_v38, %v4518_v49  ;;  %v4539_v54 = vadd.f32 %v10758_v37, %v10662_v62  ;;  %v10762_v55 = vpop.f32.mrf.mxu0 }
 0x290   :  { %v3889_v56 = vpop.f32.mrf.mxu1 }
 0x291   :  { %v9764_v59 = vpack.c.bf16 %v4923_v52, %v4922_v51  ;;  %v4921_v32 = vmax.f32 %v4841_v53, 0.0  ;;  %v4531_v60 = vadd.f32 %v4530_v42, %v3889_v56  ;;  %v4546_v63 = vpop.f32.mrf.mxu0  ;;  %v4846_v2 = vadd.f32 %v11953_v38, %v4539_v54 }
 0x292   :  { %v10663_v0 = vpop.f32.mrf.mxu1 }
 0x293   :  { %10037 = vst [vmem:[#allocation4 + $0x10] sm:$0xff] %v9764_v59   ;;  %v9759_v1 = vpack.c.bf16 %v4921_v32, %v4920_v57  ;;  %v4542_v3 = vadd.f32 %v10759_v46, %v10663_v0  ;;  %v10763_v4 = vpop.f32.mrf.mxu0  ;;  %v4844_v7 = vadd.f32 %v11953_v38, %v4531_v60  ;;  %v4926_v11 = vmax.f32 %v4846_v2, 0.0 }
 0x294   :  { %v3892_v5 = vpop.f32.mrf.mxu1 }
 0x295   :  { %10036 = vst [vmem:[#allocation4 + $0x8] sm:$0xff] %v9759_v1   ;;  %v4847_v58 = vadd.f32 %v11953_v38, %v4542_v3  ;;  %v4534_v8 = vadd.f32 %v4533_v50, %v3892_v5  ;;  %v4549_v9 = vpop.f32.mrf.mxu0  ;;  %v4924_v17 = vmax.f32 %v4844_v7, 0.0 }
 0x296   :  { %v10666_v10 = vpop.f32.mrf.mxu1 }
 0x297   :  { %v4927_v12 = vmax.f32 %v4847_v58, 0.0  ;;  %v4845_v13 = vadd.f32 %v11953_v38, %v4534_v8  ;;  %v4555_v14 = vadd.f32 %v10762_v55, %v10666_v10  ;;  %v10766_v15 = vpop.f32.mrf.mxu0 }
 0x298   :  { %v3905_v16 = vpop.f32.mrf.mxu1 }
 0x299   :  { %v9774_v18 = vpack.c.bf16 %v4927_v12, %v4926_v11  ;;  %v4925_v19 = vmax.f32 %v4845_v13, 0.0  ;;  %v4547_v20 = vadd.f32 %v4546_v63, %v3905_v16  ;;  %v4562_v21 = vpop.f32.mrf.mxu0  ;;  %v4850_v24 = vadd.f32 %v11953_v38, %v4555_v14 }
 0x29a   :  { %v10667_v22 = vpop.f32.mrf.mxu1  ;;  %v11195_v33 = vld [vmem:[#allocation4 + $0x10] sm:$0xff]  }
 0x29b   :  { %10039 = vst [vmem:[#allocation4 + $0x20] sm:$0xff] %v9774_v18   ;;  %v9769_v23 = vpack.c.bf16 %v4925_v19, %v4924_v17  ;;  %v4558_v25 = vadd.f32 %v10763_v4, %v10667_v22  ;;  %v10767_v26 = vpop.f32.mrf.mxu0  ;;  %v4848_v29 = vadd.f32 %v11953_v38, %v4547_v20  ;;  %v4930_v35 = vmax.f32 %v4850_v24, 0.0 }
 0x29c   :  { %v3908_v27 = vpop.f32.mrf.mxu1  ;;  %v11194_v28 = vld [vmem:[#allocation4 + $0x8] sm:$0xff]  }
 0x29d   :  { %10038 = vst [vmem:[#allocation4 + $0x18] sm:$0xff] %v9769_v23   ;;  %v4851_v39 = vadd.f32 %v11953_v38, %v4558_v25  ;;  %v4550_v30 = vadd.f32 %v4549_v9, %v3908_v27  ;;  %v4565_v31 = vpop.f32.mrf.mxu0  ;;  %10848 = vmatprep.mubr.bf16.mxu1 %v11194_v28  ;;  %v4928_v43 = vmax.f32 %v4848_v29, 0.0 }
 0x29e   :  { %v10670_v34 = vpop.f32.mrf.mxu1  ;;  %10849 = vmatmul.mubr.bf16.vlgmr.msra.gmra.mxu1 %v11195_v33 }
 0x29f   :  { %v4931_v36 = vmax.f32 %v4851_v39, 0.0  ;;  %v4849_v37 = vadd.f32 %v11953_v38, %v4550_v30  ;;  %v4571_v61 = vadd.f32 %v10766_v15, %v10670_v34  ;;  %v10770_v40 = vpop.f32.mrf.mxu0 }
 0x2a0   :  { %v3921_v42 = vpop.f32.mrf.mxu1 }
 0x2a1   :  { %v9784_v44 = vpack.c.bf16 %v4931_v36, %v4930_v35  ;;  %v4929_v45 = vmax.f32 %v4849_v37, 0.0  ;;  %v4563_v46 = vadd.f32 %v4562_v21, %v3921_v42  ;;  %v4578_v6 = vpop.f32.mrf.mxu0  ;;  %v4854_v49 = vadd.f32 %v11953_v38, %v4571_v61 }
 0x2a2   :  { %v10671_v47 = vpop.f32.mrf.mxu1  ;;  %v11197_v57 = vld [vmem:[#allocation4 + $0x20] sm:$0xff]  }
 0x2a3   :  { %10041 = vst [vmem:[#allocation4 + $0x30] sm:$0xff] %v9784_v44   ;;  %v9779_v48 = vpack.c.bf16 %v4929_v45, %v4928_v43  ;;  %v4574_v50 = vadd.f32 %v10767_v26, %v10671_v47  ;;  %v10771_v62 = vpop.f32.mrf.mxu0  ;;  %v4852_v53 = vadd.f32 %v11953_v38, %v4563_v46  ;;  %v4934_v32 = vmax.f32 %v4854_v49, 0.0 }
 0x2a4   :  { %v3924_v51 = vpop.f32.mrf.mxu1  ;;  %v11196_v52 = vld [vmem:[#allocation4 + $0x18] sm:$0xff]  }
 0x2a5   :  { %10040 = vst [vmem:[#allocation4 + $0x28] sm:$0xff] %v9779_v48   ;;  %v4855_v54 = vadd.f32 %v11953_v38, %v4574_v50  ;;  %v4566_v55 = vadd.f32 %v4565_v31, %v3924_v51  ;;  %v4581_v56 = vpop.f32.mrf.mxu0  ;;  %10852 = vmatprep.mubr.bf16.mxu1 %v11196_v52  ;;  %v4932_v3 = vmax.f32 %v4852_v53, 0.0 }
 0x2a6   :  { %v10674_v59 = vpop.f32.mrf.mxu1  ;;  %10853 = vmatmul.mubr.bf16.gmra.mxu1 %v11197_v57 }
 0x2a7   :  { %v4935_v60 = vmax.f32 %v4855_v54, 0.0  ;;  %v4853_v63 = vadd.f32 %v11953_v38, %v4566_v55  ;;  %v4587_v0 = vadd.f32 %v10770_v40, %v10674_v59  ;;  %v10774_v1 = vpop.f32.mrf.mxu0 }
 0x2a8   :  { %v3937_v2 = vpop.f32.mrf.mxu1 }
 0x2a9   :  { %v9794_v4 = vpack.c.bf16 %v4935_v60, %v4934_v32  ;;  %v4933_v5 = vmax.f32 %v4853_v63, 0.0  ;;  %v4579_v7 = vadd.f32 %v4578_v6, %v3937_v2  ;;  %v4594_v58 = vpop.f32.mrf.mxu0  ;;  %v4858_v10 = vadd.f32 %v11953_v38, %v4587_v0 }
 0x2aa   :  { %v10675_v8 = vpop.f32.mrf.mxu1  ;;  %v11199_v19 = vld [vmem:[#allocation4 + $0x30] sm:$0xff]  }
 0x2ab   :  { %10043 = vst [vmem:[#allocation4 + $0x40] sm:$0xff] %v9794_v4   ;;  %v9789_v9 = vpack.c.bf16 %v4933_v5, %v4932_v3  ;;  %v4590_v11 = vadd.f32 %v10771_v62, %v10675_v8  ;;  %v10775_v12 = vpop.f32.mrf.mxu0  ;;  %v4856_v15 = vadd.f32 %v11953_v38, %v4579_v7  ;;  %v4938_v21 = vmax.f32 %v4858_v10, 0.0 }
 0x2ac   :  { %v3940_v13 = vpop.f32.mrf.mxu1  ;;  %v11198_v14 = vld [vmem:[#allocation4 + $0x28] sm:$0xff]  }
 0x2ad   :  { %10042 = vst [vmem:[#allocation4 + $0x38] sm:$0xff] %v9789_v9   ;;  %v4859_v16 = vadd.f32 %v11953_v38, %v4590_v11  ;;  %v4582_v17 = vadd.f32 %v4581_v56, %v3940_v13  ;;  %v4597_v18 = vpop.f32.mrf.mxu0  ;;  %10856 = vmatprep.mubr.bf16.mxu1 %v11198_v14  ;;  %v4936_v27 = vmax.f32 %v4856_v15, 0.0 }
 0x2ae   :  { %v10678_v20 = vpop.f32.mrf.mxu1  ;;  %10857 = vmatmul.mubr.bf16.gmra.mxu1 %v11199_v19 }
 0x2af   :  { %v4939_v22 = vmax.f32 %v4859_v16, 0.0  ;;  %v4857_v23 = vadd.f32 %v11953_v38, %v4582_v17  ;;  %v4603_v24 = vadd.f32 %v10774_v1, %v10678_v20  ;;  %v10778_v25 = vpop.f32.mrf.mxu0 }
 0x2b0   :  { %v3953_v26 = vpop.f32.mrf.mxu1 }
 0x2b1   :  { %v9804_v28 = vpack.c.bf16 %v4939_v22, %v4938_v21  ;;  %v4937_v29 = vmax.f32 %v4857_v23, 0.0  ;;  %v4595_v39 = vadd.f32 %v4594_v58, %v3953_v26  ;;  %v4610_v30 = vpop.f32.mrf.mxu0  ;;  %v4862_v34 = vadd.f32 %v11953_v38, %v4603_v24 }
 0x2b2   :  { %v10679_v31 = vpop.f32.mrf.mxu1  ;;  %v11201_v44 = vld [vmem:[#allocation4 + $0x40] sm:$0xff]  }
 0x2b3   :  { %10045 = vst [vmem:[#allocation4 + $0x50] sm:$0xff] %v9804_v28   ;;  %v9799_v33 = vpack.c.bf16 %v4937_v29, %v4936_v27  ;;  %v4606_v35 = vadd.f32 %v10775_v12, %v10679_v31  ;;  %v10779_v36 = vpop.f32.mrf.mxu0  ;;  %v4860_v37 = vadd.f32 %v11953_v38, %v4595_v39  ;;  %v4942_v6 = vmax.f32 %v4862_v34, 0.0 }
 0x2b4   :  { %v3956_v61 = vpop.f32.mrf.mxu1  ;;  %v11200_v40 = vld [vmem:[#allocation4 + $0x38] sm:$0xff]  }
 0x2b5   :  { %10044 = vst [vmem:[#allocation4 + $0x48] sm:$0xff] %v9799_v33   ;;  %v4863_v42 = vadd.f32 %v11953_v38, %v4606_v35  ;;  %v4598_v43 = vadd.f32 %v4597_v18, %v3956_v61  ;;  %v4613_v45 = vpop.f32.mrf.mxu0  ;;  %10860 = vmatprep.mubr.bf16.mxu1 %v11200_v40  ;;  %v4940_v62 = vmax.f32 %v4860_v37, 0.0 }
 0x2b6   :  { %v10682_v46 = vpop.f32.mrf.mxu1  ;;  %10861 = vmatmul.mubr.bf16.gmra.mxu1 %v11201_v44 }
 0x2b7   :  { %v4943_v47 = vmax.f32 %v4863_v42, 0.0  ;;  %v4861_v48 = vadd.f32 %v11953_v38, %v4598_v43  ;;  %v4619_v49 = vadd.f32 %v10778_v25, %v10682_v46  ;;  %v10782_v50 = vpop.f32.mrf.mxu0 }
 0x2b8   :  { %v3969_v51 = vpop.f32.mrf.mxu1 }
 0x2b9   :  { %v9814_v52 = vpack.c.bf16 %v4943_v47, %v4942_v6  ;;  %v4941_v53 = vmax.f32 %v4861_v48, 0.0  ;;  %v4866_v54 = vadd.f32 %v11953_v38, %v4619_v49  ;;  %v4611_v55 = vadd.f32 %v4610_v30, %v3969_v51  ;;  %v4626_v56 = vpop.f32.mrf.mxu0 }
 0x2ba   :  { %v10683_v57 = vpop.f32.mrf.mxu1  ;;  %v11203_v5 = vld [vmem:[#allocation4 + $0x50] sm:$0xff]  }
 0x2bb   :  { %10047 = vst [vmem:[#allocation4 + $0x60] sm:$0xff] %v9814_v52   ;;  %v9809_v59 = vpack.c.bf16 %v4941_v53, %v4940_v62  ;;  %v4864_v32 = vadd.f32 %v11953_v38, %v4611_v55  ;;  %v4622_v60 = vadd.f32 %v10779_v36, %v10683_v57  ;;  %v10783_v63 = vpop.f32.mrf.mxu0  ;;  %v4946_v2 = vmax.f32 %v4866_v54, 0.0 }
 0x2bc   :  { %v3972_v0 = vpop.f32.mrf.mxu1  ;;  %v11202_v1 = vld [vmem:[#allocation4 + $0x48] sm:$0xff]  }
 0x2bd   :  { %10046 = vst [vmem:[#allocation4 + $0x58] sm:$0xff] %v9809_v59   ;;  %v4867_v3 = vadd.f32 %v11953_v38, %v4622_v60  ;;  %v4614_v4 = vadd.f32 %v4613_v45, %v3972_v0  ;;  %v4629_v7 = vpop.f32.mrf.mxu0  ;;  %10864 = vmatprep.mubr.bf16.mxu1 %v11202_v1  ;;  %v4944_v8 = vmax.f32 %v4864_v32, 0.0 }
 0x2be   :  { %v10686_v58 = vpop.f32.mrf.mxu1  ;;  %10865 = vmatmul.mubr.bf16.gmra.mxu1 %v11203_v5 }
 0x2bf   :  { %v4947_v9 = vmax.f32 %v4867_v3, 0.0  ;;  %v4865_v10 = vadd.f32 %v11953_v38, %v4614_v4  ;;  %v4635_v11 = vadd.f32 %v10782_v50, %v10686_v58  ;;  %v10786_v12 = vpop.f32.mrf.mxu0 }
 0x2c0   :  { %v3985_v13 = vpop.f32.mrf.mxu1 }
 0x2c1   :  { %v9824_v14 = vpack.c.bf16 %v4947_v9, %v4946_v2  ;;  %v4945_v15 = vmax.f32 %v4865_v10, 0.0  ;;  %v4870_v16 = vadd.f32 %v11953_v38, %v4635_v11  ;;  %v4627_v17 = vadd.f32 %v4626_v56, %v3985_v13  ;;  %v4642_v18 = vpop.f32.mrf.mxu0 }
 0x2c2   :  { %v10687_v19 = vpop.f32.mrf.mxu1  ;;  %v11205_v26 = vld [vmem:[#allocation4 + $0x60] sm:$0xff]  }
 0x2c3   :  { %10049 = vst [vmem:[#allocation4 + $0x70] sm:$0xff] %v9824_v14   ;;  %v9819_v20 = vpack.c.bf16 %v4945_v15, %v4944_v8  ;;  %v4868_v21 = vadd.f32 %v11953_v38, %v4627_v17  ;;  %v4638_v22 = vadd.f32 %v10783_v63, %v10687_v19  ;;  %v10787_v23 = vpop.f32.mrf.mxu0  ;;  %v4950_v27 = vmax.f32 %v4870_v16, 0.0 }
 0x2c4   :  { %v11204_v24 = vld [vmem:[#allocation4 + $0x58] sm:$0xff]   ;;  %v3988_v25 = vpop.f32.mrf.mxu1 }
 0x2c5   :  { %10048 = vst [vmem:[#allocation4 + $0x68] sm:$0xff] %v9819_v20   ;;  %v4871_v28 = vadd.f32 %v11953_v38, %v4638_v22  ;;  %v4630_v29 = vadd.f32 %v4629_v7, %v3988_v25  ;;  %v4645_v39 = vpop.f32.mrf.mxu0  ;;  %10868 = vmatprep.mubr.bf16.mxu1 %v11204_v24  ;;  %v4948_v31 = vmax.f32 %v4868_v21, 0.0 }
 0x2c6   :  { %v10690_v30 = vpop.f32.mrf.mxu1  ;;  %10869 = vmatmul.mubr.bf16.gmra.mxu1 %v11205_v26 }
 0x2c7   :  { %v4951_v33 = vmax.f32 %v4871_v28, 0.0  ;;  %v4869_v34 = vadd.f32 %v11953_v38, %v4630_v29  ;;  %v4651_v35 = vadd.f32 %v10786_v12, %v10690_v30  ;;  %v10790_v36 = vpop.f32.mrf.mxu0 }
 0x2c8   :  { %v4001_v37 = vpop.f32.mrf.mxu1 }
 0x2c9   :  { %v9834_v61 = vpack.c.bf16 %v4951_v33, %v4950_v27  ;;  %v4949_v40 = vmax.f32 %v4869_v34, 0.0  ;;  %v4874_v42 = vadd.f32 %v11953_v38, %v4651_v35  ;;  %v4643_v43 = vadd.f32 %v4642_v18, %v4001_v37  ;;  %v4658_v44 = vpop.f32.mrf.mxu0 }
 0x2ca   :  { %v10691_v45 = vpop.f32.mrf.mxu1  ;;  %v11207_v46 = vld [vmem:[#allocation4 + $0x70] sm:$0xff]  }
 0x2cb   :  { %10051 = vst [vmem:[#allocation4 + $0x80] sm:$0xff] %v9834_v61   ;;  %v9829_v6 = vpack.c.bf16 %v4949_v40, %v4948_v31  ;;  %v4872_v47 = vadd.f32 %v11953_v38, %v4643_v43  ;;  %v4654_v48 = vadd.f32 %v10787_v23, %v10691_v45  ;;  %v10791_v49 = vpop.f32.mrf.mxu0  ;;  %v4954_v51 = vmax.f32 %v4874_v42, 0.0 }
 0x2cc   :  { %v11206_v50 = vld [vmem:[#allocation4 + $0x68] sm:$0xff]   ;;  %v4004_v62 = vpop.f32.mrf.mxu1 }
 0x2cd   :  { %10050 = vst [vmem:[#allocation4 + $0x78] sm:$0xff] %v9829_v6   ;;  %v4875_v52 = vadd.f32 %v11953_v38, %v4654_v48  ;;  %v4646_v53 = vadd.f32 %v4645_v39, %v4004_v62  ;;  %v4661_v54 = vpop.f32.mrf.mxu0  ;;  %10872 = vmatprep.mubr.bf16.mxu1 %v11206_v50  ;;  %v4952_v56 = vmax.f32 %v4872_v47, 0.0 }
 0x2ce   :  { %v10694_v55 = vpop.f32.mrf.mxu1  ;;  %10873 = vmatmul.mubr.bf16.gmra.mxu1 %v11207_v46 }
 0x2cf   :  { %v4955_v57 = vmax.f32 %v4875_v52, 0.0  ;;  %v4873_v59 = vadd.f32 %v11953_v38, %v4646_v53  ;;  %v4667_v32 = vadd.f32 %v10790_v36, %v10694_v55  ;;  %v10794_v60 = vpop.f32.mrf.mxu0 }
 0x2d0   :  { %v4017_v63 = vpop.f32.mrf.mxu1 }
 0x2d1   :  { %v9844_v0 = vpack.c.bf16 %v4955_v57, %v4954_v51  ;;  %v4953_v1 = vmax.f32 %v4873_v59, 0.0  ;;  %v4878_v2 = vadd.f32 %v11953_v38, %v4667_v32  ;;  %v4659_v3 = vadd.f32 %v4658_v44, %v4017_v63  ;;  %v4674_v4 = vpop.f32.mrf.mxu0 }
 0x2d2   :  { %v10695_v5 = vpop.f32.mrf.mxu1  ;;  %v11209_v9 = vld [vmem:[#allocation4 + $0x80] sm:$0xff]  }
 0x2d3   :  { %10053 = vst [vmem:[#allocation4 + $0x90] sm:$0xff] %v9844_v0   ;;  %v9839_v7 = vpack.c.bf16 %v4953_v1, %v4952_v56  ;;  %v4876_v58 = vadd.f32 %v11953_v38, %v4659_v3  ;;  %v4670_v8 = vadd.f32 %v10791_v49, %v10695_v5  ;;  %v10795_v10 = vpop.f32.mrf.mxu0  ;;  %v4958_v13 = vmax.f32 %v4878_v2, 0.0 }
 0x2d4   :  { %v4020_v11 = vpop.f32.mrf.mxu1  ;;  %v11208_v12 = vld [vmem:[#allocation4 + $0x78] sm:$0xff]  }
 0x2d5   :  { %10052 = vst [vmem:[#allocation4 + $0x88] sm:$0xff] %v9839_v7   ;;  %v4879_v14 = vadd.f32 %v11953_v38, %v4670_v8  ;;  %v4662_v15 = vadd.f32 %v4661_v54, %v4020_v11  ;;  %v4677_v16 = vpop.f32.mrf.mxu0  ;;  %10876 = vmatprep.mubr.bf16.mxu1 %v11208_v12  ;;  %v4956_v18 = vmax.f32 %v4876_v58, 0.0 }
 0x2d6   :  { %v10698_v17 = vpop.f32.mrf.mxu1  ;;  %10877 = vmatmul.mubr.bf16.gmra.mxu1 %v11209_v9 }
 0x2d7   :  { %v4959_v19 = vmax.f32 %v4879_v14, 0.0  ;;  %v4877_v20 = vadd.f32 %v11953_v38, %v4662_v15  ;;  %v4683_v21 = vadd.f32 %v10794_v60, %v10698_v17  ;;  %v10798_v22 = vpop.f32.mrf.mxu0 }
 0x2d8   :  { %v4033_v23 = vpop.f32.mrf.mxu1 }
 0x2d9   :  { %v9854_v24 = vpack.c.bf16 %v4959_v19, %v4958_v13  ;;  %v4957_v25 = vmax.f32 %v4877_v20, 0.0  ;;  %v4882_v26 = vadd.f32 %v11953_v38, %v4683_v21  ;;  %v4675_v27 = vadd.f32 %v4674_v4, %v4033_v23  ;;  %v4690_v28 = vpop.f32.mrf.mxu0 }
 0x2da   :  { %v10699_v29 = vpop.f32.mrf.mxu1  ;;  %v11211_v33 = vld [vmem:[#allocation4 + $0x90] sm:$0xff]  }
 0x2db   :  { %10055 = vst [vmem:[#allocation4 + $0xa0] sm:$0xff] %v9854_v24   ;;  %v9849_v39 = vpack.c.bf16 %v4957_v25, %v4956_v18  ;;  %v4880_v30 = vadd.f32 %v11953_v38, %v4675_v27  ;;  %v4686_v31 = vadd.f32 %v10795_v10, %v10699_v29  ;;  %v10799_v34 = vpop.f32.mrf.mxu0  ;;  %v4962_v37 = vmax.f32 %v4882_v26, 0.0 }
 0x2dc   :  { %v4036_v35 = vpop.f32.mrf.mxu1  ;;  %v11210_v36 = vld [vmem:[#allocation4 + $0x88] sm:$0xff]  }
 0x2dd   :  { %10054 = vst [vmem:[#allocation4 + $0x98] sm:$0xff] %v9849_v39   ;;  %v4883_v61 = vadd.f32 %v11953_v38, %v4686_v31  ;;  %v4678_v40 = vadd.f32 %v4677_v16, %v4036_v35  ;;  %v4693_v42 = vpop.f32.mrf.mxu0  ;;  %10880 = vmatprep.mubr.bf16.mxu1 %v11210_v36  ;;  %v4960_v44 = vmax.f32 %v4880_v30, 0.0 }
 0x2de   :  { %v10702_v43 = vpop.f32.mrf.mxu1  ;;  %10881 = vmatmul.mubr.bf16.gmra.mxu1 %v11211_v33 }
 0x2df   :  { %v4963_v45 = vmax.f32 %v4883_v61, 0.0  ;;  %v4881_v46 = vadd.f32 %v11953_v38, %v4678_v40  ;;  %v4699_v6 = vadd.f32 %v10798_v22, %v10702_v43  ;;  %v10802_v47 = vpop.f32.mrf.mxu0 }
 0x2e0   :  { %v4049_v48 = vpop.f32.mrf.mxu1 }
 0x2e1   :  { %v9864_v49 = vpack.c.bf16 %v4963_v45, %v4962_v37  ;;  %v4961_v50 = vmax.f32 %v4881_v46, 0.0  ;;  %v4886_v62 = vadd.f32 %v11953_v38, %v4699_v6  ;;  %v4691_v51 = vadd.f32 %v4690_v28, %v4049_v48  ;;  %v4706_v52 = vpop.f32.mrf.mxu0 }
 0x2e2   :  { %v10703_v53 = vpop.f32.mrf.mxu1  ;;  %v11213_v57 = vld [vmem:[#allocation4 + $0xa0] sm:$0xff]  }
 0x2e3   :  { %10057 = vst [vmem:[#allocation4 + $0xb0] sm:$0xff] %v9864_v49   ;;  %v9859_v54 = vpack.c.bf16 %v4961_v50, %v4960_v44  ;;  %v4884_v55 = vadd.f32 %v11953_v38, %v4691_v51  ;;  %v4702_v56 = vadd.f32 %v10799_v34, %v10703_v53  ;;  %v10803_v59 = vpop.f32.mrf.mxu0  ;;  %v4966_v63 = vmax.f32 %v4886_v62, 0.0 }
 0x2e4   :  { %v4052_v32 = vpop.f32.mrf.mxu1  ;;  %v11212_v60 = vld [vmem:[#allocation4 + $0x98] sm:$0xff]  }
 0x2e5   :  { %10056 = vst [vmem:[#allocation4 + $0xa8] sm:$0xff] %v9859_v54   ;;  %v4887_v0 = vadd.f32 %v11953_v38, %v4702_v56  ;;  %v4694_v1 = vadd.f32 %v4693_v42, %v4052_v32  ;;  %v4709_v2 = vpop.f32.mrf.mxu0  ;;  %10884 = vmatprep.mubr.bf16.mxu1 %v11212_v60  ;;  %v4964_v4 = vmax.f32 %v4884_v55, 0.0 }
 0x2e6   :  { %v10706_v3 = vpop.f32.mrf.mxu1  ;;  %10885 = vmatmul.mubr.bf16.gmra.mxu1 %v11213_v57 }
 0x2e7   :  { %v4967_v5 = vmax.f32 %v4887_v0, 0.0  ;;  %v4885_v7 = vadd.f32 %v11953_v38, %v4694_v1  ;;  %v4715_v58 = vadd.f32 %v10802_v47, %v10706_v3  ;;  %v10806_v8 = vpop.f32.mrf.mxu0 }
 0x2e8   :  { %v4065_v9 = vpop.f32.mrf.mxu1 }
 0x2e9   :  { %v9874_v10 = vpack.c.bf16 %v4967_v5, %v4966_v63  ;;  %v4965_v11 = vmax.f32 %v4885_v7, 0.0  ;;  %v4890_v12 = vadd.f32 %v11953_v38, %v4715_v58  ;;  %v4707_v13 = vadd.f32 %v4706_v52, %v4065_v9  ;;  %v4722_v14 = vpop.f32.mrf.mxu0 }
 0x2ea   :  { %v10707_v15 = vpop.f32.mrf.mxu1  ;;  %v11215_v19 = vld [vmem:[#allocation4 + $0xb0] sm:$0xff]  }
 0x2eb   :  { %10059 = vst [vmem:[#allocation4 + $0xc0] sm:$0xff] %v9874_v10   ;;  %v9869_v16 = vpack.c.bf16 %v4965_v11, %v4964_v4  ;;  %v4888_v17 = vadd.f32 %v11953_v38, %v4707_v13  ;;  %v4718_v18 = vadd.f32 %v10803_v59, %v10707_v15  ;;  %v10807_v20 = vpop.f32.mrf.mxu0  ;;  %v4970_v23 = vmax.f32 %v4890_v12, 0.0 }
 0x2ec   :  { %v4068_v21 = vpop.f32.mrf.mxu1  ;;  %v11214_v22 = vld [vmem:[#allocation4 + $0xa8] sm:$0xff]  }
 0x2ed   :  { %10058 = vst [vmem:[#allocation4 + $0xb8] sm:$0xff] %v9869_v16   ;;  %v4891_v24 = vadd.f32 %v11953_v38, %v4718_v18  ;;  %v4710_v25 = vadd.f32 %v4709_v2, %v4068_v21  ;;  %v4725_v26 = vpop.f32.mrf.mxu0  ;;  %10888 = vmatprep.mubr.bf16.mxu1 %v11214_v22  ;;  %v4968_v28 = vmax.f32 %v4888_v17, 0.0 }
 0x2ee   :  { %v10710_v27 = vpop.f32.mrf.mxu1  ;;  %10889 = vmatmul.mubr.bf16.gmra.mxu1 %v11215_v19 }
 0x2ef   :  { %v4971_v29 = vmax.f32 %v4891_v24, 0.0  ;;  %v4889_v39 = vadd.f32 %v11953_v38, %v4710_v25  ;;  %v4731_v30 = vadd.f32 %v10806_v8, %v10710_v27  ;;  %v10810_v31 = vpop.f32.mrf.mxu0 }
 0x2f0   :  { %v4081_v33 = vpop.f32.mrf.mxu1 }
 0x2f1   :  { %v9884_v34 = vpack.c.bf16 %v4971_v29, %v4970_v23  ;;  %v4969_v35 = vmax.f32 %v4889_v39, 0.0  ;;  %v4894_v36 = vadd.f32 %v11953_v38, %v4731_v30  ;;  %v4723_v37 = vadd.f32 %v4722_v14, %v4081_v33  ;;  %v4738_v61 = vpop.f32.mrf.mxu0 }
 0x2f2   :  { %v10711_v40 = vpop.f32.mrf.mxu1  ;;  %v11217_v45 = vld [vmem:[#allocation4 + $0xc0] sm:$0xff]  }
 0x2f3   :  { %10061 = vst [vmem:[#allocation4 + $0xd0] sm:$0xff] %v9884_v34   ;;  %v9879_v42 = vpack.c.bf16 %v4969_v35, %v4968_v28  ;;  %v4892_v43 = vadd.f32 %v11953_v38, %v4723_v37  ;;  %v4734_v44 = vadd.f32 %v10807_v20, %v10711_v40  ;;  %v10811_v46 = vpop.f32.mrf.mxu0  ;;  %v4974_v48 = vmax.f32 %v4894_v36, 0.0 }
 0x2f4   :  { %v4084_v6 = vpop.f32.mrf.mxu1  ;;  %v11216_v47 = vld [vmem:[#allocation4 + $0xb8] sm:$0xff]  }
 0x2f5   :  { %10060 = vst [vmem:[#allocation4 + $0xc8] sm:$0xff] %v9879_v42   ;;  %v4895_v49 = vadd.f32 %v11953_v38, %v4734_v44  ;;  %v4726_v50 = vadd.f32 %v4725_v26, %v4084_v6  ;;  %v4741_v62 = vpop.f32.mrf.mxu0  ;;  %10892 = vmatprep.mubr.bf16.mxu1 %v11216_v47  ;;  %v4972_v52 = vmax.f32 %v4892_v43, 0.0 }
 0x2f6   :  { %v10714_v51 = vpop.f32.mrf.mxu1  ;;  %10893 = vmatmul.mubr.bf16.gmra.mxu1 %v11217_v45 }
 0x2f7   :  { %v4975_v53 = vmax.f32 %v4895_v49, 0.0  ;;  %v4893_v54 = vadd.f32 %v11953_v38, %v4726_v50  ;;  %v4747_v55 = vadd.f32 %v10810_v31, %v10714_v51  ;;  %v10814_v56 = vpop.f32.mrf.mxu0 }
 0x2f8   :  { %v4097_v57 = vpop.f32.mrf.mxu1 }
 0x2f9   :  { %v9894_v59 = vpack.c.bf16 %v4975_v53, %v4974_v48  ;;  %v4973_v32 = vmax.f32 %v4893_v54, 0.0  ;;  %v4898_v60 = vadd.f32 %v11953_v38, %v4747_v55  ;;  %v4739_v63 = vadd.f32 %v4738_v61, %v4097_v57  ;;  %v4754_v0 = vpop.f32.mrf.mxu0 }
 0x2fa   :  { %v10715_v1 = vpop.f32.mrf.mxu1  ;;  %v11219_v5 = vld [vmem:[#allocation4 + $0xd0] sm:$0xff]  }
 0x2fb   :  { %10063 = vst [vmem:[#allocation4 + $0xe0] sm:$0xff] %v9894_v59   ;;  %v9889_v2 = vpack.c.bf16 %v4973_v32, %v4972_v52  ;;  %v4896_v3 = vadd.f32 %v11953_v38, %v4739_v63  ;;  %v4750_v4 = vadd.f32 %v10811_v46, %v10715_v1  ;;  %v10815_v7 = vpop.f32.mrf.mxu0  ;;  %v4978_v9 = vmax.f32 %v4898_v60, 0.0  ;;  %v12024_v59 = vld [vmem:[%s13769_s6] ss:$0 sm:$0xff]  ;;  %s11381_s6 = smov 112  }
 0x2fc   :  { %v4100_v58 = vpop.f32.mrf.mxu1  ;;  %v11218_v8 = vld [vmem:[#allocation4 + $0xc8] sm:$0xff]  }
 0x2fd   :  { %10062 = vst [vmem:[#allocation4 + $0xd8] sm:$0xff] %v9889_v2   ;;  %v4899_v10 = vadd.f32 %v11953_v38, %v4750_v4  ;;  %v4742_v11 = vadd.f32 %v4741_v62, %v4100_v58  ;;  %v4757_v12 = vpop.f32.mrf.mxu0  ;;  %10896 = vmatprep.mubr.bf16.mxu1 %v11218_v8  ;;  %v4976_v14 = vmax.f32 %v4896_v3, 0.0 }
 0x2fe   :  { %v10718_v13 = vpop.f32.mrf.mxu1  ;;  %10897 = vmatmul.mubr.bf16.gmra.mxu1 %v11219_v5 }
 0x2ff   :  { %v4979_v15 = vmax.f32 %v4899_v10, 0.0  ;;  %v4897_v16 = vadd.f32 %v11953_v38, %v4742_v11  ;;  %v4763_v17 = vadd.f32 %v10814_v56, %v10718_v13  ;;  %v10818_v18 = vpop.f32.mrf.mxu0 }
 0x300   :  { %v4113_v19 = vpop.f32.mrf.mxu1 }
 0x301   :  { %v9904_v20 = vpack.c.bf16 %v4979_v15, %v4978_v9  ;;  %v4977_v21 = vmax.f32 %v4897_v16, 0.0  ;;  %v4902_v22 = vadd.f32 %v11953_v38, %v4763_v17  ;;  %v4755_v23 = vadd.f32 %v4754_v0, %v4113_v19  ;;  %v4770_v24 = vpop.f32.mrf.mxu0 }
 0x302   :  { %v10719_v25 = vpop.f32.mrf.mxu1  ;;  %v11221_v29 = vld [vmem:[#allocation4 + $0xe0] sm:$0xff]  }
 0x303   :  { %10065 = vst [vmem:[#allocation4 + $0xf0] sm:$0xff] %v9904_v20   ;;  %v9899_v26 = vpack.c.bf16 %v4977_v21, %v4976_v14  ;;  %v4900_v27 = vadd.f32 %v11953_v38, %v4755_v23  ;;  %v4766_v28 = vadd.f32 %v10815_v7, %v10719_v25  ;;  %v10819_v39 = vpop.f32.mrf.mxu0  ;;  %v4982_v33 = vmax.f32 %v4902_v22, 0.0 }
 0x304   :  { %v4116_v30 = vpop.f32.mrf.mxu1  ;;  %v11220_v31 = vld [vmem:[#allocation4 + $0xd8] sm:$0xff]  }
 0x305   :  { %10064 = vst [vmem:[#allocation4 + $0xe8] sm:$0xff] %v9899_v26   ;;  %v4903_v34 = vadd.f32 %v11953_v38, %v4766_v28  ;;  %v4758_v35 = vadd.f32 %v4757_v12, %v4116_v30  ;;  %v4773_v36 = vpop.f32.mrf.mxu0  ;;  %10900 = vmatprep.mubr.bf16.mxu1 %v11220_v31  ;;  %v4980_v61 = vmax.f32 %v4900_v27, 0.0 }
 0x306   :  { %v10722_v37 = vpop.f32.mrf.mxu1  ;;  %10901 = vmatmul.mubr.bf16.gmra.mxu1 %v11221_v29 }
 0x307   :  { %v4983_v40 = vmax.f32 %v4903_v34, 0.0  ;;  %v4901_v42 = vadd.f32 %v11953_v38, %v4758_v35  ;;  %v4779_v43 = vadd.f32 %v10818_v18, %v10722_v37  ;;  %v10822_v44 = vpop.f32.mrf.mxu0 }
 0x308   :  { %v4129_v45 = vpop.f32.mrf.mxu1 }
 0x309   :  { %v9914_v46 = vpack.c.bf16 %v4983_v40, %v4982_v33  ;;  %v4981_v6 = vmax.f32 %v4901_v42, 0.0  ;;  %v4906_v47 = vadd.f32 %v11953_v38, %v4779_v43  ;;  %v4771_v48 = vadd.f32 %v4770_v24, %v4129_v45  ;;  %v4786_v49 = vpop.f32.mrf.mxu0 }
 0x30a   :  { %v10723_v50 = vpop.f32.mrf.mxu1  ;;  %v11223_v53 = vld [vmem:[#allocation4 + $0xf0] sm:$0xff]  }
 0x30b   :  { %10067 = vst [vmem:[#allocation4 + $0x100] sm:$0xff] %v9914_v46   ;;  %v9909_v62 = vpack.c.bf16 %v4981_v6, %v4980_v61  ;;  %v4904_v51 = vadd.f32 %v11953_v38, %v4771_v48  ;;  %v4782_v52 = vadd.f32 %v10819_v39, %v10723_v50  ;;  %v10823_v54 = vpop.f32.mrf.mxu0  ;;  %v4986_v57 = vmax.f32 %v4906_v47, 0.0 }
 0x30c   :  { %v4132_v55 = vpop.f32.mrf.mxu1  ;;  %v11222_v56 = vld [vmem:[#allocation4 + $0xe8] sm:$0xff]  }
 0x30d   :  { %10066 = vst [vmem:[#allocation4 + $0xf8] sm:$0xff] %v9909_v62   ;;  %v4907_v32 = vadd.f32 %v12024_v59, %v4782_v52  ;;  %v4774_v60 = vadd.f32 %v4773_v36, %v4132_v55  ;;  %v4789_v63 = vpop.f32.mrf.mxu0  ;;  %10904 = vmatprep.mubr.bf16.mxu1 %v11222_v56  ;;  %v4984_v1 = vmax.f32 %v4904_v51, 0.0 }
 0x30e   :  { %v10726_v0 = vpop.f32.mrf.mxu1  ;;  %10905 = vmatmul.mubr.bf16.gmra.mxu1 %v11223_v53 }
 0x30f   :  { %v4987_v38 = vmax.f32 %v4907_v32, 0.0  ;;  %v4905_v2 = vadd.f32 %v12024_v59, %v4774_v60  ;;  %v4795_v3 = vadd.f32 %v10822_v44, %v10726_v0  ;;  %v10826_v4 = vpop.f32.mrf.mxu0 }
 0x310   :  { %v4145_v5 = vpop.f32.mrf.mxu1 }
 0x311   :  { %v9924_v7 = vpack.c.bf16 %v4987_v38, %v4986_v57  ;;  %v4985_v58 = vmax.f32 %v4905_v2, 0.0  ;;  %v4910_v8 = vadd.f32 %v12024_v59, %v4795_v3  ;;  %v4787_v9 = vadd.f32 %v4786_v49, %v4145_v5  ;;  %v4802_v10 = vpop.f32.mrf.mxu0 }
 0x312   :  { %v10727_v11 = vpop.f32.mrf.mxu1  ;;  %v11225_v15 = vld [vmem:[#allocation4 + $0x100] sm:$0xff]  }
 0x313   :  { %10069 = vst [vmem:[#allocation4 + $0x110] sm:$0xff] %v9924_v7   ;;  %v9919_v12 = vpack.c.bf16 %v4985_v58, %v4984_v1  ;;  %v4908_v13 = vadd.f32 %v12024_v59, %v4787_v9  ;;  %v4798_v14 = vadd.f32 %v10823_v54, %v10727_v11  ;;  %v10827_v16 = vpop.f32.mrf.mxu0  ;;  %v4990_v19 = vmax.f32 %v4910_v8, 0.0 }
 0x314   :  { %v4148_v17 = vpop.f32.mrf.mxu1  ;;  %v11224_v18 = vld [vmem:[#allocation4 + $0xf8] sm:$0xff]  }
 0x315   :  { %10068 = vst [vmem:[#allocation4 + $0x108] sm:$0xff] %v9919_v12   ;;  %v4911_v20 = vadd.f32 %v12024_v59, %v4798_v14  ;;  %v4790_v21 = vadd.f32 %v4789_v63, %v4148_v17  ;;  %v4805_v22 = vpop.f32.mrf.mxu0  ;;  %10908 = vmatprep.mubr.bf16.mxu1 %v11224_v18  ;;  %v4988_v24 = vmax.f32 %v4908_v13, 0.0 }
 0x316   :  { %v10730_v23 = vpop.f32.mrf.mxu1  ;;  %10909 = vmatmul.mubr.bf16.gmra.mxu1 %v11225_v15 }
 0x317   :  { %v4991_v25 = vmax.f32 %v4911_v20, 0.0  ;;  %v4909_v26 = vadd.f32 %v12024_v59, %v4790_v21  ;;  %v4811_v27 = vadd.f32 %v10826_v4, %v10730_v23  ;;  %v10830_v28 = vpop.f32.mrf.mxu0 }
 0x318   :  { %v4161_v29 = vpop.f32.mrf.mxu1 }
 0x319   :  { %v9934_v39 = vpack.c.bf16 %v4991_v25, %v4990_v19  ;;  %v4989_v30 = vmax.f32 %v4909_v26, 0.0  ;;  %v4914_v31 = vadd.f32 %v12024_v59, %v4811_v27  ;;  %v4803_v33 = vadd.f32 %v4802_v10, %v4161_v29  ;;  %v4818_v35 = vpop.f32.mrf.mxu0 }
 0x31a   :  { %v10731_v34 = vpop.f32.mrf.mxu1  ;;  %v11227_v40 = vld [vmem:[#allocation4 + $0x110] sm:$0xff]  }
 0x31b   :  { %10071 = vst [vmem:[#allocation4 + $0x120] sm:$0xff] %v9934_v39   ;;  %v9929_v36 = vpack.c.bf16 %v4989_v30, %v4988_v24  ;;  %v4912_v37 = vadd.f32 %v12024_v59, %v4803_v33  ;;  %v4814_v61 = vadd.f32 %v10827_v16, %v10731_v34  ;;  %v4994_v44 = vmax.f32 %v4914_v31, 0.0  ;;  %v10831_v47 = vpop.f32.mrf.mxu0 }
 0x31c   :  { %v4164_v42 = vpop.f32.mrf.mxu1  ;;  %v11226_v43 = vld [vmem:[#allocation4 + $0x108] sm:$0xff]  }
 0x31d   :  { %10070 = vst [vmem:[#allocation4 + $0x118] sm:$0xff] %v9929_v36   ;;  %v4915_v45 = vadd.f32 %v12024_v59, %v4814_v61  ;;  %v4806_v46 = vadd.f32 %v4805_v22, %v4164_v42  ;;  %10912 = vmatprep.mubr.bf16.mxu1 %v11226_v43  ;;  %v4992_v48 = vmax.f32 %v4912_v37, 0.0  ;;  %v4821_v57 = vpop.f32.mrf.mxu0 }
 0x31e   :  { %v10734_v6 = vpop.f32.mrf.mxu1  ;;  %10913 = vmatmul.mubr.bf16.gmra.mxu1 %v11227_v40 }
 0x31f   :  { %v4995_v49 = vmax.f32 %v4915_v45, 0.0  ;;  %v4913_v50 = vadd.f32 %v12024_v59, %v4806_v46  ;;  %v4827_v62 = vadd.f32 %v10830_v28, %v10734_v6 }
 0x320   :  { %v4177_v51 = vpop.f32.mrf.mxu1 }
 0x321   :  { %v9944_v52 = vpack.c.bf16 %v4995_v49, %v4994_v44  ;;  %v4993_v53 = vmax.f32 %v4913_v50, 0.0  ;;  %v4918_v54 = vadd.f32 %v12024_v59, %v4827_v62  ;;  %v4819_v55 = vadd.f32 %v4818_v35, %v4177_v51 }
 0x322   :  { %v10735_v56 = vpop.f32.mrf.mxu1  ;;  %v11229_v0 = vld [vmem:[#allocation4 + $0x120] sm:$0xff]  }
 0x323   :  { %10073 = vst [vmem:[#allocation4 + $0x130] sm:$0xff] %v9944_v52   ;;  %v9939_v32 = vpack.c.bf16 %v4993_v53, %v4992_v48  ;;  %v4916_v60 = vadd.f32 %v12024_v59, %v4819_v55  ;;  %v4830_v63 = vadd.f32 %v10831_v47, %v10735_v56  ;;  %v4998_v2 = vmax.f32 %v4918_v54, 0.0 }
 0x324   :  { %v4180_v1 = vpop.f32.mrf.mxu1  ;;  %v11228_v38 = vld [vmem:[#allocation4 + $0x118] sm:$0xff]  }
 0x325   :  { %10072 = vst [vmem:[#allocation4 + $0x128] sm:$0xff] %v9939_v32   ;;  %v4919_v3 = vadd.f32 %v12024_v59, %v4830_v63  ;;  %v4822_v4 = vadd.f32 %v4821_v57, %v4180_v1  ;;  %10916 = vmatprep.mubr.bf16.mxu1 %v11228_v38  ;;  %v4996_v5 = vmax.f32 %v4916_v60, 0.0 }
 0x326   :  { %10917 = vmatmul.mubr.bf16.gmra.mxu1 %v11229_v0 }
 0x327   :  { %v4999_v7 = vmax.f32 %v4919_v3, 0.0  ;;  %v4917_v58 = vadd.f32 %v12024_v59, %v4822_v4 }
 0x329   :  { %v9954_v8 = vpack.c.bf16 %v4999_v7, %v4998_v2  ;;  %v4997_v9 = vmax.f32 %v4917_v58, 0.0 }
 0x32a   :  { %v11231_v11 = vld [vmem:[#allocation4 + $0x130] sm:$0xff]  }
 0x32b   :  { %10075 = vst [vmem:[#allocation4 + $0x140] sm:$0xff] %v9954_v8   ;;  %v9949_v10 = vpack.c.bf16 %v4997_v9, %v4996_v5 }
 0x32c   :  { %v11230_v12 = vld [vmem:[#allocation4 + $0x128] sm:$0xff]  }
 0x32d   :  { %10074 = vst [vmem:[#allocation4 + $0x138] sm:$0xff] %v9949_v10   ;;  %10920 = vmatprep.mubr.bf16.mxu1 %v11230_v12 }
 0x32e   :  { %10921 = vmatmul.mubr.bf16.gmra.mxu1 %v11231_v11 }
 0x332   :  { %v11233_v13 = vld [vmem:[#allocation4 + $0x140] sm:$0xff]  }
 0x334   :  { %v11232_v14 = vld [vmem:[#allocation4 + $0x138] sm:$0xff]  }
 0x335   :  { %10924 = vmatprep.mubr.bf16.mxu1 %v11232_v14 }
 0x336   :  { %10925 = vmatmul.mubr.bf16.gmra.mxu1 %v11233_v13 }
 0x35e   :  { %v12040_v15 = vpop.f32.mrf.mxu1 }
 0x35f   :  { %6211 = vrot.lane.b32.xlu0 %v12040_v15, %s11381_s6 }
 0x360   :  { %v12044_v59 = vpop.f32.mrf.mxu1 }
 0x361   :  { %13840 = vst [vmem:[#allocation7_spill] sm:$0xff] %v12044_v59 }
 0x362   :  { %v12046_v16 = vpop.f32.mrf.mxu1 }
 0x363   :  { %6213 = vrot.lane.b32.xlu1 %v12046_v16, %s11381_s6 }
 0x364   :  { %v12050_v17 = vpop.f32.mrf.mxu1 }
 0x365   :  { %13841 = vst [vmem:[#allocation8_spill] sm:$0xff] %v12050_v17 }
 0x366   :  { %v12052_v18 = vpop.f32.mrf.mxu1 }
 0x367   :  { %6219 = vrot.lane.b32.xlu0 %v12052_v18, %s11381_s6 }
 0x368   :  { %v12056_v19 = vpop.f32.mrf.mxu1 }
 0x36a   :  { %v12058_v20 = vpop.f32.mrf.mxu1 }
 0x36b   :  { %6513 = vrot.lane.b32.xlu0 %v12052_v18, %s11382_s20  ;;  %6221 = vrot.lane.b32.xlu1 %v12058_v20, %s11381_s6 }
 0x36c   :  { %v12064_v21 = vpop.f32.mrf.mxu1 }
 0x36e   :  { %v12070_v22 = vpop.f32.mrf.mxu1 }
 0x36f   :  { %6807 = vrot.lane.b32.xlu0 %v12052_v18, %s11383_s21  ;;  %6515 = vrot.lane.b32.xlu1 %v12058_v20, %s11382_s20 }
 0x370   :  { %v12076_v23 = vpop.f32.mrf.mxu1 }
 0x372   :  { %v12082_v24 = vpop.f32.mrf.mxu1 }
 0x373   :  { %6215 = vrot.lane.b32.xlu0 %v12056_v19, %s11381_s6  ;;  %6809 = vrot.lane.b32.xlu1 %v12058_v20, %s11383_s21 }
 0x374   :  { %v12096_v25 = vpop.f32.mrf.mxu1 }
 0x376   :  { %v12102_v26 = vpop.f32.mrf.mxu1 }
 0x377   :  { %6509 = vrot.lane.b32.xlu0 %v12056_v19, %s11382_s20  ;;  %6511 = vrot.lane.b32.xlu1 %v12064_v21, %s11382_s20 }
 0x378   :  { %v12108_v27 = vpop.f32.mrf.mxu1 }
 0x37a   :  { %v12114_v28 = vpop.f32.mrf.mxu1 }
 0x37b   :  { %6217 = vrot.lane.b32.xlu0 %v12064_v21, %s11381_s6  ;;  %6229 = vrot.lane.b32.xlu1 %v12082_v24, %s11381_s6 }
 0x37c   :  { %v12128_v29 = vpop.f32.mrf.mxu1 }
 0x37e   :  { %v12134_v39 = vpop.f32.mrf.mxu1 }
 0x37f   :  { %6227 = vrot.lane.b32.xlu0 %v12070_v22, %s11381_s6  ;;  %6523 = vrot.lane.b32.xlu1 %v12082_v24, %s11382_s20  ;;  %13842 = vst [vmem:[#allocation9_spill] sm:$0xff] %v12134_v39 }
 0x380   :  { %v12140_v30 = vpop.f32.mrf.mxu1 }
 0x381   :  { %13843 = vst [vmem:[#allocation10_spill] sm:$0xff] %v12140_v30 }
 0x382   :  { %v12146_v31 = vpop.f32.mrf.mxu1 }
 0x383   :  { %6521 = vrot.lane.b32.xlu0 %v12070_v22, %s11382_s20  ;;  %6817 = vrot.lane.b32.xlu1 %v12082_v24, %s11383_s21 }
 0x384   :  { %v12160_v33 = vpop.f32.mrf.mxu1 }
 0x385   :  { %13844 = vst [vmem:[#allocation11_spill] sm:$0xff] %v12160_v33 }
 0x386   :  { %v12170_v34 = vpop.f32.mrf.mxu1 }
 0x387   :  { %6815 = vrot.lane.b32.xlu0 %v12070_v22, %s11383_s21  ;;  %6225 = vrot.lane.b32.xlu1 %v12096_v25, %s11381_s6  ;;  %13845 = vst [vmem:[#allocation12_spill] sm:$0xff] %v12170_v34 }
 0x388   :  { %v12176_v35 = vpop.f32.mrf.mxu1 }
 0x389   :  { %13846 = vst [vmem:[#allocation13_spill] sm:$0xff] %v12176_v35 }
 0x38a   :  { %v12182_v36 = vpop.f32.mrf.mxu1 }
 0x38b   :  { %6223 = vrot.lane.b32.xlu0 %v12076_v23, %s11381_s6  ;;  %6519 = vrot.lane.b32.xlu1 %v12096_v25, %s11382_s20  ;;  %13847 = vst [vmem:[#allocation14_spill] sm:$0xff] %v12182_v36 }
 0x38c   :  { %v12196_v37 = vpop.f32.mrf.mxu1 }
 0x38d   :  { %13848 = vst [vmem:[#allocation15_spill] sm:$0xff] %v12196_v37 }
 0x38e   :  { %v12204_v40 = vpop.f32.mrf.mxu1 }
 0x38f   :  { %6517 = vrot.lane.b32.xlu0 %v12076_v23, %s11382_s20  ;;  %6813 = vrot.lane.b32.xlu1 %v12096_v25, %s11383_s21  ;;  %13850 = vst [vmem:[#allocation17_spill] sm:$0xff] %v12204_v40 }
 0x390   :  { %v12214_v44 = vpop.f32.mrf.mxu1 }
 0x391   :  { %13852 = vst [vmem:[#allocation19_spill] sm:$0xff] %v12214_v44 }
 0x392   :  { %v12224_v6 = vpop.f32.mrf.mxu1 }
 0x393   :  { %6811 = vrot.lane.b32.xlu0 %v12076_v23, %s11383_s21  ;;  %6237 = vrot.lane.b32.xlu1 %v12114_v28, %s11381_s6  ;;  %13853 = vst [vmem:[#allocation20_spill] sm:$0xff] %v12224_v6 }
 0x394   :  { %v12250_v52 = vpop.f32.mrf.mxu1 }
 0x395   :  { %13858 = vst [vmem:[#allocation25_spill] sm:$0xff] %v12250_v52 }
 0x396   :  { %v12260_v55 = vpop.f32.mrf.mxu1 }
 0x397   :  { %6235 = vrot.lane.b32.xlu0 %v12102_v26, %s11381_s6  ;;  %6531 = vrot.lane.b32.xlu1 %v12114_v28, %s11382_s20  ;;  %13859 = vst [vmem:[#allocation26_spill] sm:$0xff] %v12260_v55 }
 0x398   :  { %v12270_v32 = vpop.f32.mrf.mxu1 }
 0x399   :  { %13860 = vst [vmem:[#allocation27_spill] sm:$0xff] %v12270_v32 }
 0x39a   :  { %v12280_v0 = vpop.f32.mrf.mxu1 }
 0x39b   :  { %6529 = vrot.lane.b32.xlu0 %v12102_v26, %s11382_s20  ;;  %6825 = vrot.lane.b32.xlu1 %v12114_v28, %s11383_s21  ;;  %13861 = vst [vmem:[#allocation28_spill] sm:$0xff] %v12280_v0 }
 0x39c   :  { %v12306_v7 = vpop.f32.mrf.mxu1 }
 0x39d   :  { %13862 = vst [vmem:[#allocation29_spill] sm:$0xff] %v12306_v7 }
 0x39e   :  { %v12316_v9 = vpop.f32.mrf.mxu1 }
 0x39f   :  { %6823 = vrot.lane.b32.xlu0 %v12102_v26, %s11383_s21  ;;  %6233 = vrot.lane.b32.xlu1 %v12128_v29, %s11381_s6  ;;  %13863 = vst [vmem:[#allocation30_spill] sm:$0xff] %v12316_v9 }
 0x3a0   :  { %v12326_v12 = vpop.f32.mrf.mxu1 }
 0x3a1   :  { %13864 = vst [vmem:[#allocation31_spill] sm:$0xff] %v12326_v12 }
 0x3a2   :  { %v12336_v41 = vpop.f32.mrf.mxu1 }
 0x3a3   :  { %6231 = vrot.lane.b32.xlu0 %v12108_v27, %s11381_s6  ;;  %6527 = vrot.lane.b32.xlu1 %v12128_v29, %s11382_s20  ;;  %13865 = vst [vmem:[#allocation32_spill] sm:$0xff] %v12336_v41 }
 0x3a7   :  { %6525 = vrot.lane.b32.xlu0 %v12108_v27, %s11382_s20  ;;  %6821 = vrot.lane.b32.xlu1 %v12128_v29, %s11383_s21 }
 0x3ab   :  { %6819 = vrot.lane.b32.xlu0 %v12108_v27, %s11383_s21  ;;  %6539 = vrot.lane.b32.xlu1 %v12146_v31, %s11382_s20 }
 0x3af   :  { %6537 = vrot.lane.b32.xlu0 %v12134_v39, %s11382_s20  ;;  %6833 = vrot.lane.b32.xlu1 %v12146_v31, %s11383_s21 }
 0x3b3   :  { %6831 = vrot.lane.b32.xlu0 %v12134_v39, %s11383_s21  ;;  %6245 = vrot.lane.b32.xlu1 %v12146_v31, %s11381_s6 }
 0x3b7   :  { %6243 = vrot.lane.b32.xlu0 %v12134_v39, %s11381_s6  ;;  %6241 = vrot.lane.b32.xlu1 %v12160_v33, %s11381_s6 }
 0x3bb   :  { %6239 = vrot.lane.b32.xlu0 %v12140_v30, %s11381_s6  ;;  %6535 = vrot.lane.b32.xlu1 %v12160_v33, %s11382_s20 }
 0x3bf   :  { %6533 = vrot.lane.b32.xlu0 %v12140_v30, %s11382_s20  ;;  %6829 = vrot.lane.b32.xlu1 %v12160_v33, %s11383_s21 }
 0x3c3   :  { %6827 = vrot.lane.b32.xlu0 %v12140_v30, %s11383_s21  ;;  %6247 = vrot.lane.b32.xlu1 %v12176_v35, %s11381_s6 }
 0x3c7   :  { %6251 = vrot.lane.b32.xlu0 %v12170_v34, %s11381_s6  ;;  %6253 = vrot.lane.b32.xlu1 %v12182_v36, %s11381_s6 }
 0x3cb   :  { %6545 = vrot.lane.b32.xlu0 %v12170_v34, %s11382_s20  ;;  %6547 = vrot.lane.b32.xlu1 %v12182_v36, %s11382_s20 }
 0x3cf   :  { %6839 = vrot.lane.b32.xlu0 %v12170_v34, %s11383_s21  ;;  %6841 = vrot.lane.b32.xlu1 %v12182_v36, %s11383_s21 }
 0x3d1   :  { %v12202_v61 = vpop.permute.xlu0 %6211 }
 0x3d2   :  { %13849 = vst [vmem:[#allocation16_spill] sm:$0xff] %v12202_v61 }
 0x3d3   :  { %6835 = vrot.lane.b32.xlu0 %v12176_v35, %s11383_s21  ;;  %6249 = vrot.lane.b32.xlu1 %v12196_v37, %s11381_s6 }
 0x3d5   :  { %v12210_v42 = vpop.permute.xlu1 %6213 }
 0x3d6   :  { %13851 = vst [vmem:[#allocation18_spill] sm:$0xff] %v12210_v42  ;;  %v12362_v42 = vpop.f32.mrf.mxu1 }
 0x3d7   :  { %6541 = vrot.lane.b32.xlu0 %v12176_v35, %s11382_s20  ;;  %6837 = vrot.lane.b32.xlu1 %v12196_v37, %s11383_s21  ;;  %13866 = vst [vmem:[#allocation33_spill] sm:$0xff] %v12362_v42 }
 0x3d8   :  { %v12372_v59 = vpop.f32.mrf.mxu1 }
 0x3d9   :  { %v12212_v43 = vpop.permute.xlu0 %6219  ;;  %13867 = vst [vmem:[#allocation34_spill] sm:$0xff] %v12372_v59 }
 0x3db   :  { %6543 = vrot.lane.b32.xlu1 %v12196_v37, %s11382_s20  ;;  %6259 = vrot.lane.b32.xlu0 %v12204_v40, %s11381_s6 }
 0x3dd   :  { %v12220_v45 = vpop.permute.xlu0 %6513  ;;  %v12222_v46 = vpop.permute.xlu1 %6221 }
 0x3df   :  { %6553 = vrot.lane.b32.xlu0 %v12204_v40, %s11382_s20  ;;  %6261 = vrot.lane.b32.xlu1 %v12224_v6, %s11381_s6 }
 0x3e1   :  { %v12230_v47 = vpop.permute.xlu0 %6807  ;;  %v12232_v48 = vpop.permute.xlu1 %6515 }
 0x3e2   :  { %13854 = vst [vmem:[#allocation21_spill] sm:$0xff] %v12230_v47 }
 0x3e3   :  { %6847 = vrot.lane.b32.xlu0 %v12204_v40, %s11383_s21  ;;  %6555 = vrot.lane.b32.xlu1 %v12224_v6, %s11382_s20 }
 0x3e5   :  { %v12238_v49 = vpop.permute.xlu0 %6215  ;;  %v12240_v50 = vpop.permute.xlu1 %6809 }
 0x3e6   :  { %13855 = vst [vmem:[#allocation22_spill] sm:$0xff] %v12240_v50 }
 0x3e7   :  { %6255 = vrot.lane.b32.xlu0 %v12214_v44, %s11381_s6  ;;  %6849 = vrot.lane.b32.xlu1 %v12224_v6, %s11383_s21 }
 0x3e9   :  { %v12246_v62 = vpop.permute.xlu0 %6509  ;;  %v12248_v51 = vpop.permute.xlu1 %6511 }
 0x3ea   :  { %13856 = vst [vmem:[#allocation23_spill] sm:$0xff] %v12246_v62  ;;  %13857 = vst [vmem:[#allocation24_spill] sm:$0xff] %v12248_v51 }
 0x3eb   :  { %6549 = vrot.lane.b32.xlu0 %v12214_v44, %s11382_s20  ;;  %6257 = vrot.lane.b32.xlu1 %v12250_v52, %s11381_s6 }
 0x3ed   :  { %v12256_v53 = vpop.permute.xlu0 %6217  ;;  %v12258_v54 = vpop.permute.xlu1 %6229 }
 0x3ef   :  { %6843 = vrot.lane.b32.xlu0 %v12214_v44, %s11383_s21  ;;  %6551 = vrot.lane.b32.xlu1 %v12250_v52, %s11382_s20 }
 0x3f1   :  { %v12266_v56 = vpop.permute.xlu0 %6227  ;;  %v12268_v57 = vpop.permute.xlu1 %6523 }
 0x3f3   :  { %6845 = vrot.lane.b32.xlu1 %v12250_v52, %s11383_s21  ;;  %6267 = vrot.lane.b32.xlu0 %v12260_v55, %s11381_s6 }
 0x3f5   :  { %v12276_v60 = vpop.permute.xlu0 %6521  ;;  %v12278_v63 = vpop.permute.xlu1 %6817 }
 0x3f7   :  { %6561 = vrot.lane.b32.xlu0 %v12260_v55, %s11382_s20  ;;  %6269 = vrot.lane.b32.xlu1 %v12280_v0, %s11381_s6 }
 0x3f9   :  { %v12286_v1 = vpop.permute.xlu0 %6815  ;;  %v12288_v38 = vpop.permute.xlu1 %6225 }
 0x3fb   :  { %6855 = vrot.lane.b32.xlu0 %v12260_v55, %s11383_s21  ;;  %6563 = vrot.lane.b32.xlu1 %v12280_v0, %s11382_s20  ;;  %v12382_v55 = vpop.f32.mrf.mxu1 }
 0x3fc   :  { %13870 = vst [vmem:[#allocation37_spill] sm:$0xff] %v12382_v55 }
 0x3fd   :  { %v12294_v2 = vpop.permute.xlu0 %6223  ;;  %v12296_v3 = vpop.permute.xlu1 %6519 }
 0x3ff   :  { %6263 = vrot.lane.b32.xlu0 %v12270_v32, %s11381_s6  ;;  %6857 = vrot.lane.b32.xlu1 %v12280_v0, %s11383_s21 }
 0x401   :  { %v12302_v4 = vpop.permute.xlu0 %6517  ;;  %v12304_v5 = vpop.permute.xlu1 %6813 }
 0x403   :  { %6557 = vrot.lane.b32.xlu0 %v12270_v32, %s11382_s20  ;;  %6265 = vrot.lane.b32.xlu1 %v12306_v7, %s11381_s6 }
 0x405   :  { %v12312_v58 = vpop.permute.xlu0 %6811  ;;  %v12314_v8 = vpop.permute.xlu1 %6237 }
 0x407   :  { %6851 = vrot.lane.b32.xlu0 %v12270_v32, %s11383_s21  ;;  %6559 = vrot.lane.b32.xlu1 %v12306_v7, %s11382_s20 }
 0x409   :  { %v12322_v10 = vpop.permute.xlu0 %6235  ;;  %v12324_v11 = vpop.permute.xlu1 %6531 }
 0x40b   :  { %6853 = vrot.lane.b32.xlu1 %v12306_v7, %s11383_s21  ;;  %6569 = vrot.lane.b32.xlu0 %v12316_v9, %s11382_s20 }
 0x40d   :  { %v12332_v13 = vpop.permute.xlu0 %6529  ;;  %v12334_v14 = vpop.permute.xlu1 %6825 }
 0x40f   :  { %6863 = vrot.lane.b32.xlu0 %v12316_v9, %s11383_s21  ;;  %6571 = vrot.lane.b32.xlu1 %v12336_v41, %s11382_s20 }
 0x411   :  { %v12342_v30 = vpop.permute.xlu0 %6823  ;;  %v12344_v50 = vpop.permute.xlu1 %6233 }
 0x413   :  { %6275 = vrot.lane.b32.xlu0 %v12316_v9, %s11381_s6  ;;  %6865 = vrot.lane.b32.xlu1 %v12336_v41, %s11383_s21 }
 0x415   :  { %v12350_v47 = vpop.permute.xlu0 %6231  ;;  %v12352_v33 = vpop.permute.xlu1 %6527 }
 0x417   :  { %6271 = vrot.lane.b32.xlu0 %v12326_v12, %s11381_s6  ;;  %6277 = vrot.lane.b32.xlu1 %v12336_v41, %s11381_s6 }
 0x419   :  { %v12358_v51 = vpop.permute.xlu0 %6525  ;;  %v12360_v62 = vpop.permute.xlu1 %6821 }
 0x41b   :  { %6565 = vrot.lane.b32.xlu0 %v12326_v12, %s11382_s20  ;;  %6273 = vrot.lane.b32.xlu1 %v12362_v42, %s11381_s6 }
 0x41d   :  { %v12368_v17 = vpop.permute.xlu0 %6819  ;;  %v12370_v61 = vpop.permute.xlu1 %6539 }
 0x41f   :  { %6859 = vrot.lane.b32.xlu0 %v12326_v12, %s11383_s21  ;;  %6567 = vrot.lane.b32.xlu1 %v12362_v42, %s11382_s20  ;;  %v12392_v12 = vpop.f32.mrf.mxu1 }
 0x420   :  { %13872 = vst [vmem:[#allocation39_spill] sm:$0xff] %v12392_v12 }
 0x421   :  { %v12378_v9 = vpop.permute.xlu0 %6537  ;;  %v12380_v41 = vpop.permute.xlu1 %6833 }
 0x422   :  { %13868 = vst [vmem:[#allocation35_spill] sm:$0xff] %v12378_v9  ;;  %13869 = vst [vmem:[#allocation36_spill] sm:$0xff] %v12380_v41  ;;  %v12418_v52 = vpop.f32.mrf.mxu1 }
 0x423   :  { %6861 = vrot.lane.b32.xlu1 %v12362_v42, %s11383_s21  ;;  %6283 = vrot.lane.b32.xlu0 %v12372_v59, %s11381_s6  ;;  %13875 = vst [vmem:[#allocation42_spill] sm:$0xff] %v12418_v52 }
 0x424   :  { %v12428_v36 = vpop.f32.mrf.mxu1 }
 0x425   :  { %v12388_v0 = vpop.permute.xlu0 %6831  ;;  %v12390_v6 = vpop.permute.xlu1 %6245  ;;  %13878 = vst [vmem:[#allocation45_spill] sm:$0xff] %v12428_v36 }
 0x426   :  { %13871 = vst [vmem:[#allocation38_spill] sm:$0xff] %v12390_v6  ;;  %v12438_v35 = vpop.f32.mrf.mxu1 }
 0x427   :  { %6577 = vrot.lane.b32.xlu0 %v12372_v59, %s11382_s20  ;;  %6285 = vrot.lane.b32.xlu1 %v12392_v12, %s11381_s6  ;;  %13881 = vst [vmem:[#allocation48_spill] sm:$0xff] %v12438_v35 }
 0x429   :  { %v12398_v7 = vpop.permute.xlu0 %6243  ;;  %v12400_v40 = vpop.permute.xlu1 %6241 }
 0x42a   :  { %13873 = vst [vmem:[#allocation40_spill] sm:$0xff] %v12398_v7 }
 0x42b   :  { %6871 = vrot.lane.b32.xlu0 %v12372_v59, %s11383_s21  ;;  %6579 = vrot.lane.b32.xlu1 %v12392_v12, %s11382_s20 }
 0x42d   :  { %v12406_v42 = vpop.permute.xlu0 %6239  ;;  %v12408_v6 = vpop.permute.xlu1 %6535 }
 0x42f   :  { %6867 = vrot.lane.b32.xlu0 %v12382_v55, %s11383_s21  ;;  %6873 = vrot.lane.b32.xlu1 %v12392_v12, %s11383_s21 }
 0x431   :  { %v12414_v32 = vpop.permute.xlu0 %6533  ;;  %v12416_v7 = vpop.permute.xlu1 %6829 }
 0x432   :  { %13874 = vst [vmem:[#allocation41_spill] sm:$0xff] %v12416_v7 }
 0x433   :  { %6279 = vrot.lane.b32.xlu0 %v12382_v55, %s11381_s6  ;;  %6869 = vrot.lane.b32.xlu1 %v12418_v52, %s11383_s21 }
 0x435   :  { %v12424_v59 = vpop.permute.xlu0 %6827  ;;  %v12426_v44 = vpop.permute.xlu1 %6247 }
 0x436   :  { %13876 = vst [vmem:[#allocation43_spill] sm:$0xff] %v12424_v59  ;;  %13877 = vst [vmem:[#allocation44_spill] sm:$0xff] %v12426_v44 }
 0x437   :  { %6573 = vrot.lane.b32.xlu0 %v12382_v55, %s11382_s20  ;;  %6281 = vrot.lane.b32.xlu1 %v12418_v52, %s11381_s6  ;;  %v12448_v55 = vpop.f32.mrf.mxu1 }
 0x438   :  { %13884 = vst [vmem:[#allocation51_spill] sm:$0xff] %v12448_v55 }
 0x439   :  { %v12434_v12 = vpop.permute.xlu0 %6251  ;;  %v12436_v34 = vpop.permute.xlu1 %6253 }
 0x43a   :  { %13879 = vst [vmem:[#allocation46_spill] sm:$0xff] %v12434_v12  ;;  %13880 = vst [vmem:[#allocation47_spill] sm:$0xff] %v12436_v34 }
 0x43b   :  { %6575 = vrot.lane.b32.xlu1 %v12418_v52, %s11382_s20  ;;  %6291 = vrot.lane.b32.xlu0 %v12428_v36, %s11381_s6 }
 0x43d   :  { %v12444_v37 = vpop.permute.xlu0 %6545  ;;  %v12446_v39 = vpop.permute.xlu1 %6547 }
 0x43e   :  { %13882 = vst [vmem:[#allocation49_spill] sm:$0xff] %v12444_v37  ;;  %13883 = vst [vmem:[#allocation50_spill] sm:$0xff] %v12446_v39 }
 0x43f   :  { %6585 = vrot.lane.b32.xlu0 %v12428_v36, %s11382_s20  ;;  %6293 = vrot.lane.b32.xlu1 %v12448_v55, %s11381_s6 }
 0x441   :  { %v12454_v12 = vpop.permute.xlu0 %6839  ;;  %v12456_v34 = vpop.permute.xlu1 %6841 }
 0x442   :  { %13885 = vst [vmem:[#allocation52_spill] sm:$0xff] %v12454_v12  ;;  %13886 = vst [vmem:[#allocation53_spill] sm:$0xff] %v12456_v34  ;;  %v12474_v34 = vpop.f32.mrf.mxu1 }
 0x443   :  { %6879 = vrot.lane.b32.xlu0 %v12428_v36, %s11383_s21  ;;  %6587 = vrot.lane.b32.xlu1 %v12448_v55, %s11382_s20  ;;  %13890 = vst [vmem:[#allocation57_spill] sm:$0xff] %v12474_v34 }
 0x444   :  { %v12484_v44 = vpop.f32.mrf.mxu1 }
 0x445   :  { %v12462_v52 = vpop.permute.xlu0 %6835  ;;  %v12464_v37 = vpop.permute.xlu1 %6249  ;;  %13893 = vst [vmem:[#allocation60_spill] sm:$0xff] %v12484_v44 }
 0x446   :  { %13887 = vst [vmem:[#allocation54_spill] sm:$0xff] %v12462_v52 }
 0x447   :  { %6287 = vrot.lane.b32.xlu0 %v12438_v35, %s11381_s6  ;;  %6881 = vrot.lane.b32.xlu1 %v12448_v55, %s11383_s21 }
 0x449   :  { %v12470_v39 = vpop.permute.xlu0 %6541  ;;  %v12472_v12 = vpop.permute.xlu1 %6837 }
 0x44a   :  { %13888 = vst [vmem:[#allocation55_spill] sm:$0xff] %v12470_v39  ;;  %13889 = vst [vmem:[#allocation56_spill] sm:$0xff] %v12472_v12  ;;  %v12494_v12 = vpop.f32.mrf.mxu1 }
 0x44b   :  { %6581 = vrot.lane.b32.xlu0 %v12438_v35, %s11382_s20  ;;  %6289 = vrot.lane.b32.xlu1 %v12474_v34, %s11381_s6  ;;  %13896 = vst [vmem:[#allocation63_spill] sm:$0xff] %v12494_v12 }
 0x44d   :  { %v12480_v36 = vpop.permute.xlu1 %6543  ;;  %v12482_v52 = vpop.permute.xlu0 %6259 }
 0x44e   :  { %13891 = vst [vmem:[#allocation58_spill] sm:$0xff] %v12480_v36  ;;  %13892 = vst [vmem:[#allocation59_spill] sm:$0xff] %v12482_v52 }
 0x44f   :  { %6875 = vrot.lane.b32.xlu0 %v12438_v35, %s11383_s21  ;;  %6583 = vrot.lane.b32.xlu1 %v12474_v34, %s11382_s20  ;;  %v12504_v35 = vpop.f32.mrf.mxu1 }
 0x450   :  { %13899 = vst [vmem:[#allocation66_spill] sm:$0xff] %v12504_v35 }
 0x451   :  { %v12490_v39 = vpop.permute.xlu0 %6553  ;;  %v12492_v55 = vpop.permute.xlu1 %6261 }
 0x452   :  { %13894 = vst [vmem:[#allocation61_spill] sm:$0xff] %v12490_v39  ;;  %13895 = vst [vmem:[#allocation62_spill] sm:$0xff] %v12492_v55 }
 0x453   :  { %6877 = vrot.lane.b32.xlu1 %v12474_v34, %s11383_s21  ;;  %6299 = vrot.lane.b32.xlu0 %v12484_v44, %s11381_s6 }
 0x455   :  { %v12500_v36 = vpop.permute.xlu0 %6847  ;;  %v12502_v52 = vpop.permute.xlu1 %6555 }
 0x456   :  { %13897 = vst [vmem:[#allocation64_spill] sm:$0xff] %v12500_v36  ;;  %13898 = vst [vmem:[#allocation65_spill] sm:$0xff] %v12502_v52 }
 0x457   :  { %6593 = vrot.lane.b32.xlu0 %v12484_v44, %s11382_s20  ;;  %6301 = vrot.lane.b32.xlu1 %v12504_v35, %s11381_s6 }
 0x459   :  { %v12510_v39 = vpop.permute.xlu0 %6255  ;;  %v12512_v55 = vpop.permute.xlu1 %6849 }
 0x45a   :  { %13900 = vst [vmem:[#allocation67_spill] sm:$0xff] %v12510_v39  ;;  %13901 = vst [vmem:[#allocation68_spill] sm:$0xff] %v12512_v55  ;;  %v12530_v55 = vpop.f32.mrf.mxu1 }
 0x45b   :  { %6887 = vrot.lane.b32.xlu0 %v12484_v44, %s11383_s21  ;;  %6595 = vrot.lane.b32.xlu1 %v12504_v35, %s11382_s20  ;;  %13906 = vst [vmem:[#allocation73_spill] sm:$0xff] %v12530_v55 }
 0x45d   :  { %v12518_v34 = vpop.permute.xlu0 %6549  ;;  %v12520_v52 = vpop.permute.xlu1 %6257 }
 0x45e   :  { %13902 = vst [vmem:[#allocation69_spill] sm:$0xff] %v12518_v34  ;;  %13903 = vst [vmem:[#allocation70_spill] sm:$0xff] %v12520_v52  ;;  %v12540_v34 = vpop.f32.mrf.mxu1 }
 0x45f   :  { %6295 = vrot.lane.b32.xlu0 %v12494_v12, %s11381_s6  ;;  %6889 = vrot.lane.b32.xlu1 %v12504_v35, %s11383_s21  ;;  %13909 = vst [vmem:[#allocation76_spill] sm:$0xff] %v12540_v34 }
 0x461   :  { %v12526_v36 = vpop.permute.xlu0 %6843  ;;  %v12528_v39 = vpop.permute.xlu1 %6551 }
 0x462   :  { %13904 = vst [vmem:[#allocation71_spill] sm:$0xff] %v12526_v36  ;;  %13905 = vst [vmem:[#allocation72_spill] sm:$0xff] %v12528_v39  ;;  %v12550_v39 = vpop.f32.mrf.mxu1 }
 0x463   :  { %6589 = vrot.lane.b32.xlu0 %v12494_v12, %s11382_s20  ;;  %6297 = vrot.lane.b32.xlu1 %v12530_v55, %s11381_s6  ;;  %13912 = vst [vmem:[#allocation79_spill] sm:$0xff] %v12550_v39 }
 0x465   :  { %v12536_v44 = vpop.permute.xlu1 %6845  ;;  %v12538_v52 = vpop.permute.xlu0 %6267 }
 0x466   :  { %13907 = vst [vmem:[#allocation74_spill] sm:$0xff] %v12536_v44  ;;  %13908 = vst [vmem:[#allocation75_spill] sm:$0xff] %v12538_v52 }
 0x467   :  { %6883 = vrot.lane.b32.xlu0 %v12494_v12, %s11383_s21  ;;  %6591 = vrot.lane.b32.xlu1 %v12530_v55, %s11382_s20  ;;  %v12560_v12 = vpop.f32.mrf.mxu1 }
 0x468   :  { %13915 = vst [vmem:[#allocation82_spill] sm:$0xff] %v12560_v12 }
 0x469   :  { %v12546_v35 = vpop.permute.xlu0 %6561  ;;  %v12548_v36 = vpop.permute.xlu1 %6269 }
 0x46a   :  { %13910 = vst [vmem:[#allocation77_spill] sm:$0xff] %v12546_v35  ;;  %13911 = vst [vmem:[#allocation78_spill] sm:$0xff] %v12548_v36 }
 0x46b   :  { %6885 = vrot.lane.b32.xlu1 %v12530_v55, %s11383_s21  ;;  %6601 = vrot.lane.b32.xlu0 %v12540_v34, %s11382_s20 }
 0x46d   :  { %v12556_v52 = vpop.permute.xlu0 %6855  ;;  %v12558_v44 = vpop.permute.xlu1 %6563 }
 0x46e   :  { %13913 = vst [vmem:[#allocation80_spill] sm:$0xff] %v12556_v52  ;;  %13914 = vst [vmem:[#allocation81_spill] sm:$0xff] %v12558_v44 }
 0x46f   :  { %6895 = vrot.lane.b32.xlu0 %v12540_v34, %s11383_s21  ;;  %6603 = vrot.lane.b32.xlu1 %v12560_v12, %s11382_s20 }
 0x471   :  { %v12566_v35 = vpop.permute.xlu0 %6263  ;;  %v12568_v36 = vpop.permute.xlu1 %6857 }
 0x472   :  { %13916 = vst [vmem:[#allocation83_spill] sm:$0xff] %v12566_v35  ;;  %13917 = vst [vmem:[#allocation84_spill] sm:$0xff] %v12568_v36  ;;  %v12586_v36 = vpop.f32.mrf.mxu1 }
 0x473   :  { %6307 = vrot.lane.b32.xlu0 %v12540_v34, %s11381_s6  ;;  %6897 = vrot.lane.b32.xlu1 %v12560_v12, %s11383_s21  ;;  %13922 = vst [vmem:[#allocation89_spill] sm:$0xff] %v12586_v36 }
 0x475   :  { %v12574_v55 = vpop.permute.xlu0 %6557  ;;  %v12576_v44 = vpop.permute.xlu1 %6265 }
 0x476   :  { %13918 = vst [vmem:[#allocation85_spill] sm:$0xff] %v12574_v55  ;;  %13919 = vst [vmem:[#allocation86_spill] sm:$0xff] %v12576_v44  ;;  %v12596_v55 = vpop.f32.mrf.mxu1 }
 0x477   :  { %6303 = vrot.lane.b32.xlu0 %v12550_v39, %s11381_s6  ;;  %6309 = vrot.lane.b32.xlu1 %v12560_v12, %s11381_s6  ;;  %13925 = vst [vmem:[#allocation92_spill] sm:$0xff] %v12596_v55 }
 0x479   :  { %v12582_v52 = vpop.permute.xlu0 %6851  ;;  %v12584_v35 = vpop.permute.xlu1 %6559 }
 0x47a   :  { %13920 = vst [vmem:[#allocation87_spill] sm:$0xff] %v12582_v52  ;;  %13921 = vst [vmem:[#allocation88_spill] sm:$0xff] %v12584_v35  ;;  %v12606_v52 = vpop.f32.mrf.mxu1 }
 0x47b   :  { %6597 = vrot.lane.b32.xlu0 %v12550_v39, %s11382_s20  ;;  %6305 = vrot.lane.b32.xlu1 %v12586_v36, %s11381_s6  ;;  %13928 = vst [vmem:[#allocation95_spill] sm:$0xff] %v12606_v52 }
 0x47d   :  { %v12592_v34 = vpop.permute.xlu1 %6853  ;;  %v12594_v44 = vpop.permute.xlu0 %6569 }
 0x47e   :  { %13923 = vst [vmem:[#allocation90_spill] sm:$0xff] %v12592_v34  ;;  %13924 = vst [vmem:[#allocation91_spill] sm:$0xff] %v12594_v44 }
 0x47f   :  { %6891 = vrot.lane.b32.xlu0 %v12550_v39, %s11383_s21  ;;  %6599 = vrot.lane.b32.xlu1 %v12586_v36, %s11382_s20  ;;  %v12616_v39 = vpop.f32.mrf.mxu1 }
 0x481   :  { %v12602_v12 = vpop.permute.xlu0 %6863  ;;  %v12604_v35 = vpop.permute.xlu1 %6571 }
 0x482   :  { %13926 = vst [vmem:[#allocation93_spill] sm:$0xff] %v12602_v12  ;;  %13927 = vst [vmem:[#allocation94_spill] sm:$0xff] %v12604_v35 }
 0x483   :  { %6893 = vrot.lane.b32.xlu1 %v12586_v36, %s11383_s21  ;;  %6315 = vrot.lane.b32.xlu0 %v12596_v55, %s11381_s6 }
 0x485   :  { %v12612_v44 = vpop.permute.xlu0 %6275  ;;  %v12614_v34 = vpop.permute.xlu1 %6865 }
 0x486   :  { %13929 = vst [vmem:[#allocation96_spill] sm:$0xff] %v12612_v44  ;;  %13930 = vst [vmem:[#allocation97_spill] sm:$0xff] %v12614_v34  ;;  %v12634_v34 = vpop.f32.mrf.mxu1 }
 0x487   :  { %6609 = vrot.lane.b32.xlu0 %v12596_v55, %s11382_s20  ;;  %6317 = vrot.lane.b32.xlu1 %v12616_v39, %s11381_s6  ;;  %13935 = vst [vmem:[#allocation102_spill] sm:$0xff] %v12634_v34 }
 0x488   :  { %v12644_v55 = vpop.f32.mrf.mxu1 }
 0x489   :  { %v12622_v12 = vpop.permute.xlu0 %6271  ;;  %v12624_v35 = vpop.permute.xlu1 %6277  ;;  %13938 = vst [vmem:[#allocation105_spill] sm:$0xff] %v12644_v55 }
 0x48a   :  { %13931 = vst [vmem:[#allocation98_spill] sm:$0xff] %v12622_v12  ;;  %13932 = vst [vmem:[#allocation99_spill] sm:$0xff] %v12624_v35  ;;  %v12654_v59 = vpop.f32.mrf.mxu1 }
 0x48b   :  { %6311 = vrot.lane.b32.xlu0 %v12606_v52, %s11381_s6  ;;  %6611 = vrot.lane.b32.xlu1 %v12616_v39, %s11382_s20  ;;  %13941 = vst [vmem:[#allocation108_spill] sm:$0xff] %v12654_v59 }
 0x48d   :  { %v12630_v36 = vpop.permute.xlu0 %6565  ;;  %v12632_v44 = vpop.permute.xlu1 %6273 }
 0x48e   :  { %13933 = vst [vmem:[#allocation100_spill] sm:$0xff] %v12630_v36  ;;  %13934 = vst [vmem:[#allocation101_spill] sm:$0xff] %v12632_v44 }
 0x48f   :  { %6899 = vrot.lane.b32.xlu0 %v12606_v52, %s11383_s21  ;;  %6313 = vrot.lane.b32.xlu1 %v12634_v34, %s11381_s6 }
 0x491   :  { %v12640_v12 = vpop.permute.xlu0 %6859  ;;  %v12642_v35 = vpop.permute.xlu1 %6567 }
 0x492   :  { %13936 = vst [vmem:[#allocation103_spill] sm:$0xff] %v12640_v12  ;;  %13937 = vst [vmem:[#allocation104_spill] sm:$0xff] %v12642_v35 }
 0x493   :  { %6605 = vrot.lane.b32.xlu0 %v12606_v52, %s11382_s20  ;;  %6901 = vrot.lane.b32.xlu1 %v12634_v34, %s11383_s21  ;;  %v12664_v52 = vpop.f32.mrf.mxu1 }
 0x494   :  { %13944 = vst [vmem:[#allocation111_spill] sm:$0xff] %v12664_v52 }
 0x495   :  { %v12650_v36 = vpop.permute.xlu1 %6861  ;;  %v12652_v44 = vpop.permute.xlu0 %6283 }
 0x496   :  { %13939 = vst [vmem:[#allocation106_spill] sm:$0xff] %v12650_v36  ;;  %13940 = vst [vmem:[#allocation107_spill] sm:$0xff] %v12652_v44 }
 0x497   :  { %6607 = vrot.lane.b32.xlu1 %v12634_v34, %s11382_s20  ;;  %6323 = vrot.lane.b32.xlu0 %v12644_v55, %s11381_s6 }
 0x499   :  { %v12660_v12 = vpop.permute.xlu0 %6577  ;;  %v12662_v35 = vpop.permute.xlu1 %6285 }
 0x49a   :  { %13942 = vst [vmem:[#allocation109_spill] sm:$0xff] %v12660_v12  ;;  %13943 = vst [vmem:[#allocation110_spill] sm:$0xff] %v12662_v35 }
 0x49b   :  { %6617 = vrot.lane.b32.xlu0 %v12644_v55, %s11382_s20  ;;  %6325 = vrot.lane.b32.xlu1 %v12664_v52, %s11381_s6 }
 0x49d   :  { %v12670_v44 = vpop.permute.xlu0 %6871  ;;  %v12672_v36 = vpop.permute.xlu1 %6579 }
 0x49e   :  { %13945 = vst [vmem:[#allocation112_spill] sm:$0xff] %v12670_v44  ;;  %13946 = vst [vmem:[#allocation113_spill] sm:$0xff] %v12672_v36  ;;  %v12690_v36 = vpop.f32.mrf.mxu1 }
 0x49f   :  { %6911 = vrot.lane.b32.xlu0 %v12644_v55, %s11383_s21  ;;  %6619 = vrot.lane.b32.xlu1 %v12664_v52, %s11382_s20  ;;  %13951 = vst [vmem:[#allocation118_spill] sm:$0xff] %v12690_v36 }
 0x4a1   :  { %v12678_v34 = vpop.permute.xlu0 %6867  ;;  %v12680_v12 = vpop.permute.xlu1 %6873 }
 0x4a2   :  { %13947 = vst [vmem:[#allocation114_spill] sm:$0xff] %v12678_v34  ;;  %13948 = vst [vmem:[#allocation115_spill] sm:$0xff] %v12680_v12  ;;  %v12700_v34 = vpop.f32.mrf.mxu1 }
 0x4a3   :  { %6319 = vrot.lane.b32.xlu0 %v12654_v59, %s11381_s6  ;;  %6913 = vrot.lane.b32.xlu1 %v12664_v52, %s11383_s21  ;;  %13954 = vst [vmem:[#allocation121_spill] sm:$0xff] %v12700_v34 }
 0x4a5   :  { %v12686_v35 = vpop.permute.xlu0 %6279  ;;  %v12688_v44 = vpop.permute.xlu1 %6869 }
 0x4a6   :  { %13949 = vst [vmem:[#allocation116_spill] sm:$0xff] %v12686_v35  ;;  %13950 = vst [vmem:[#allocation117_spill] sm:$0xff] %v12688_v44  ;;  %v12710_v44 = vpop.f32.mrf.mxu1 }
 0x4a7   :  { %6613 = vrot.lane.b32.xlu0 %v12654_v59, %s11382_s20  ;;  %6321 = vrot.lane.b32.xlu1 %v12690_v36, %s11381_s6  ;;  %13957 = vst [vmem:[#allocation124_spill] sm:$0xff] %v12710_v44 }
 0x4a9   :  { %v12696_v55 = vpop.permute.xlu0 %6573  ;;  %v12698_v12 = vpop.permute.xlu1 %6281 }
 0x4aa   :  { %13952 = vst [vmem:[#allocation119_spill] sm:$0xff] %v12696_v55  ;;  %13953 = vst [vmem:[#allocation120_spill] sm:$0xff] %v12698_v12 }
 0x4ab   :  { %6907 = vrot.lane.b32.xlu0 %v12654_v59, %s11383_s21  ;;  %6615 = vrot.lane.b32.xlu1 %v12690_v36, %s11382_s20  ;;  %v12720_v59 = vpop.f32.mrf.mxu1 }
 0x4ac   :  { %13960 = vst [vmem:[#allocation127_spill] sm:$0xff] %v12720_v59 }
 0x4ad   :  { %v12706_v52 = vpop.permute.xlu1 %6575  ;;  %v12708_v35 = vpop.permute.xlu0 %6291 }
 0x4ae   :  { %13955 = vst [vmem:[#allocation122_spill] sm:$0xff] %v12706_v52  ;;  %13956 = vst [vmem:[#allocation123_spill] sm:$0xff] %v12708_v35 }
 0x4af   :  { %6909 = vrot.lane.b32.xlu1 %v12690_v36, %s11383_s21  ;;  %6331 = vrot.lane.b32.xlu0 %v12700_v34, %s11381_s6 }
 0x4b1   :  { %v12716_v55 = vpop.permute.xlu0 %6585  ;;  %v12718_v12 = vpop.permute.xlu1 %6293 }
 0x4b2   :  { %13958 = vst [vmem:[#allocation125_spill] sm:$0xff] %v12716_v55  ;;  %13959 = vst [vmem:[#allocation126_spill] sm:$0xff] %v12718_v12 }
 0x4b3   :  { %6625 = vrot.lane.b32.xlu0 %v12700_v34, %s11382_s20  ;;  %6333 = vrot.lane.b32.xlu1 %v12720_v59, %s11381_s6 }
 0x4b5   :  { %v12726_v52 = vpop.permute.xlu0 %6879  ;;  %v12728_v35 = vpop.permute.xlu1 %6587 }
 0x4b6   :  { %13961 = vst [vmem:[#allocation128_spill] sm:$0xff] %v12726_v52  ;;  %13962 = vst [vmem:[#allocation129_spill] sm:$0xff] %v12728_v35  ;;  %v12746_v35 = vpop.f32.mrf.mxu1 }
 0x4b7   :  { %6919 = vrot.lane.b32.xlu0 %v12700_v34, %s11383_s21  ;;  %6627 = vrot.lane.b32.xlu1 %v12720_v59, %s11382_s20  ;;  %13967 = vst [vmem:[#allocation134_spill] sm:$0xff] %v12746_v35 }
 0x4b9   :  { %v12734_v36 = vpop.permute.xlu0 %6287  ;;  %v12736_v55 = vpop.permute.xlu1 %6881 }
 0x4ba   :  { %13963 = vst [vmem:[#allocation130_spill] sm:$0xff] %v12734_v36  ;;  %13964 = vst [vmem:[#allocation131_spill] sm:$0xff] %v12736_v55  ;;  %v12756_v55 = vpop.f32.mrf.mxu1 }
 0x4bb   :  { %6327 = vrot.lane.b32.xlu0 %v12710_v44, %s11381_s6  ;;  %6921 = vrot.lane.b32.xlu1 %v12720_v59, %s11383_s21  ;;  %13970 = vst [vmem:[#allocation137_spill] sm:$0xff] %v12756_v55 }
 0x4bd   :  { %v12742_v12 = vpop.permute.xlu0 %6581  ;;  %v12744_v52 = vpop.permute.xlu1 %6289 }
 0x4be   :  { %13965 = vst [vmem:[#allocation132_spill] sm:$0xff] %v12742_v12  ;;  %13966 = vst [vmem:[#allocation133_spill] sm:$0xff] %v12744_v52  ;;  %v12766_v12 = vpop.f32.mrf.mxu1 }
 0x4bf   :  { %6621 = vrot.lane.b32.xlu0 %v12710_v44, %s11382_s20  ;;  %6329 = vrot.lane.b32.xlu1 %v12746_v35, %s11381_s6  ;;  %13973 = vst [vmem:[#allocation140_spill] sm:$0xff] %v12766_v12 }
 0x4c1   :  { %v12752_v34 = vpop.permute.xlu0 %6875  ;;  %v12754_v36 = vpop.permute.xlu1 %6583 }
 0x4c2   :  { %13968 = vst [vmem:[#allocation135_spill] sm:$0xff] %v12752_v34  ;;  %13969 = vst [vmem:[#allocation136_spill] sm:$0xff] %v12754_v36 }
 0x4c3   :  { %6915 = vrot.lane.b32.xlu0 %v12710_v44, %s11383_s21  ;;  %6623 = vrot.lane.b32.xlu1 %v12746_v35, %s11382_s20  ;;  %v12776_v44 = vpop.f32.mrf.mxu1 }
 0x4c4   :  { %13976 = vst [vmem:[#allocation143_spill] sm:$0xff] %v12776_v44 }
 0x4c5   :  { %v12762_v59 = vpop.permute.xlu1 %6877  ;;  %v12764_v52 = vpop.permute.xlu0 %6299 }
 0x4c6   :  { %13971 = vst [vmem:[#allocation138_spill] sm:$0xff] %v12762_v59  ;;  %13972 = vst [vmem:[#allocation139_spill] sm:$0xff] %v12764_v52 }
 0x4c7   :  { %6917 = vrot.lane.b32.xlu1 %v12746_v35, %s11383_s21  ;;  %6633 = vrot.lane.b32.xlu0 %v12756_v55, %s11382_s20 }
 0x4c9   :  { %v12772_v34 = vpop.permute.xlu0 %6593  ;;  %v12774_v36 = vpop.permute.xlu1 %6301 }
 0x4ca   :  { %13974 = vst [vmem:[#allocation141_spill] sm:$0xff] %v12772_v34  ;;  %13975 = vst [vmem:[#allocation142_spill] sm:$0xff] %v12774_v36  ;;  %v12794_v36 = vpop.f32.mrf.mxu1 }
 0x4cb   :  { %6927 = vrot.lane.b32.xlu0 %v12756_v55, %s11383_s21  ;;  %6635 = vrot.lane.b32.xlu1 %v12776_v44, %s11382_s20  ;;  %13981 = vst [vmem:[#allocation148_spill] sm:$0xff] %v12794_v36 }
 0x4cc   :  { %v12804_v55 = vpop.f32.mrf.mxu1 }
 0x4cd   :  { %v12782_v52 = vpop.permute.xlu0 %6887  ;;  %v12784_v59 = vpop.permute.xlu1 %6595  ;;  %13984 = vst [vmem:[#allocation151_spill] sm:$0xff] %v12804_v55 }
 0x4ce   :  { %13977 = vst [vmem:[#allocation144_spill] sm:$0xff] %v12782_v52  ;;  %13978 = vst [vmem:[#allocation145_spill] sm:$0xff] %v12784_v59 }
 0x4cf   :  { %6335 = vrot.lane.b32.xlu0 %v12766_v12, %s11381_s6  ;;  %6929 = vrot.lane.b32.xlu1 %v12776_v44, %s11383_s21 }
 0x4d1   :  { %v12790_v35 = vpop.permute.xlu0 %6295  ;;  %v12792_v34 = vpop.permute.xlu1 %6889 }
 0x4d2   :  { %13979 = vst [vmem:[#allocation146_spill] sm:$0xff] %v12790_v35  ;;  %13980 = vst [vmem:[#allocation147_spill] sm:$0xff] %v12792_v34  ;;  %v11234_v34 = vld [vmem:[%s13770_s9 + $0x70] ss:$8 sps:$4 sm:$0xff]   ;;  %v11236_v35 = vld [vmem:[%s13770_s9 + $0x74] ss:$8 sps:$4 sm:$0xff]  }
 0x4d3   :  { %6629 = vrot.lane.b32.xlu0 %v12766_v12, %s11382_s20  ;;  %6337 = vrot.lane.b32.xlu1 %v12794_v36, %s11381_s6 }
 0x4d4   :  { %8037 = vmatprep.subr.bf16.mxu0 %v11236_v35 }
 0x4d5   :  { %v12800_v52 = vpop.permute.xlu0 %6589  ;;  %v12802_v59 = vpop.permute.xlu1 %6297  ;;  %8038 = vmatpush1.bf16.msra.mxu0 %v11234_v34  ;;  %v6435_v34 = vadd.f32 %v12040_v15, %v12238_v49 }
 0x4d6   :  { %13982 = vst [vmem:[#allocation149_spill] sm:$0xff] %v12800_v52  ;;  %13983 = vst [vmem:[#allocation150_spill] sm:$0xff] %v12802_v59  ;;  %v12820_v59 = vpop.f32.mrf.mxu1 }
 0x4d7   :  { %6923 = vrot.lane.b32.xlu0 %v12766_v12, %s11383_s21  ;;  %6631 = vrot.lane.b32.xlu1 %v12794_v36, %s11382_s20  ;;  %13987 = vst [vmem:[#allocation154_spill] sm:$0xff] %v12820_v59 }
 0x4d8   :  { %v12830_v41 = vpop.f32.mrf.mxu1 }
 0x4d9   :  { %v12816_v9 = vpop.permute.xlu0 %6883  ;;  %v12818_v52 = vpop.permute.xlu1 %6591  ;;  %13990 = vst [vmem:[#allocation157_spill] sm:$0xff] %v12830_v41 }
 0x4da   :  { %13985 = vst [vmem:[#allocation152_spill] sm:$0xff] %v12816_v9  ;;  %13986 = vst [vmem:[#allocation153_spill] sm:$0xff] %v12818_v52  ;;  %v6436_v52 = vadd.f32 %v12046_v16, %v12256_v53 }
 0x4db   :  { %6925 = vrot.lane.b32.xlu1 %v12794_v36, %s11383_s21  ;;  %6347 = vrot.lane.b32.xlu0 %v12804_v55, %s11381_s6  ;;  %v12840_v36 = vpop.f32.mrf.mxu1 }
 0x4dc   :  { %13993 = vst [vmem:[#allocation160_spill] sm:$0xff] %v12840_v36 }
 0x4dd   :  { %v12826_v12 = vpop.permute.xlu1 %6885  ;;  %v12828_v7 = vpop.permute.xlu0 %6601 }
 0x4de   :  { %13988 = vst [vmem:[#allocation155_spill] sm:$0xff] %v12826_v12  ;;  %13989 = vst [vmem:[#allocation156_spill] sm:$0xff] %v12828_v7  ;;  %v11237_v12 = vld [vmem:[%s13770_s9 + $0x60] ss:$8 sps:$4 sm:$0xff]   ;;  %v10922_v49 = vpop.f32.mrf.mxu1 }
 0x4df   :  { %6641 = vrot.lane.b32.xlu0 %v12804_v55, %s11382_s20  ;;  %6349 = vrot.lane.b32.xlu1 %v12830_v41, %s11381_s6  ;;  %v6734_v55 = vadd.f32 %v12232_v48, %v6436_v52  ;;  %v11242_v48 = vld [vmem:[%s13770_s9 + $0x54] ss:$8 sps:$4 sm:$0xff]  }
 0x4e1   :  { %v12836_v35 = vpop.permute.xlu0 %6895  ;;  %v12838_v9 = vpop.permute.xlu1 %6603  ;;  %v7032_v52 = vadd.f32 %v12304_v5, %v6734_v55 }
 0x4e2   :  { %13991 = vst [vmem:[#allocation158_spill] sm:$0xff] %v12836_v35  ;;  %13992 = vst [vmem:[#allocation159_spill] sm:$0xff] %v12838_v9  ;;  %v11239_v35 = vld [vmem:[%s13770_s9 + $0x64] ss:$8 sps:$4 sm:$0xff]   ;;  %v6733_v9 = vadd.f32 %v12220_v45, %v6435_v34  ;;  %v12876_v45 = vpop.f32.mrf.mxu1  ;;  %v11240_v34 = vld [vmem:[%s13770_s9 + $0x50] ss:$8 sps:$4 sm:$0xff]  }
 0x4e3   :  { %6343 = vrot.lane.b32.xlu0 %v12820_v59, %s11381_s6  ;;  %6643 = vrot.lane.b32.xlu1 %v12830_v41, %s11382_s20  ;;  %13998 = vst [vmem:[#allocation165_spill] sm:$0xff] %v12876_v45 }
 0x4e4   :  { %8039 = vmatprep.subr.bf16.mxu0 %v11239_v35  ;;  %v7031_v41 = vadd.f32 %v12312_v58, %v6733_v9  ;;  %v12874_v35 = vld [vmem:[%s13771_s8] ss:$0 sm:$0xff] }
 0x4e5   :  { %v12856_v7 = vpop.permute.xlu0 %6307  ;;  %v12858_v15 = vpop.permute.xlu1 %6897  ;;  %8040 = vmatpush1.bf16.msra.mxu0 %v11237_v12 }
 0x4e6   :  { %13994 = vst [vmem:[#allocation161_spill] sm:$0xff] %v12856_v7  ;;  %13995 = vst [vmem:[#allocation162_spill] sm:$0xff] %v12858_v15  ;;  %8041 = vmatprep.subr.bf16.mxu0 %v11242_v48  ;;  %v7112_v58 = vadd.f32 %v12874_v35, %v7031_v41  ;;  %v7113_v7 = vadd.f32 %v12874_v35, %v7032_v52  ;;  %v6437_v41 = vadd.f32 %v12212_v43, %v12056_v19 }
 0x4e7   :  { %6931 = vrot.lane.b32.xlu0 %v12820_v59, %s11383_s21  ;;  %6345 = vrot.lane.b32.xlu1 %v12840_v36, %s11381_s6 }
 0x4e8   :  { %v7186_v55 = vmax.f32 %v7112_v58, 0.0  ;;  %v7187_v48 = vmax.f32 %v7113_v7, 0.0  ;;  %v6735_v52 = vadd.f32 %v12302_v4, %v6437_v41  ;;  %v6439_v4 = vadd.f32 %v12052_v18, %v12294_v2  ;;  %v11252_v41 = vld [vmem:[%s13770_s9 + $0x30] ss:$8 sps:$4 sm:$0xff]  }
 0x4e9   :  { %v12867_v16 = vpop.permute.xlu0 %6303  ;;  %v12869_v53 = vpop.permute.xlu1 %6309  ;;  %8042 = vmatpush1.bf16.msra.mxu0 %v11240_v34  ;;  %v6438_v34 = vadd.f32 %v12222_v46, %v12064_v21  ;;  %v11243_v46 = vld [vmem:[%s13770_s9 + $0x170] ss:$8 sps:$4 sm:$0xff]   ;;  %v6440_v18 = vadd.f32 %v12058_v20, %v12288_v38  ;;  %v11249_v20 = vld [vmem:[%s13770_s9 + $0x160] ss:$8 sps:$4 sm:$0xff]   ;;  %v11251_v38 = vld [vmem:[%s13770_s9 + $0x164] ss:$8 sps:$4 sm:$0xff]  }
 0x4ea   :  { %13996 = vst [vmem:[#allocation163_spill] sm:$0xff] %v12867_v16  ;;  %13997 = vst [vmem:[#allocation164_spill] sm:$0xff] %v12869_v53  ;;  %v10923_v53 = vpop.f32.mrf.mxu1  ;;  %v7033_v19 = vadd.f32 %v12286_v1, %v6735_v52  ;;  %v11246_v1 = vld [vmem:[%s13770_s9 + $0x40] ss:$8 sps:$4 sm:$0xff]  }
 0x4eb   :  { %6933 = vrot.lane.b32.xlu1 %v12840_v36, %s11383_s21  ;;  %6355 = vrot.lane.b32.xlu0 %v10922_v49, %s11381_s6 }
 0x4ec   :  { %v12919_v21 = vpop.f32.mrf.mxu1 }
 0x4ed   :  { %v12889_v9 = vpop.permute.xlu0 %6597  ;;  %v12891_v12 = vpop.permute.xlu1 %6305  ;;  %14001 = vst [vmem:[#allocation168_spill] sm:$0xff] %v12919_v21 }
 0x4ee   :  { %13999 = vst [vmem:[#allocation166_spill] sm:$0xff] %v12889_v9  ;;  %v7259_v9 = vpack.c.bf16 %v7187_v48, %v7186_v55 }
 0x4ef   :  { %6649 = vrot.lane.b32.xlu0 %v10922_v49, %s11382_s20  ;;  %6357 = vrot.lane.b32.xlu1 %v10923_v53, %s11381_s6 }
 0x4f1   :  { %v12896_v5 = vpop.permute.xlu0 %6891  ;;  %v12898_v15 = vpop.permute.xlu1 %6599 }
 0x4f2   :  { %14000 = vst [vmem:[#allocation167_spill] sm:$0xff] %v12896_v5  ;;  %v6736_v5 = vadd.f32 %v12296_v3, %v6438_v34  ;;  %v11245_v3 = vld [vmem:[%s13770_s9 + $0x174] ss:$8 sps:$4 sm:$0xff]   ;;  %v6738_v34 = vadd.f32 %v12268_v57, %v6440_v18 }
 0x4f3   :  { %6943 = vrot.lane.b32.xlu0 %v10922_v49, %s11383_s21  ;;  %6651 = vrot.lane.b32.xlu1 %v10923_v53, %s11382_s20 }
 0x4f4   :  { %v7034_v49 = vadd.f32 %v12278_v63, %v6736_v5  ;;  %8080 = vmatprep.subr.bf16.mxu1 %v11245_v3  ;;  %v7114_v63 = vadd.f32 %v12874_v35, %v7033_v19  ;;  %v6737_v5 = vadd.f32 %v12276_v60, %v6439_v4  ;;  %v11254_v60 = vld [vmem:[%s13770_s9 + $0x34] ss:$8 sps:$4 sm:$0xff]   ;;  %v6441_v3 = vadd.f32 %v12266_v56, %v12076_v23 }
 0x4f5   :  { %v12907_v16 = vpop.permute.xlu1 %6893  ;;  %v12909_v58 = vpop.permute.xlu0 %6315  ;;  %8081 = vmatpush1.bf16.msra.mxu1 %v11243_v46 }
 0x4f6   :  { %v7115_v55 = vadd.f32 %v12874_v35, %v7034_v49  ;;  %v7188_v48 = vmax.f32 %v7114_v63, 0.0  ;;  %v7035_v52 = vadd.f32 %v12368_v17, %v6737_v5  ;;  %8082 = vmatprep.subr.bf16.mxu1 %v11251_v38  ;;  %v7036_v49 = vadd.f32 %v12360_v62, %v6738_v34  ;;  %v10926_v38 = vpop.f32.mrf.mxu1  ;;  %v14007_v34 = vld [vmem:[#allocation35_spill] sm:$0xff] }
 0x4f7   :  { %7296 = vrot.lane.b32.xlu0 %v7259_v9, %s11384_s5  ;;  %6945 = vrot.lane.b32.xlu1 %v10923_v53, %s11383_s21  ;;  %v11248_v53 = vld [vmem:[%s13770_s9 + $0x44] ss:$8 sps:$4 sm:$0xff]   ;;  %v6445_v17 = vadd.f32 %v12322_v10, %v12108_v27  ;;  %v6739_v57 = vadd.f32 %v12358_v51, %v6441_v3  ;;  %v6442_v62 = vadd.f32 %v12258_v54, %v12096_v25 }
 0x4f8   :  { %8043 = vmatprep.subr.bf16.mxu0 %v11248_v53  ;;  %v7189_v4 = vmax.f32 %v7115_v55, 0.0  ;;  %v7117_v63 = vadd.f32 %v12874_v35, %v7036_v49  ;;  %v6446_v27 = vadd.f32 %v12314_v8, %v12128_v29  ;;  %v6444_v51 = vadd.f32 %v12082_v24, %v12344_v50  ;;  %v14010_v49 = vld [vmem:[#allocation9_spill] sm:$0xff] }
 0x4f9   :  { %v12915_v43 = vpop.permute.xlu0 %6609  ;;  %v12917_v7 = vpop.permute.xlu1 %6317  ;;  %8044 = vmatpush1.bf16.msra.mxu0 %v11246_v1  ;;  %8083 = vmatpush1.bf16.msra.mxu1 %v11249_v20  ;;  %v7116_v1 = vadd.f32 %v12874_v35, %v7035_v52  ;;  %v6743_v18 = vadd.f32 %v12414_v32, %v6445_v17  ;;  %v6740_v10 = vadd.f32 %v12352_v33, %v6442_v62  ;;  %v11258_v62 = vld [vmem:[%s13770_s9 + $0x20] ss:$8 sps:$4 sm:$0xff]  }
 0x4fa   :  { %8045 = vmatprep.subr.bf16.mxu0 %v11254_v60  ;;  %v7260_v56 = vpack.c.bf16 %v7189_v4, %v7188_v48  ;;  %v6443_v25 = vadd.f32 %v12070_v22, %v12350_v47  ;;  %v7037_v54 = vadd.f32 %v12342_v30, %v6739_v57  ;;  %v6448_v55 = vadd.f32 %v12114_v28, %v12400_v40  ;;  %v11257_v40 = vld [vmem:[%s13770_s9 + $0x154] ss:$8 sps:$4 sm:$0xff]   ;;  %v14006_v60 = vld [vmem:[#allocation41_spill] sm:$0xff]  ;;  %v14009_v4 = vld [vmem:[#allocation44_spill] sm:$0xff] }
 0x4fb   :  { %6351 = vrot.lane.b32.xlu0 %v12876_v45, %s11381_s6  ;;  %6353 = vrot.lane.b32.xlu1 %v12919_v21, %s11381_s6  ;;  %v7190_v32 = vmax.f32 %v7116_v1, 0.0  ;;  %v6447_v29 = vadd.f32 %v12102_v26, %v12406_v42  ;;  %v6744_v24 = vadd.f32 %v12408_v6, %v6446_v27  ;;  %v7041_v33 = vadd.f32 %v12388_v0, %v6743_v18  ;;  %v11255_v26 = vld [vmem:[%s13770_s9 + $0x150] ss:$8 sps:$4 sm:$0xff]   ;;  %v14014_v27 = vld [vmem:[#allocation56_spill] sm:$0xff] }
 0x4fc   :  { %v7191_v50 = vmax.f32 %v7117_v63, 0.0  ;;  %v7038_v22 = vadd.f32 %v12334_v14, %v6740_v10  ;;  %v6742_v28 = vadd.f32 %v12324_v11, %v6444_v51  ;;  %v6452_v30 = vadd.f32 %v12146_v31, %v12464_v37  ;;  %v6122_v31 = vpop.f32.mrf.mxu1  ;;  %v14005_v37 = vld [vmem:[#allocation36_spill] sm:$0xff]  ;;  %8084 = vmatprep.subr.bf16.mxu1 %v11257_v40  ;;  %v14011_v57 = vld [vmem:[#allocation15_spill] sm:$0xff]  ;;  %v14013_v18 = vld [vmem:[#allocation54_spill] sm:$0xff] }
 0x4fd   :  { %v12943_v2 = vpop.permute.xlu0 %6311  ;;  %v12945_v9 = vpop.permute.xlu1 %6611  ;;  %8046 = vmatpush1.bf16.msra.mxu0 %v11252_v41  ;;  %v13025_v42 = vadd.f32 %v12874_v35, %v7037_v54  ;;  %v6741_v47 = vadd.f32 %v12332_v13, %v6443_v25  ;;  %v6746_v0 = vadd.f32 %v12370_v61, %v6448_v55  ;;  %v7042_v14 = vadd.f32 %v14005_v37, %v6744_v24  ;;  %v11260_v13 = vld [vmem:[%s13770_s9 + $0x24] ss:$8 sps:$4 sm:$0xff]   ;;  %v14008_v61 = vld [vmem:[#allocation43_spill] sm:$0xff]  ;;  %v14015_v10 = vld [vmem:[#allocation50_spill] sm:$0xff] }
 0x4fe   :  { %v7261_v6 = vpack.c.bf16 %v7191_v50, %v7190_v32  ;;  %v13035_v41 = vadd.f32 %v12874_v35, %v7041_v33  ;;  %v7040_v48 = vadd.f32 %v14006_v60, %v6742_v28  ;;  %v6745_v52 = vadd.f32 %v14007_v34, %v6447_v29  ;;  %v14012_v1 = vld [vmem:[#allocation47_spill] sm:$0xff]  ;;  %8047 = vmatprep.subr.bf16.mxu0 %v11260_v13  ;;  %v14016_v32 = vld [vmem:[#allocation49_spill] sm:$0xff]  ;;  %v10927_v24 = vpop.f32.mrf.mxu1  ;;  %v14017_v28 = vld [vmem:[#allocation72_spill] sm:$0xff] }
 0x4ff   :  { %6645 = vrot.lane.b32.xlu0 %v12876_v45, %s11382_s20  ;;  %6647 = vrot.lane.b32.xlu1 %v12919_v21, %s11382_s20  ;;  %v7039_v3 = vadd.f32 %v14008_v61, %v6741_v47  ;;  %v6451_v17 = vadd.f32 %v14010_v49, %v14009_v4  ;;  %v7044_v51 = vadd.f32 %v14014_v27, %v6746_v0  ;;  %v14019_v0 = vld [vmem:[#allocation13_spill] sm:$0xff]  ;;  %v14020_v37 = vld [vmem:[#allocation46_spill] sm:$0xff]  ;;  %v14023_v4 = vld [vmem:[#allocation12_spill] sm:$0xff] }
 0x500   :  { %v7043_v63 = vadd.f32 %v14013_v18, %v6745_v52  ;;  %v6750_v25 = vadd.f32 %v14015_v10, %v6452_v30  ;;  %8085 = vmatpush1.bf16.msra.mxu1 %v11255_v26  ;;  %v7119_v54 = vadd.f32 %v12874_v35, %v7038_v22  ;;  %v7123_v33 = vadd.f32 %v12874_v35, %v7042_v14  ;;  %v14018_v30 = vld [vmem:[#allocation74_spill] sm:$0xff]  ;;  %v14021_v14 = vld [vmem:[#allocation71_spill] sm:$0xff] }
 0x501   :  { %v12967_v19 = vpop.permute.xlu0 %6899  ;;  %v12969_v46 = vpop.permute.xlu1 %6313  ;;  %v6749_v55 = vadd.f32 %v14016_v32, %v6451_v17  ;;  %8048 = vmatpush1.bf16.msra.mxu0 %v11258_v62  ;;  %v13064_v50 = vadd.f32 %v12874_v35, %v7040_v48  ;;  %v11266_v22 = vld [vmem:[%s13770_s9 + $0x14] ss:$8 sps:$4 sm:$0xff]   ;;  %v7192_v26 = vmax.f32 %v13025_v42, 0.0  ;;  %v13073_v47 = vadd.f32 %v12874_v35, %v7039_v3  ;;  %v11264_v48 = vld [vmem:[%s13770_s9 + $0x10] ss:$8 sps:$4 sm:$0xff]  }
 0x502   :  { %v6453_v60 = vadd.f32 %v14020_v37, %v14019_v0  ;;  %v7196_v52 = vmax.f32 %v13035_v41, 0.0  ;;  %v7124_v42 = vadd.f32 %v12874_v35, %v7043_v63  ;;  %v7125_v13 = vadd.f32 %v12874_v35, %v7044_v51  ;;  %8049 = vmatprep.subr.bf16.mxu0 %v11266_v22  ;;  %v14022_v3 = vld [vmem:[#allocation67_spill] sm:$0xff]  ;;  %v14024_v17 = vld [vmem:[#allocation69_spill] sm:$0xff]  ;;  %v6125_v41 = vpop.f32.mrf.mxu1  ;;  %v14027_v63 = vld [vmem:[#allocation68_spill] sm:$0xff] }
 0x503   :  { %6939 = vrot.lane.b32.xlu0 %v12876_v45, %s11383_s21  ;;  %6941 = vrot.lane.b32.xlu1 %v12919_v21, %s11383_s21  ;;  %v7047_v34 = vadd.f32 %v14021_v14, %v6749_v55  ;;  %v7193_v61 = vmax.f32 %v7119_v54, 0.0  ;;  %v6455_v49 = vadd.f32 %v14023_v4, %v14022_v3  ;;  %v7197_v10 = vmax.f32 %v7123_v33, 0.0  ;;  %v11269_v54 = vld [vmem:[%s13770_s9 + $0x4] ss:$8 sps:$4 sm:$0xff]   ;;  %v11261_v33 = vld [vmem:[%s13770_s9 + $0x140] ss:$8 sps:$4 sm:$0xff]  }
 0x504   :  { %v7195_v32 = vmax.f32 %v13064_v50, 0.0  ;;  %v7194_v55 = vmax.f32 %v13073_v47, 0.0  ;;  %v7199_v50 = vmax.f32 %v7125_v13, 0.0  ;;  %v14029_v22 = vld [vmem:[#allocation59_spill] sm:$0xff]  ;;  %v14031_v37 = vld [vmem:[#allocation62_spill] sm:$0xff]  ;;  %v14032_v14 = vld [vmem:[#allocation64_spill] sm:$0xff] }
 0x505   :  { %v12982_v53 = vpop.permute.xlu0 %6605  ;;  %v12984_v23 = vpop.permute.xlu1 %6901  ;;  %8050 = vmatpush1.bf16.msra.mxu0 %v11264_v48  ;;  %v13115_v0 = vpack.c.bf16 %v7197_v10, %v7196_v52  ;;  %v14033_v48 = vld [vmem:[#allocation61_spill] sm:$0xff] }
 0x506   :  { %14002 = vst [vmem:[#allocation169_spill] sm:$0xff] %v12982_v53  ;;  %8051 = vmatprep.subr.bf16.mxu0 %v11269_v54  ;;  %v14034_v3 = vld [vmem:[#allocation65_spill] sm:$0xff] }
 0x507   :  { %7299 = vrot.lane.b32.xlu0 %v7260_v56, %s11385_s30  ;;  %6905 = vrot.lane.b32.xlu1 %v12616_v39, %s11383_s21  ;;  %v6454_v56 = vadd.f32 %v14012_v1, %v14011_v57  ;;  %v6751_v57 = vadd.f32 %v14024_v17, %v6453_v60  ;;  %v14025_v1 = vld [vmem:[#allocation70_spill] sm:$0xff]  ;;  %v14038_v54 = vld [vmem:[#allocation17_spill] sm:$0xff] }
 0x509   :  { %v13003_v5 = vpop.permute.xlu1 %6607  ;;  %v13005_v20 = vpop.permute.xlu0 %6323  ;;  %v6752_v40 = vadd.f32 %v14017_v28, %v6454_v56  ;;  %v14026_v56 = vld [vmem:[#allocation14_spill] sm:$0xff]  ;;  %v13105_v28 = vpack.c.bf16 %v7193_v61, %v7192_v26  ;;  %v14030_v26 = vld [vmem:[#allocation25_spill] sm:$0xff]  ;;  %v6753_v61 = vadd.f32 %v14033_v48, %v6455_v49  ;;  %v14044_v48 = vld [vmem:[#allocation92_spill] sm:$0xff] }
 0x50a   :  { %14003 = vst [vmem:[#allocation170_spill] sm:$0xff] %v13003_v5  ;;  %v6456_v62 = vadd.f32 %v14026_v56, %v14025_v1  ;;  %v6458_v60 = vadd.f32 %v14031_v37, %v14030_v26  ;;  %v14035_v1 = vld [vmem:[#allocation27_spill] sm:$0xff]  ;;  %v14041_v26 = vld [vmem:[#allocation85_spill] sm:$0xff]  ;;  %v14042_v37 = vld [vmem:[#allocation86_spill] sm:$0xff] }
 0x50b   :  { %6341 = vrot.lane.b32.xlu1 %v12776_v44, %s11381_s6  ;;  %6951 = vrot.lane.b32.xlu0 %v10926_v38, %s11383_s21  ;;  %v14036_v56 = vld [vmem:[#allocation75_spill] sm:$0xff] }
 0x50c   :  { %v6461_v10 = vadd.f32 %v14036_v56, %v14035_v1  ;;  %v11272_v49 = vld [vmem:[%s13770_s9 + $0xf4] ss:$8 sps:$4 sm:$0xff]  }
 0x50d   :  { %v13029_v8 = vpop.permute.xlu0 %6617  ;;  %v13031_v11 = vpop.permute.xlu1 %6325  ;;  %v14047_v56 = vld [vmem:[#allocation90_spill] sm:$0xff]  ;;  %v14069_v44 = vld [vmem:[#allocation91_spill] sm:$0xff] }
 0x50e   :  { %14004 = vst [vmem:[#allocation171_spill] sm:$0xff] %v13029_v8 }
 0x50f   :  { %6639 = vrot.lane.b32.xlu1 %v12840_v36, %s11382_s20  ;;  %7302 = vrot.lane.b32.xlu0 %v7261_v6, %s11386_s19  ;;  %v7048_v6 = vadd.f32 %v14018_v30, %v6750_v25  ;;  %v7050_v25 = vadd.f32 %v14027_v63, %v6752_v40  ;;  %v11263_v40 = vld [vmem:[%s13770_s9 + $0x144] ss:$8 sps:$4 sm:$0xff]   ;;  %v7198_v30 = vmax.f32 %v7124_v42, 0.0  ;;  %v6754_v42 = vadd.f32 %v14034_v3, %v6456_v62  ;;  %v14037_v63 = vld [vmem:[#allocation83_spill] sm:$0xff] }
 0x510   :  { %8086 = vmatprep.subr.bf16.mxu1 %v11263_v40  ;;  %v14039_v62 = vld [vmem:[#allocation29_spill] sm:$0xff] }
 0x511   :  { %v13058_v38 = vpop.permute.xlu0 %6911  ;;  %v13060_v29 = vpop.permute.xlu1 %6619  ;;  %v7129_v51 = vadd.f32 %v12874_v35, %v7048_v6  ;;  %v14028_v6 = vld [vmem:[#allocation19_spill] sm:$0xff]  ;;  %v13130_v52 = vadd.f32 %v12874_v35, %v7050_v25  ;;  %8087 = vmatpush1.bf16.msra.mxu1 %v11261_v33  ;;  %v14070_v36 = vld [vmem:[#allocation117_spill] sm:$0xff] }
 0x512   :  { %v6457_v47 = vadd.f32 %v14029_v22, %v14028_v6  ;;  %v6459_v6 = vadd.f32 %v14038_v54, %v14037_v63  ;;  %v14040_v22 = vld [vmem:[#allocation78_spill] sm:$0xff]  ;;  %v7052_v63 = vadd.f32 %v14047_v56, %v6754_v42  ;;  %v14048_v54 = vld [vmem:[#allocation101_spill] sm:$0xff] }
 0x513   :  { %6653 = vrot.lane.b32.xlu0 %v6122_v31, %s11382_s20  ;;  %6953 = vrot.lane.b32.xlu1 %v10927_v24, %s11383_s21  ;;  %v7128_v24 = vadd.f32 %v12874_v35, %v7047_v34  ;;  %v7049_v34 = vadd.f32 %v14032_v14, %v6751_v57  ;;  %v7203_v17 = vmax.f32 %v7129_v51, 0.0  ;;  %v6462_v40 = vadd.f32 %v14040_v22, %v14039_v62  ;;  %v14043_v51 = vld [vmem:[#allocation20_spill] sm:$0xff]  ;;  %v11270_v33 = vld [vmem:[%s13770_s9 + $0xf0] ss:$8 sps:$4 sm:$0xff]  }
 0x514   :  { %v6755_v25 = vadd.f32 %v14041_v26, %v6457_v47  ;;  %v6460_v14 = vadd.f32 %v14043_v51, %v14042_v37  ;;  %v14049_v47 = vld [vmem:[#allocation28_spill] sm:$0xff]  ;;  %v13155_v22 = vpack.c.bf16 %v7195_v32, %v7194_v55  ;;  %v13157_v26 = vpack.c.bf16 %v7199_v50, %v7198_v30 }
 0x515   :  { %v13091_v18 = vpop.permute.xlu0 %6319  ;;  %v13093_v27 = vpop.permute.xlu1 %6913  ;;  %v7202_v57 = vmax.f32 %v7128_v24, 0.0  ;;  %v14046_v24 = vld [vmem:[#allocation88_spill] sm:$0xff]  ;;  %v6464_v62 = vadd.f32 %v14049_v47, %v14048_v54  ;;  %v14054_v54 = vld [vmem:[#allocation77_spill] sm:$0xff]  ;;  %v7205_v55 = vmax.f32 %v13130_v52, 0.0  ;;  %v14057_v47 = vld [vmem:[#allocation42_spill] sm:$0xff] }
 0x516   :  { %v6756_v1 = vadd.f32 %v14046_v24, %v6458_v60  ;;  %v14050_v37 = vld [vmem:[#allocation104_spill] sm:$0xff]  ;;  %v14051_v60 = vld [vmem:[#allocation98_spill] sm:$0xff] }
 0x517   :  { %6947 = vrot.lane.b32.xlu0 %v6122_v31, %s11383_s21  ;;  %6655 = vrot.lane.b32.xlu1 %v6125_v41, %s11382_s20  ;;  %v11267_v31 = vld [vmem:[%s13770_s9] ss:$8 sps:$4 sm:$0xff]   ;;  %v6760_v51 = vadd.f32 %v14050_v37, %v6462_v40  ;;  %v11278_v32 = vld [vmem:[%s13770_s9 + $0xe4] ss:$8 sps:$4 sm:$0xff]  }
 0x518   :  { %8052 = vmatpush1.bf16.msra.mxu0 %v11267_v31  ;;  %v14045_v31 = vld [vmem:[#allocation87_spill] sm:$0xff]  ;;  %v14053_v24 = vld [vmem:[#allocation100_spill] sm:$0xff]  ;;  %v14059_v37 = vld [vmem:[#allocation137_spill] sm:$0xff] }
 0x519   :  { %v13125_v13 = vpop.permute.xlu0 %6613  ;;  %v13127_v4 = vpop.permute.xlu1 %6321  ;;  %v7051_v3 = vadd.f32 %v14045_v31, %v6753_v61  ;;  %8053 = vmatprep.subr.bf16.mxu0 %v11272_v49  ;;  %v7267_v61 = vpack.c.bf16 %v7203_v17, %v7202_v57  ;;  %v14052_v31 = vld [vmem:[#allocation26_spill] sm:$0xff]  ;;  %v6759_v56 = vadd.f32 %v14053_v24, %v6461_v10  ;;  %v6757_v49 = vadd.f32 %v14054_v54, %v6459_v6  ;;  %v14055_v30 = vld [vmem:[#allocation80_spill] sm:$0xff]  ;;  %v14060_v10 = vld [vmem:[#allocation157_spill] sm:$0xff] }
 0x51a   :  { %v6463_v42 = vadd.f32 %v14052_v31, %v14051_v60  ;;  %v7053_v50 = vadd.f32 %v14055_v30, %v6755_v25  ;;  %v14058_v17 = vld [vmem:[#allocation110_spill] sm:$0xff]  ;;  %v11276_v6 = vld [vmem:[%s13770_s9 + $0xe0] ss:$8 sps:$4 sm:$0xff]   ;;  %v7133_v25 = vadd.f32 %v12874_v35, %v7052_v63 }
 0x51b   :  { %6903 = vrot.lane.b32.xlu0 %v14044_v48, %s11383_s21  ;;  %6949 = vrot.lane.b32.xlu1 %v6125_v41, %s11383_s21  ;;  %v7130_v41 = vadd.f32 %v12874_v35, %v7049_v34  ;;  %v14056_v34 = vld [vmem:[#allocation81_spill] sm:$0xff]  ;;  %v6470_v57 = vadd.f32 %v14058_v17, %v14057_v47  ;;  %v14061_v52 = vld [vmem:[#allocation84_spill] sm:$0xff]  ;;  %v11275_v54 = vld [vmem:[%s13770_s9 + $0x134] ss:$8 sps:$4 sm:$0xff]  }
 0x51c   :  { %8054 = vmatpush2.bf16.msra.mxu0 %v11270_v33  ;;  %v6758_v40 = vadd.f32 %v14056_v34, %v6460_v14  ;;  %v7132_v33 = vadd.f32 %v12874_v35, %v7051_v3  ;;  %v7054_v60 = vadd.f32 %v14061_v52, %v6756_v1  ;;  %v14062_v14 = vld [vmem:[#allocation94_spill] sm:$0xff]  ;;  %v14063_v30 = vld [vmem:[#allocation97_spill] sm:$0xff]  ;;  %v14067_v52 = vld [vmem:[#allocation136_spill] sm:$0xff]  ;;  %8088 = vmatprep.subr.bf16.mxu1 %v11275_v54 }
 0x51d   :  { %v13161_v5 = vpop.permute.xlu0 %6907  ;;  %v13163_v53 = vpop.permute.xlu1 %6615  ;;  %v6762_v31 = vadd.f32 %v14062_v14, %v6464_v62  ;;  %v11273_v24 = vld [vmem:[%s13770_s9 + $0x130] ss:$8 sps:$4 sm:$0xff]   ;;  %8055 = vmatprep.subr.bf16.mxu0 %v11278_v32  ;;  %v7058_v34 = vadd.f32 %v14063_v30, %v6760_v51  ;;  %v6768_v63 = vadd.f32 %v14067_v52, %v6470_v57  ;;  %v11281_v32 = vld [vmem:[%s13770_s9 + $0xd4] ss:$8 sps:$4 sm:$0xff]   ;;  %v14072_v30 = vld [vmem:[#allocation120_spill] sm:$0xff] }
 0x51e   :  { %v14064_v47 = vld [vmem:[#allocation106_spill] sm:$0xff]  ;;  %v14065_v3 = vld [vmem:[#allocation37_spill] sm:$0xff]  ;;  %v14071_v57 = vld [vmem:[#allocation103_spill] sm:$0xff]  ;;  %8089 = vmatpush1.bf16.msra.mxu1 %v11273_v24 }
 0x51f   :  { %6339 = vrot.lane.b32.xlu0 %v14059_v37, %s11381_s6  ;;  %6937 = vrot.lane.b32.xlu1 %v14060_v10, %s11383_s21  ;;  %v7056_v17 = vadd.f32 %v14064_v47, %v6758_v40  ;;  %v14066_v10 = vld [vmem:[#allocation107_spill] sm:$0xff]  ;;  %v14068_v14 = vld [vmem:[#allocation93_spill] sm:$0xff]  ;;  %v6761_v37 = vadd.f32 %v14069_v44, %v6463_v42  ;;  %v7060_v8 = vadd.f32 %v14070_v36, %v6762_v31  ;;  %v7204_v40 = vmax.f32 %v7130_v41, 0.0  ;;  %v14073_v47 = vld [vmem:[#allocation32_spill] sm:$0xff] }
 0x520   :  { %v6469_v1 = vadd.f32 %v14066_v10, %v14065_v3  ;;  %v7057_v45 = vadd.f32 %v14068_v14, %v6759_v56  ;;  %8056 = vmatpush2.bf16.msra.mxu0 %v11276_v6  ;;  %v11279_v51 = vld [vmem:[%s13770_s9 + $0xd0] ss:$8 sps:$4 sm:$0xff]   ;;  %v7055_v10 = vadd.f32 %v14071_v57, %v6757_v49  ;;  %v6468_v56 = vadd.f32 %v14073_v47, %v14072_v30  ;;  %v14074_v3 = vld [vmem:[#allocation132_spill] sm:$0xff] }
 0x521   :  { %v13199_v21 = vpop.permute.xlu1 %6909  ;;  %v13201_v62 = vpop.permute.xlu0 %6331  ;;  %v7134_v36 = vadd.f32 %v12874_v35, %v7053_v50  ;;  %v7135_v42 = vadd.f32 %v12874_v35, %v7054_v60  ;;  %v7207_v6 = vmax.f32 %v7133_v25, 0.0  ;;  %v14075_v31 = vld [vmem:[#allocation114_spill] sm:$0xff]  ;;  %8057 = vmatprep.subr.bf16.mxu0 %v11281_v32  ;;  %v7139_v41 = vadd.f32 %v12874_v35, %v7058_v34  ;;  %v14076_v52 = vld [vmem:[#allocation131_spill] sm:$0xff]  ;;  %v14078_v60 = vld [vmem:[#allocation116_spill] sm:$0xff] }
 0x522   :  { %v6767_v44 = vadd.f32 %v14074_v3, %v6469_v1  ;;  %v7059_v54 = vadd.f32 %v14075_v31, %v6761_v37  ;;  %v7137_v49 = vadd.f32 %v12874_v35, %v7056_v17  ;;  %v7066_v1 = vadd.f32 %v14076_v52, %v6768_v63  ;;  %v14079_v25 = vld [vmem:[#allocation30_spill] sm:$0xff]  ;;  %v11282_v24 = vld [vmem:[%s13770_s9 + $0x120] ss:$8 sps:$4 sm:$0xff]   ;;  %v11284_v34 = vld [vmem:[%s13770_s9 + $0x124] ss:$8 sps:$4 sm:$0xff]  }
 0x523   :  { %6637 = vrot.lane.b32.xlu0 %v12820_v59, %s11382_s20  ;;  %7347 = vrot.lane.b32.xlu1 %v7267_v61, %s11384_s5  ;;  %v7268_v61 = vpack.c.bf16 %v7205_v55, %v7204_v40  ;;  %v7206_v30 = vmax.f32 %v7132_v33, 0.0  ;;  %v7138_v50 = vadd.f32 %v12874_v35, %v7057_v45  ;;  %v6467_v47 = vadd.f32 %v14079_v25, %v14078_v60  ;;  %v14080_v55 = vld [vmem:[#allocation128_spill] sm:$0xff]  ;;  %v14081_v63 = vld [vmem:[#allocation113_spill] sm:$0xff]  ;;  %v14082_v32 = vld [vmem:[#allocation151_spill] sm:$0xff] }
 0x524   :  { %v7141_v37 = vadd.f32 %v12874_v35, %v7060_v8  ;;  %8058 = vmatpush2.bf16.msra.mxu0 %v11279_v51  ;;  %v7136_v17 = vadd.f32 %v12874_v35, %v7055_v10  ;;  %v7065_v33 = vadd.f32 %v14080_v55, %v6767_v44  ;;  %v6766_v45 = vadd.f32 %v14081_v63, %v6468_v56  ;;  %v11285_v8 = vld [vmem:[%s13770_s9 + $0xc0] ss:$8 sps:$4 sm:$0xff]   ;;  %v11287_v51 = vld [vmem:[%s13770_s9 + $0xc4] ss:$8 sps:$4 sm:$0xff]   ;;  %v14083_v60 = vld [vmem:[#allocation138_spill] sm:$0xff] }
 0x525   :  { %v13225_v14 = vpop.permute.xlu0 %6625  ;;  %v13227_v57 = vpop.permute.xlu1 %6333  ;;  %v7208_v40 = vmax.f32 %v7134_v36, 0.0  ;;  %v7209_v3 = vmax.f32 %v7135_v42, 0.0  ;;  %v7269_v10 = vpack.c.bf16 %v7207_v6, %v7206_v30  ;;  %v7140_v44 = vadd.f32 %v12874_v35, %v7059_v54  ;;  %8090 = vmatprep.subr.bf16.mxu1 %v11284_v34  ;;  %8059 = vmatprep.subr.bf16.mxu0 %v11287_v51  ;;  %v14085_v36 = vld [vmem:[#allocation109_spill] sm:$0xff]  ;;  %v14086_v6 = vld [vmem:[#allocation66_spill] sm:$0xff]  ;;  %v14094_v59 = vld [vmem:[#allocation48_spill] sm:$0xff] }
 0x526   :  { %14077 = vst [vmem:[#allocation36_spill] sm:$0xff] %v13225_v14  ;;  %v7213_v56 = vmax.f32 %v7139_v41, 0.0  ;;  %v7211_v31 = vmax.f32 %v7137_v49, 0.0  ;;  %v7147_v52 = vadd.f32 %v12874_v35, %v7066_v1  ;;  %8091 = vmatpush1.bf16.msra.mxu1 %v11282_v24  ;;  %v7212_v63 = vmax.f32 %v7138_v50, 0.0  ;;  %v11290_v41 = vld [vmem:[%s13770_s9 + $0xb4] ss:$8 sps:$4 sm:$0xff]  }
 0x527   :  { %6935 = vrot.lane.b32.xlu0 %v14082_v32, %s11383_s21  ;;  %7350 = vrot.lane.b32.xlu1 %v7268_v61, %s11385_s30  ;;  %v7064_v61 = vadd.f32 %v14083_v60, %v6766_v45  ;;  %v7215_v32 = vmax.f32 %v7141_v37, 0.0  ;;  %v6765_v42 = vadd.f32 %v14085_v36, %v6467_v47  ;;  %v6480_v54 = vadd.f32 %v14086_v6, %v12891_v12  ;;  %v14087_v1 = vld [vmem:[#allocation130_spill] sm:$0xff]  ;;  %v14089_v51 = vld [vmem:[#allocation133_spill] sm:$0xff]  ;;  %v14090_v24 = vld [vmem:[#allocation39_spill] sm:$0xff] }
 0x528   :  { %8060 = vmatpush2.bf16.msra.mxu0 %v11285_v8  ;;  %v7210_v49 = vmax.f32 %v7136_v17, 0.0  ;;  %v14088_v30 = vld [vmem:[#allocation34_spill] sm:$0xff]  ;;  %v7146_v45 = vadd.f32 %v12874_v35, %v7065_v33  ;;  %v6472_v50 = vadd.f32 %v14090_v24, %v14089_v51  ;;  %v7214_v47 = vmax.f32 %v7140_v44, 0.0  ;;  %v14091_v37 = vld [vmem:[#allocation135_spill] sm:$0xff]  ;;  %v14093_v60 = vld [vmem:[#allocation60_spill] sm:$0xff] }
 0x529   :  { %v13254_v25 = vpop.permute.xlu0 %6919  ;;  %v13256_v55 = vpop.permute.xlu1 %6627  ;;  %v6471_v34 = vadd.f32 %v14088_v30, %v14087_v1  ;;  %v11288_v12 = vld [vmem:[%s13770_s9 + $0xb0] ss:$8 sps:$4 sm:$0xff]   ;;  %v7063_v17 = vadd.f32 %v14091_v37, %v6765_v42  ;;  %v7270_v33 = vpack.c.bf16 %v7209_v3, %v7208_v40  ;;  %8061 = vmatprep.subr.bf16.mxu0 %v11290_v41  ;;  %v7221_v1 = vmax.f32 %v7147_v52, 0.0  ;;  %v11293_v3 = vld [vmem:[%s13770_s9 + $0xa4] ss:$8 sps:$4 sm:$0xff]  }
 0x52a   :  { %14084 = vst [vmem:[#allocation41_spill] sm:$0xff] %v13256_v55  ;;  %v14092_v8 = vld [vmem:[#allocation163_spill] sm:$0xff]  ;;  %v7271_v6 = vpack.c.bf16 %v7211_v31, %v7210_v49  ;;  %v7145_v30 = vadd.f32 %v12874_v35, %v7064_v61  ;;  %v13283_v24 = vpack.c.bf16 %v7215_v32, %v7214_v47  ;;  %v14096_v42 = vld [vmem:[#allocation57_spill] sm:$0xff]  ;;  %v14097_v37 = vld [vmem:[#allocation126_spill] sm:$0xff]  ;;  %v7220_v31 = vmax.f32 %v7146_v45, 0.0 }
 0x52b   :  { %7305 = vrot.lane.b32.xlu0 %v13105_v28, %s11387_s27  ;;  %7353 = vrot.lane.b32.xlu1 %v7269_v10, %s11386_s19  ;;  %v6479_v36 = vadd.f32 %v14093_v60, %v14092_v8  ;;  %v7272_v10 = vpack.c.bf16 %v7213_v56, %v7212_v63  ;;  %v14095_v44 = vld [vmem:[#allocation123_spill] sm:$0xff]  ;;  %v6474_v14 = vadd.f32 %v14097_v37, %v14096_v42  ;;  %v14099_v52 = vld [vmem:[#allocation125_spill] sm:$0xff]  ;;  %v14101_v32 = vld [vmem:[#allocation82_spill] sm:$0xff] }
 0x52c   :  { %v6473_v55 = vadd.f32 %v14095_v44, %v14094_v59  ;;  %v14098_v8 = vld [vmem:[#allocation159_spill] sm:$0xff]  ;;  %8062 = vmatpush2.bf16.msra.mxu0 %v11288_v12  ;;  %v6769_v61 = vadd.f32 %v14099_v52, %v6471_v34  ;;  %v14100_v41 = vld [vmem:[#allocation129_spill] sm:$0xff]  ;;  %v6484_v63 = vadd.f32 %v14101_v32, %v12969_v46  ;;  %v14104_v34 = vld [vmem:[#allocation156_spill] sm:$0xff]  ;;  %v7219_v46 = vmax.f32 %v7145_v30, 0.0 }
 0x52d   :  { %v13279_v51 = vpop.permute.xlu0 %6327  ;;  %v13281_v28 = vpop.permute.xlu1 %6921  ;;  %v6778_v40 = vadd.f32 %v14098_v8, %v6480_v54  ;;  %v6770_v56 = vadd.f32 %v14100_v41, %v6472_v50  ;;  %v11291_v59 = vld [vmem:[%s13770_s9 + $0xa0] ss:$8 sps:$4 sm:$0xff]   ;;  %v7144_v54 = vadd.f32 %v12874_v35, %v7063_v17  ;;  %v6777_v50 = vadd.f32 %v14104_v34, %v6479_v36  ;;  %8063 = vmatprep.subr.bf16.mxu0 %v11293_v3  ;;  %v11294_v36 = vld [vmem:[%s13770_s9 + $0x110] ss:$8 sps:$4 sm:$0xff]  }
 0x52e   :  { %v14102_v49 = vld [vmem:[#allocation63_spill] sm:$0xff]  ;;  %v14105_v60 = vld [vmem:[#allocation73_spill] sm:$0xff]  ;;  %v13318_v17 = vpack.c.bf16 %v7221_v1, %v7220_v31  ;;  %v14108_v30 = vld [vmem:[#allocation146_spill] sm:$0xff] }
 0x52f   :  { %7308 = vrot.lane.b32.xlu0 %v13155_v22, %s11383_s21  ;;  %7356 = vrot.lane.b32.xlu1 %v7270_v33, %s11387_s27  ;;  %v14103_v45 = vld [vmem:[#allocation139_spill] sm:$0xff]  ;;  %v7076_v47 = vadd.f32 %v12984_v23, %v6778_v40  ;;  %v14106_v22 = vld [vmem:[#allocation142_spill] sm:$0xff]  ;;  %v14107_v33 = vld [vmem:[#allocation76_spill] sm:$0xff] }
 0x530   :  { %v13306_v12 = vadd.f32 %v14103_v45, %v14102_v49  ;;  %v6478_v44 = vadd.f32 %v14106_v22, %v14105_v60  ;;  %v6483_v42 = vadd.f32 %v14107_v33, %v12943_v2  ;;  %v11296_v23 = vld [vmem:[%s13770_s9 + $0x114] ss:$8 sps:$4 sm:$0xff]   ;;  %v14109_v40 = vld [vmem:[#allocation45_spill] sm:$0xff]  ;;  %v7075_v49 = vadd.f32 %v12967_v19, %v6777_v50  ;;  %8064 = vmatpush2.bf16.msra.mxu0 %v11291_v59  ;;  %v14116_v33 = vld [vmem:[#allocation152_spill] sm:$0xff] }
 0x531   :  { %v13314_v37 = vpop.permute.xlu0 %6621  ;;  %v13316_v8 = vpop.permute.xlu1 %6329  ;;  %v6475_v3 = vadd.f32 %v14109_v40, %v14108_v30  ;;  %v14110_v52 = vld [vmem:[#allocation153_spill] sm:$0xff]  ;;  %v14111_v2 = vld [vmem:[#allocation155_spill] sm:$0xff]  ;;  %v14113_v60 = vld [vmem:[#allocation102_spill] sm:$0xff]  ;;  %v7218_v19 = vmax.f32 %v7144_v54, 0.0  ;;  %v7067_v30 = vadd.f32 %v14116_v33, %v6769_v61  ;;  %v7157_v40 = vadd.f32 %v12874_v35, %v7076_v47  ;;  %8092 = vmatprep.subr.bf16.mxu1 %v11296_v23 }
 0x532   :  { %v6772_v41 = vadd.f32 %v14110_v52, %v6474_v14  ;;  %v7068_v32 = vadd.f32 %v14111_v2, %v6770_v56  ;;  %v11297_v1 = vld [vmem:[%s13770_s9 + $0x90] ss:$8 sps:$4 sm:$0xff]   ;;  %v11299_v31 = vld [vmem:[%s13770_s9 + $0x94] ss:$8 sps:$4 sm:$0xff]   ;;  %v6486_v22 = vadd.f32 %v12917_v7, %v14113_v60  ;;  %v6782_v14 = vadd.f32 %v12945_v9, %v6484_v63  ;;  %8093 = vmatpush1.bf16.msra.mxu1 %v11294_v36 }
 0x533   :  { %v14112_v45 = vld [vmem:[#allocation149_spill] sm:$0xff]  ;;  %7311 = vrot.lane.b32.xlu0 %v13115_v0, %s11382_s20  ;;  %7359 = vrot.lane.b32.xlu1 %v7271_v6, %s11383_s21  ;;  %v14114_v56 = vld [vmem:[#allocation150_spill] sm:$0xff]  ;;  %v14115_v59 = vld [vmem:[#allocation51_spill] sm:$0xff]  ;;  %v6781_v9 = vadd.f32 %v12915_v43, %v6483_v42  ;;  %v7275_v52 = vpack.c.bf16 %v7219_v46, %v7218_v19  ;;  %v7156_v47 = vadd.f32 %v12874_v35, %v7075_v49 }
 0x534   :  { %v6771_v34 = vadd.f32 %v14112_v45, %v6473_v55  ;;  %v6476_v50 = vadd.f32 %v14115_v59, %v14114_v56  ;;  %8065 = vmatprep.subr.bf16.mxu0 %v11299_v31  ;;  %v14117_v55 = vld [vmem:[#allocation95_spill] sm:$0xff]  ;;  %v6784_v63 = vadd.f32 %v13163_v53, %v6486_v22  ;;  %v7080_v0 = vadd.f32 %v13199_v21, %v6782_v14  ;;  %v11302_v43 = vld [vmem:[%s13770_s9 + $0x84] ss:$8 sps:$4 sm:$0xff]   ;;  %v14122_v60 = vld [vmem:[#allocation118_spill] sm:$0xff] }
 0x535   :  { %v6485_v7 = vadd.f32 %v12909_v58, %v14117_v55  ;;  %v6916_v6 = vpop.permute.xlu0 %6915  ;;  %v6624_v54 = vpop.permute.xlu1 %6623  ;;  %v14118_v2 = vld [vmem:[#allocation147_spill] sm:$0xff]  ;;  %v7149_v61 = vadd.f32 %v12874_v35, %v7068_v32  ;;  %8066 = vmatpush2.bf16.msra.mxu0 %v11297_v1  ;;  %v6488_v53 = vadd.f32 %v12616_v39, %v13127_v4  ;;  %v7079_v46 = vadd.f32 %v13161_v5, %v6781_v9  ;;  %v14119_v42 = vld [vmem:[#allocation144_spill] sm:$0xff]  ;;  %v14120_v23 = vld [vmem:[#allocation141_spill] sm:$0xff] }
 0x536   :  { %v7070_v45 = vadd.f32 %v14118_v2, %v6772_v41  ;;  %v11300_v58 = vld [vmem:[%s13770_s9 + $0x80] ss:$8 sps:$4 sm:$0xff]   ;;  %v7069_v36 = vadd.f32 %v14119_v42, %v6771_v34  ;;  %v6773_v41 = vadd.f32 %v14120_v23, %v6475_v3  ;;  %v7231_v32 = vmax.f32 %v7157_v40, 0.0  ;;  %8067 = vmatprep.subr.bf16.mxu0 %v11302_v43  ;;  %v14128_v23 = vld [vmem:[#allocation158_spill] sm:$0xff] }
 0x537   :  { %v6783_v21 = vadd.f32 %v13125_v13, %v6485_v7  ;;  %7314 = vrot.lane.b32.xlu0 %v13157_v26, %s11381_s6  ;;  %7362 = vrot.lane.b32.xlu1 %v7272_v10, %s11382_s20  ;;  %v6487_v49 = vadd.f32 %v14044_v48, %v13091_v18  ;;  %v7148_v13 = vadd.f32 %v12874_v35, %v7067_v30  ;;  %v14121_v1 = vld [vmem:[#allocation145_spill] sm:$0xff]  ;;  %v7230_v34 = vmax.f32 %v7156_v47, 0.0  ;;  %v14123_v19 = vld [vmem:[#allocation108_spill] sm:$0xff] }
 0x538   :  { %v6774_v39 = vadd.f32 %v14121_v1, %v6476_v50  ;;  %v7082_v5 = vadd.f32 %v13093_v27, %v6784_v63  ;;  %v7161_v4 = vadd.f32 %v12874_v35, %v7080_v0  ;;  %v7151_v10 = vadd.f32 %v12874_v35, %v7070_v45  ;;  %v14126_v0 = vld [vmem:[#allocation167_spill] sm:$0xff]  ;;  %v14129_v1 = vld [vmem:[#allocation105_spill] sm:$0xff] }
 0x539   :  { %v6918_v26 = vpop.permute.xlu1 %6917  ;;  %v13377_v31 = vpop.permute.xlu0 %6633  ;;  %v6776_v3 = vadd.f32 %v12898_v15, %v6478_v44  ;;  %v6490_v18 = vadd.f32 %v13031_v11, %v14122_v60  ;;  %8068 = vmatpush2.bf16.msra.mxu0 %v11300_v58  ;;  %v7223_v48 = vmax.f32 %v7149_v61, 0.0  ;;  %v7081_v22 = vadd.f32 %v13058_v38, %v6783_v21  ;;  %v11306_v15 = vld [vmem:[%s13770_s9 + $0x100] ss:$8 sps:$4 sm:$0xff]   ;;  %v11308_v11 = vld [vmem:[%s13770_s9 + $0x104] ss:$8 sps:$4 sm:$0xff]   ;;  %v14127_v58 = vld [vmem:[#allocation162_spill] sm:$0xff] }
 0x53a   :  { %v7160_v14 = vadd.f32 %v12874_v35, %v7079_v46  ;;  %v6786_v27 = vadd.f32 %v13060_v29, %v6488_v53  ;;  %v7072_v44 = vadd.f32 %v12907_v16, %v6774_v39  ;;  %v7281_v38 = vpack.c.bf16 %v7231_v32, %v7230_v34  ;;  %v14124_v29 = vld [vmem:[#allocation171_spill] sm:$0xff]  ;;  %8094 = vmatprep.subr.bf16.mxu1 %v11308_v11  ;;  %v14125_v16 = vld [vmem:[#allocation166_spill] sm:$0xff] }
 0x53b   :  { %7392 = vrot.lane.b32.xlu0 %v7275_v52, %s11384_s5  ;;  %7365 = vrot.lane.b32.xlu1 %v13283_v24, %s11381_s6  ;;  %v6489_v56 = vadd.f32 %v13005_v20, %v14123_v19  ;;  %v6785_v59 = vadd.f32 %v14124_v29, %v6487_v49  ;;  %v7163_v50 = vadd.f32 %v12874_v35, %v7082_v5  ;;  %v7235_v33 = vmax.f32 %v7161_v4, 0.0  ;;  %v14131_v11 = vld [vmem:[#allocation134_spill] sm:$0xff] }
 0x53c   :  { %v6788_v24 = vadd.f32 %v6624_v54, %v6490_v18  ;;  %v7084_v30 = vadd.f32 %v6918_v26, %v6786_v27  ;;  %v7150_v7 = vadd.f32 %v12874_v35, %v7069_v36  ;;  %v7222_v9 = vmax.f32 %v7148_v13, 0.0  ;;  %8095 = vmatpush1.bf16.msra.mxu1 %v11306_v15  ;;  %v11309_v18 = vld [vmem:[%s13770_s9 + $0x1f0] ss:$8 sps:$4 sm:$0xff]   ;;  %v14130_v27 = vld [vmem:[#allocation124_spill] sm:$0xff] }
 0x53d   :  { %v13400_v40 = vpop.permute.xlu0 %6927  ;;  %v13402_v55 = vpop.permute.xlu1 %6635  ;;  %v6775_v63 = vadd.f32 %v14125_v16, %v13306_v12  ;;  %v7071_v20 = vadd.f32 %v14126_v0, %v6773_v41  ;;  %v7162_v52 = vadd.f32 %v12874_v35, %v7081_v22  ;;  %v7234_v2 = vmax.f32 %v7160_v14, 0.0 }
 0x53e   :  { %v6787_v54 = vadd.f32 %v13314_v37, %v6489_v56  ;;  %v7083_v45 = vadd.f32 %v6916_v6, %v6785_v59  ;;  %v7225_v61 = vmax.f32 %v7151_v10, 0.0  ;;  %v7277_v47 = vpack.c.bf16 %v7223_v48, %v7222_v9  ;;  %v14133_v56 = vld [vmem:[#allocation36_spill] sm:$0xff] }
 0x53f   :  { %7395 = vrot.lane.b32.xlu0 %v13318_v17, %s11385_s30  ;;  %7410 = vrot.lane.b32.xlu1 %v7281_v38, %s11381_s6  ;;  %v7074_v43 = vadd.f32 %v14127_v58, %v6776_v3  ;;  %v7153_v12 = vadd.f32 %v12874_v35, %v7072_v44  ;;  %v7237_v21 = vmax.f32 %v7163_v50, 0.0  ;;  %v7283_v53 = vpack.c.bf16 %v7235_v33, %v7234_v2  ;;  %v14132_v38 = vld [vmem:[#allocation111_spill] sm:$0xff] }
 0x540   :  { %v7086_v46 = vadd.f32 %v13281_v28, %v6788_v24  ;;  %v7165_v42 = vadd.f32 %v12874_v35, %v7084_v30  ;;  %v7224_v6 = vmax.f32 %v7150_v7, 0.0  ;;  %v7073_v17 = vadd.f32 %v14128_v23, %v6775_v63  ;;  %v11317_v58 = vld [vmem:[%s13770_s9 + $0x1d4] ss:$8 sps:$4 sm:$0xff]   ;;  %v11318_v23 = vld [vmem:[%s13770_s9 + $0x1c0] ss:$8 sps:$4 sm:$0xff]  }
 0x541   :  { %v13417_v36 = vpop.permute.xlu0 %6335  ;;  %v6930_v37 = vpop.permute.xlu1 %6929  ;;  %v7152_v41 = vadd.f32 %v12874_v35, %v7071_v20  ;;  %v7236_v32 = vmax.f32 %v7162_v52, 0.0  ;;  %v7085_v49 = vadd.f32 %v13254_v25, %v6787_v54  ;;  %v7164_v13 = vadd.f32 %v12874_v35, %v7083_v45  ;;  %v11311_v25 = vld [vmem:[%s13770_s9 + $0x1f4] ss:$8 sps:$4 sm:$0xff]   ;;  %v14134_v20 = vld [vmem:[#allocation41_spill] sm:$0xff] }
 0x542   :  { %v7155_v28 = vadd.f32 %v12874_v35, %v7074_v43  ;;  %v6491_v39 = vadd.f32 %v14129_v1, %v13279_v51  ;;  %v7278_v5 = vpack.c.bf16 %v7225_v61, %v7224_v6  ;;  %v7227_v4 = vmax.f32 %v7153_v12, 0.0  ;;  %8096 = vmatprep.subr.bf16.mxu1 %v11311_v25  ;;  %v13469_v12 = vld [vmem:[%s13771_s8] ss:$0 sm:$0xff] }
 0x543   :  { %7398 = vrot.lane.b32.xlu0 %v7277_v47, %s11386_s19  ;;  %7437 = vrot.lane.b32.xlu1 %v7283_v53, %s11384_s5  ;;  %v7284_v26 = vpack.c.bf16 %v7237_v21, %v7236_v32  ;;  %v7167_v10 = vadd.f32 %v12874_v35, %v7086_v46  ;;  %v7239_v3 = vmax.f32 %v7165_v42, 0.0  ;;  %v7154_v48 = vadd.f32 %v12874_v35, %v7073_v17  ;;  %v11315_v47 = vld [vmem:[%s13770_s9 + $0x1d0] ss:$8 sps:$4 sm:$0xff]   ;;  %v11320_v46 = vld [vmem:[%s13770_s9 + $0x1c4] ss:$8 sps:$4 sm:$0xff]  }
 0x544   :  { %v7226_v51 = vmax.f32 %v7152_v41, 0.0  ;;  %v7166_v22 = vadd.f32 %v12874_v35, %v7085_v49  ;;  %v7238_v14 = vmax.f32 %v7164_v13, 0.0  ;;  %v6493_v15 = vadd.f32 %v13201_v62, %v14130_v27  ;;  %8097 = vmatpush2.bf16.msra.mxu1 %v11309_v18  ;;  %v11312_v62 = vld [vmem:[%s13770_s9 + $0x1e0] ss:$8 sps:$4 sm:$0xff]   ;;  %v11323_v49 = vld [vmem:[%s13770_s9 + $0x1b4] ss:$8 sps:$4 sm:$0xff]  }
 0x545   :  { %v6630_v34 = vpop.permute.xlu0 %6629  ;;  %v13429_v60 = vpop.permute.xlu1 %6337  ;;  %v6494_v44 = vadd.f32 %v13227_v57, %v14131_v11  ;;  %v6492_v19 = vadd.f32 %v14132_v38, %v13316_v8  ;;  %v6789_v29 = vadd.f32 %v14133_v56, %v6491_v39  ;;  %v7229_v59 = vmax.f32 %v7155_v28, 0.0  ;;  %v11314_v57 = vld [vmem:[%s13770_s9 + $0x1e4] ss:$8 sps:$4 sm:$0xff]   ;;  %v11327_v11 = vld [vmem:[%s13770_s9 + $0x190] ss:$8 sps:$4 sm:$0xff]  }
 0x546   :  { %v7279_v50 = vpack.c.bf16 %v7227_v4, %v7226_v51  ;;  %v7241_v35 = vmax.f32 %v7167_v10, 0.0  ;;  %v7285_v33 = vpack.c.bf16 %v7239_v3, %v7238_v14  ;;  %v6791_v7 = vadd.f32 %v6630_v34, %v6493_v15  ;;  %8098 = vmatprep.subr.bf16.mxu1 %v11314_v57  ;;  %v14135_v13 = vld [vmem:[#allocation121_spill] sm:$0xff]  ;;  %v14136_v3 = vld [vmem:[#allocation127_spill] sm:$0xff] }
 0x547   :  { %7401 = vrot.lane.b32.xlu0 %v7278_v5, %s11387_s27  ;;  %7440 = vrot.lane.b32.xlu1 %v7284_v26, %s11385_s30  ;;  %v7228_v16 = vmax.f32 %v7154_v48, 0.0  ;;  %v7240_v63 = vmax.f32 %v7166_v22, 0.0  ;;  %v6790_v52 = vadd.f32 %v14134_v20, %v6492_v19  ;;  %v6495_v28 = vadd.f32 %v14135_v13, %v13417_v36  ;;  %v11321_v26 = vld [vmem:[%s13770_s9 + $0x1b0] ss:$8 sps:$4 sm:$0xff]   ;;  %v11326_v51 = vld [vmem:[%s13770_s9 + $0x1a4] ss:$8 sps:$4 sm:$0xff]  }
 0x548   :  { %8099 = vmatpush2.bf16.msra.mxu1 %v11312_v62  ;;  %v7089_v43 = vadd.f32 %v13400_v40, %v6791_v7  ;;  %v6496_v34 = vadd.f32 %v14136_v3, %v13429_v60  ;;  %v11324_v14 = vld [vmem:[%s13770_s9 + $0x1a0] ss:$8 sps:$4 sm:$0xff]   ;;  %v14137_v62 = vmov 0  }
 0x549   :  { %v6924_v24 = vpop.permute.xlu0 %6923  ;;  %v6632_v30 = vpop.permute.xlu1 %6631  ;;  %v7286_v2 = vpack.c.bf16 %v7241_v35, %v7240_v63  ;;  %v7280_v61 = vpack.c.bf16 %v7229_v59, %v7228_v16  ;;  %8100 = vmatprep.subr.bf16.mxu1 %v11317_v58  ;;  %v6793_v18 = vadd.f32 %v13377_v31, %v6495_v28  ;;  %v11329_v31 = vld [vmem:[%s13770_s9 + $0x194] ss:$8 sps:$4 sm:$0xff]   ;;  %v11330_v59 = vld [vmem:[%s13770_s9 + $0x180] ss:$8 sps:$4 sm:$0xff]  }
 0x54a   :  { %v7087_v8 = vadd.f32 %v6924_v24, %v6789_v29  ;;  %v6792_v9 = vadd.f32 %v6632_v30, %v6494_v44  ;;  %v7170_v17 = vadd.f32 %v13469_v12, %v7089_v43  ;;  %v6794_v60 = vadd.f32 %v13402_v55, %v6496_v34  ;;  %v11332_v55 = vld [vmem:[%s13770_s9 + $0x184] ss:$8 sps:$4 sm:$0xff]   ;;  %v14138_v16 = vld [vmem:[#allocation154_spill] sm:$0xff] }
 0x54b   :  { %7404 = vrot.lane.b32.xlu0 %v7279_v50, %s11383_s21  ;;  %7443 = vrot.lane.b32.xlu1 %v7285_v33, %s11386_s19  ;;  %v11338_v43 = vld [vmem:[%s13770_s9 + $0x274] ss:$8 sps:$4 sm:$0xff]  }
 0x54c   :  { %v7090_v0 = vadd.f32 %v6930_v37, %v6792_v9  ;;  %v7168_v21 = vadd.f32 %v13469_v12, %v7087_v8  ;;  %8101 = vmatpush2.bf16.msra.mxu1 %v11315_v47  ;;  %v7244_v10 = vmax.f32 %v7170_v17, 0.0  ;;  %8123 = vmatprep.subr.bf16.mxu0 %v11338_v43 }
 0x54d   :  { %v6926_v54 = vpop.permute.xlu1 %6925  ;;  %v13457_v45 = vpop.permute.xlu0 %6347  ;;  %8102 = vmatprep.subr.bf16.mxu1 %v11320_v46 }
 0x54e   :  { %v7088_v53 = vadd.f32 %v6926_v54, %v6790_v52  ;;  %v7171_v42 = vadd.f32 %v13469_v12, %v7090_v0  ;;  %v7242_v41 = vmax.f32 %v7168_v21, 0.0  ;;  %v6501_v63 = vadd.f32 %v13457_v45, %v14138_v16  ;;  %v14139_v0 = vld [vmem:[#allocation160_spill] sm:$0xff]  ;;  %v14140_v52 = vld [vmem:[#allocation137_spill] sm:$0xff]  ;;  %v14141_v54 = vld [vmem:[#allocation143_spill] sm:$0xff] }
 0x54f   :  { %7407 = vrot.lane.b32.xlu0 %v7280_v61, %s11382_s20  ;;  %7446 = vrot.lane.b32.xlu1 %v7286_v2, %s11387_s27 }
 0x550   :  { %v7169_v40 = vadd.f32 %v13469_v12, %v7088_v53  ;;  %v7245_v1 = vmax.f32 %v7171_v42, 0.0  ;;  %8103 = vmatpush2.bf16.msra.mxu1 %v11318_v23 }
 0x551   :  { %v13479_v37 = vpop.permute.xlu0 %6641  ;;  %v6350_v6 = vpop.permute.xlu1 %6349  ;;  %8104 = vmatprep.subr.bf16.mxu1 %v11323_v49 }
 0x552   :  { %v7243_v32 = vmax.f32 %v7169_v40, 0.0  ;;  %v7288_v25 = vpack.c.bf16 %v7245_v1, %v7244_v10  ;;  %v6502_v20 = vadd.f32 %v6350_v6, %v14139_v0 }
 0x554   :  { %v7287_v39 = vpack.c.bf16 %v7243_v32, %v7242_v41  ;;  %8105 = vmatpush2.bf16.msra.mxu1 %v11321_v26 }
 0x555   :  { %v6344_v5 = vpop.permute.xlu0 %6343  ;;  %v6644_v4 = vpop.permute.xlu1 %6643  ;;  %8106 = vmatprep.subr.bf16.mxu1 %v11326_v51 }
 0x556   :  { %7449 = vrot.lane.b32.xlu1 %v7287_v39, %s11383_s21  ;;  %v6499_v2 = vadd.f32 %v14140_v52, %v6344_v5 }
 0x558   :  { %8107 = vmatpush2.bf16.msra.mxu1 %v11324_v14  ;;  %v6797_v40 = vadd.f32 %v13479_v37, %v6499_v2  ;;  %v14143_v14 = vld [vmem:[#allocation165_spill] sm:$0xff] }
 0x559   :  { %v6932_v36 = vpop.permute.xlu0 %6931  ;;  %v6346_v48 = vpop.permute.xlu1 %6345  ;;  %8108 = vmatprep.subr.bf16.mxu1 %v11329_v31  ;;  %v14144_v31 = vld [vmem:[#allocation151_spill] sm:$0xff] }
 0x55a   :  { %v7091_v22 = vadd.f32 %v6932_v36, %v6793_v18  ;;  %7452 = vrot.lane.b32.xlu1 %v7288_v25, %s11382_s20  ;;  %v6500_v61 = vadd.f32 %v14141_v54, %v6346_v48  ;;  %v14142_v18 = vld [vmem:[#allocation148_spill] sm:$0xff] }
 0x55c   :  { %v7172_v44 = vadd.f32 %v13469_v12, %v7091_v22  ;;  %8109 = vmatpush2.bf16.msra.mxu1 %v11327_v11  ;;  %v6798_v45 = vadd.f32 %v6644_v4, %v6500_v61  ;;  %v14148_v61 = vld [vmem:[#allocation16_spill] sm:$0xff] }
 0x55d   :  { %v6934_v27 = vpop.permute.xlu1 %6933  ;;  %v13508_v15 = vpop.permute.xlu0 %6355  ;;  %8110 = vmatprep.subr.bf16.mxu1 %v11332_v55  ;;  %v14145_v55 = vld [vmem:[#allocation168_spill] sm:$0xff] }
 0x55e   :  { %v7092_v38 = vadd.f32 %v6934_v27, %v6794_v60  ;;  %v7246_v50 = vmax.f32 %v7172_v44, 0.0  ;;  %v6505_v60 = vadd.f32 %v13508_v15, %v14143_v14  ;;  %v14159_v14 = vld [vmem:[#allocation40_spill] sm:$0xff] }
 0x560   :  { %v7173_v19 = vadd.f32 %v13469_v12, %v7092_v38  ;;  %8111 = vmatpush2.bf16.msra.mxu1 %v11330_v59  ;;  %v14146_v59 = vld [vmem:[#allocation157_spill] sm:$0xff] }
 0x561   :  { %v13518_v56 = vpop.permute.xlu0 %6649  ;;  %v6358_v29 = vpop.permute.xlu1 %6357  ;;  %8262 = vmatprep.subr.bf16.mxu1 %v14137_v62 }
 0x562   :  { %v7247_v35 = vmax.f32 %v7173_v19, 0.0  ;;  %v6506_v19 = vadd.f32 %v6358_v29, %v14145_v55 }
 0x564   :  { %v7289_v33 = vpack.c.bf16 %v7247_v35, %v7246_v50 }
 0x565   :  { %v6944_v24 = vpop.permute.xlu0 %6943  ;;  %v6652_v30 = vpop.permute.xlu1 %6651 }
 0x566   :  { %7455 = vrot.lane.b32.xlu0 %v7289_v33, %s11381_s6 }
 0x569   :  { %v13525_v57 = vpop.permute.xlu0 %7296  ;;  %v6946_v7 = vpop.permute.xlu1 %6945 }
 0x56d   :  { %v6352_v8 = vpop.permute.xlu0 %6351  ;;  %v6354_v9 = vpop.permute.xlu1 %6353 }
 0x56e   :  { %v6503_v27 = vadd.f32 %v14144_v31, %v6352_v8  ;;  %v6504_v50 = vadd.f32 %v14146_v59, %v6354_v9  ;;  %v14147_v9 = vld [vmem:[#allocation7_spill] sm:$0xff]  ;;  %v14160_v31 = vld [vmem:[#allocation58_spill] sm:$0xff] }
 0x570   :  { %v6801_v33 = vadd.f32 %v13518_v56, %v6503_v27  ;;  %v6802_v15 = vadd.f32 %v6652_v30, %v6504_v50  ;;  %v14149_v56 = vld [vmem:[#allocation8_spill] sm:$0xff]  ;;  %v14162_v50 = vld [vmem:[#allocation53_spill] sm:$0xff] }
 0x571   :  { %v6646_v47 = vpop.permute.xlu0 %6645  ;;  %v6648_v58 = vpop.permute.xlu1 %6647 }
 0x572   :  { %v6799_v21 = vadd.f32 %v6646_v47, %v6501_v63  ;;  %v6800_v53 = vadd.f32 %v6648_v58, %v6502_v20  ;;  %v6433_v47 = vadd.f32 %v14148_v61, %v14147_v9  ;;  %v14150_v58 = vld [vmem:[#allocation18_spill] sm:$0xff] }
 0x573   :  { %v6434_v43 = vadd.f32 %v14150_v58, %v14149_v56 }
 0x574   :  { %v7097_v46 = vadd.f32 %v6944_v24, %v6799_v21  ;;  %v7098_v42 = vadd.f32 %v6946_v7, %v6800_v53 }
 0x575   :  { %v6940_v23 = vpop.permute.xlu0 %6939  ;;  %v6942_v6 = vpop.permute.xlu1 %6941 }
 0x576   :  { %v7178_v17 = vadd.f32 %v13469_v12, %v7097_v46  ;;  %v7179_v41 = vadd.f32 %v13469_v12, %v7098_v42  ;;  %v7095_v32 = vadd.f32 %v6940_v23, %v6797_v40  ;;  %v7096_v49 = vadd.f32 %v6942_v6, %v6798_v45  ;;  %v14151_v42 = vld [vmem:[#allocation23_spill] sm:$0xff]  ;;  %v14152_v23 = vld [vmem:[#allocation24_spill] sm:$0xff] }
 0x577   :  { %v6731_v30 = vadd.f32 %v14151_v42, %v6433_v47  ;;  %v6732_v6 = vadd.f32 %v14152_v23, %v6434_v43 }
 0x578   :  { %v7252_v13 = vmax.f32 %v7178_v17, 0.0  ;;  %v7253_v28 = vmax.f32 %v7179_v41, 0.0  ;;  %v7176_v1 = vadd.f32 %v13469_v12, %v7095_v32  ;;  %v7177_v39 = vadd.f32 %v13469_v12, %v7096_v49 }
 0x579   :  { %v13540_v5 = vpop.permute.xlu0 %7299  ;;  %v13542_v26 = vpop.permute.xlu1 %6905 }
 0x57a   :  { %v7292_v37 = vpack.c.bf16 %v7253_v28, %v7252_v13  ;;  %v7250_v4 = vmax.f32 %v7176_v1, 0.0  ;;  %v7251_v10 = vmax.f32 %v7177_v39, 0.0  ;;  %v14153_v13 = vld [vmem:[#allocation11_spill] sm:$0xff]  ;;  %v14154_v28 = vld [vmem:[#allocation38_spill] sm:$0xff] }
 0x57b   :  { %v6450_v1 = vadd.f32 %v14154_v28, %v14153_v13 }
 0x57c   :  { %v7291_v3 = vpack.c.bf16 %v7251_v10, %v7250_v4  ;;  %7485 = vrot.lane.b32.xlu1 %v7292_v37, %s11385_s30  ;;  %v14155_v37 = vld [vmem:[#allocation140_spill] sm:$0xff]  ;;  %v14156_v10 = vld [vmem:[#allocation21_spill] sm:$0xff] }
 0x57d   :  { %v6342_v34 = vpop.permute.xlu1 %6341  ;;  %v6952_v25 = vpop.permute.xlu0 %6951  ;;  %v6748_v27 = vadd.f32 %v14160_v31, %v6450_v1  ;;  %v14166_v1 = vld [vmem:[#allocation31_spill] sm:$0xff] }
 0x57e   :  { %7482 = vrot.lane.b32.xlu0 %v7291_v3, %s11384_s5  ;;  %v6498_v36 = vadd.f32 %v6342_v34, %v14142_v18  ;;  %v7029_v3 = vadd.f32 %v14156_v10, %v6731_v30  ;;  %v14157_v18 = vld [vmem:[#allocation22_spill] sm:$0xff] }
 0x57f   :  { %v14168_v10 = vld [vmem:[#allocation122_spill] sm:$0xff] }
 0x581   :  { %v6640_v48 = vpop.permute.xlu1 %6639  ;;  %v13547_v51 = vpop.permute.xlu0 %7302 }
 0x582   :  { %v6796_v22 = vadd.f32 %v6640_v48, %v6498_v36  ;;  %v7030_v36 = vadd.f32 %v14157_v18, %v6732_v6  ;;  %v14158_v48 = vld [vmem:[#allocation10_spill] sm:$0xff] }
 0x584   :  { %v7111_v59 = vadd.f32 %v13469_v12, %v7030_v36 }
 0x585   :  { %v6654_v11 = vpop.permute.xlu0 %6653  ;;  %v6954_v44 = vpop.permute.xlu1 %6953 }
 0x586   :  { %v6803_v38 = vadd.f32 %v6654_v11, %v6505_v60  ;;  %v6449_v60 = vadd.f32 %v14159_v14, %v14158_v48  ;;  %v14161_v11 = vld [vmem:[#allocation55_spill] sm:$0xff] }
 0x587   :  { %v14169_v48 = vld [vmem:[#allocation119_spill] sm:$0xff] }
 0x588   :  { %v7101_v35 = vadd.f32 %v6952_v25, %v6803_v38  ;;  %v7110_v38 = vadd.f32 %v13469_v12, %v7029_v3 }
 0x589   :  { %v6948_v24 = vpop.permute.xlu0 %6947  ;;  %v6656_v7 = vpop.permute.xlu1 %6655 }
 0x58a   :  { %v7099_v16 = vadd.f32 %v6948_v24, %v6801_v33  ;;  %v6804_v63 = vadd.f32 %v6656_v7, %v6506_v19  ;;  %v7182_v0 = vadd.f32 %v13469_v12, %v7101_v35  ;;  %v7046_v35 = vadd.f32 %v14162_v50, %v6748_v27  ;;  %v14163_v7 = vld [vmem:[#allocation52_spill] sm:$0xff] }
 0x58c   :  { %v7102_v20 = vadd.f32 %v6954_v44, %v6804_v63  ;;  %v7180_v2 = vadd.f32 %v13469_v12, %v7099_v16  ;;  %v7256_v21 = vmax.f32 %v7182_v0, 0.0  ;;  %v6747_v44 = vadd.f32 %v14161_v11, %v6449_v60  ;;  %v14170_v11 = vld [vmem:[#allocation115_spill] sm:$0xff] }
 0x58d   :  { %v13556_v52 = vpop.permute.xlu0 %6903  ;;  %v6950_v8 = vpop.permute.xlu1 %6949  ;;  %v7184_v0 = vmax.f32 %v7110_v38, 0.0 }
 0x58e   :  { %v7183_v29 = vadd.f32 %v13469_v12, %v7102_v20  ;;  %v7100_v54 = vadd.f32 %v6950_v8, %v6802_v15  ;;  %v7254_v17 = vmax.f32 %v7180_v2, 0.0  ;;  %v7045_v16 = vadd.f32 %v14163_v7, %v6747_v44 }
 0x58f   :  { %v7185_v8 = vmax.f32 %v7111_v59, 0.0  ;;  %v7127_v2 = vadd.f32 %v13469_v12, %v7046_v35 }
 0x590   :  { %v7257_v53 = vmax.f32 %v7183_v29, 0.0  ;;  %v7181_v46 = vadd.f32 %v13469_v12, %v7100_v54  ;;  %v7126_v9 = vadd.f32 %v13469_v12, %v7045_v16 }
 0x591   :  { %v6340_v40 = vpop.permute.xlu0 %6339  ;;  %v6938_v45 = vpop.permute.xlu1 %6937  ;;  %v7201_v58 = vmax.f32 %v7127_v2, 0.0  ;;  %v7258_v43 = vpack.c.bf16 %v7185_v8, %v7184_v0  ;;  %v11336_v2 = vld [vmem:[%s13770_s9 + $0x270] ss:$8 sps:$4 sm:$0xff]  }
 0x592   :  { %v7294_v41 = vpack.c.bf16 %v7257_v53, %v7256_v21  ;;  %v7255_v32 = vmax.f32 %v7181_v46, 0.0  ;;  %v7094_v49 = vadd.f32 %v6938_v45, %v6796_v22  ;;  %v6497_v4 = vadd.f32 %v6340_v40, %v14155_v37 }
 0x593   :  { %v7200_v21 = vmax.f32 %v7126_v9, 0.0  ;;  %v7319_v53 = vsel %vm7316_vm1, %v7258_v43, %v13525_v57  ;;  %v14164_v57 = vld [vmem:[#allocation33_spill] sm:$0xff]  ;;  %v11344_v43 = vld [vmem:[%s13770_s9 + $0x254] ss:$8 sps:$4 sm:$0xff]  }
 0x594   :  { %v7293_v39 = vpack.c.bf16 %v7255_v32, %v7254_v17  ;;  %7491 = vrot.lane.b32.xlu1 %v7294_v41, %s11387_s27  ;;  %v7175_v33 = vadd.f32 %v13469_v12, %v7094_v49  ;;  %v7321_v46 = vsel %vm362_vm0, %v7319_v53, %v13540_v5  ;;  %v14165_v41 = vld [vmem:[#allocation99_spill] sm:$0xff] }
 0x595   :  { %v6638_v34 = vpop.permute.xlu0 %6637  ;;  %v7348_v25 = vpop.permute.xlu1 %7347  ;;  %v7324_v40 = vsel %vm7322_vm2, %v7321_v46, %v13547_v51  ;;  %v7266_v45 = vpack.c.bf16 %v7201_v58, %v7200_v21  ;;  %v6466_v32 = vadd.f32 %v14165_v41, %v14164_v57  ;;  %v14167_v51 = vld [vmem:[#allocation96_spill] sm:$0xff]  ;;  %v14174_v41 = vld [vmem:[#allocation89_spill] sm:$0xff] }
 0x596   :  { %v6795_v22 = vadd.f32 %v6638_v34, %v6497_v4  ;;  %7488 = vrot.lane.b32.xlu0 %v7293_v39, %s11386_s19  ;;  %v7249_v29 = vmax.f32 %v7175_v33, 0.0  ;;  %v6465_v39 = vadd.f32 %v14167_v51, %v14166_v1  ;;  %v11347_v57 = vld [vmem:[%s13770_s9 + $0x244] ss:$8 sps:$4 sm:$0xff]  }
 0x597   :  { %v7369_v6 = vsel %vm7316_vm1, %v7266_v45, %v7348_v25  ;;  %v6764_v3 = vadd.f32 %v14168_v10, %v6466_v32  ;;  %v14175_v32 = vld [vmem:[#allocation164_spill] sm:$0xff] }
 0x598   :  { %v6763_v14 = vadd.f32 %v14169_v48, %v6465_v39  ;;  %v14177_v39 = vld [vmem:[#allocation170_spill] sm:$0xff] }
 0x599   :  { %v6936_v55 = vpop.permute.xlu0 %6935  ;;  %v7351_v19 = vpop.permute.xlu1 %7350  ;;  %v7062_v44 = vadd.f32 %v14170_v11, %v6764_v3  ;;  %v11345_v3 = vld [vmem:[%s13770_s9 + $0x240] ss:$8 sps:$4 sm:$0xff]  }
 0x59a   :  { %v7093_v24 = vadd.f32 %v6936_v55, %v6795_v22  ;;  %v7371_v5 = vsel %vm362_vm0, %v7369_v6, %v7351_v19  ;;  %v14171_v19 = vld [vmem:[#allocation112_spill] sm:$0xff]  ;;  %v11342_v6 = vld [vmem:[%s13770_s9 + $0x250] ss:$8 sps:$4 sm:$0xff]  }
 0x59b   :  { %v7061_v59 = vadd.f32 %v14171_v19, %v6763_v14  ;;  %v7143_v35 = vadd.f32 %v13469_v12, %v7062_v44  ;;  %v11359_v44 = vld [vmem:[%s13770_s9 + $0x204] ss:$8 sps:$4 sm:$0xff]  }
 0x59c   :  { %v7174_v63 = vadd.f32 %v13469_v12, %v7093_v24 }
 0x59d   :  { %v7306_v20 = vpop.permute.xlu0 %7305  ;;  %v7354_v15 = vpop.permute.xlu1 %7353  ;;  %v7142_v24 = vadd.f32 %v13469_v12, %v7061_v59  ;;  %v7217_v16 = vmax.f32 %v7143_v35, 0.0 }
 0x59e   :  { %v7248_v54 = vmax.f32 %v7174_v63, 0.0  ;;  %v7327_v23 = vsel %vm7325_vm3, %v7324_v40, %v7306_v20  ;;  %v7373_v37 = vsel %vm7322_vm2, %v7371_v5, %v7354_v15  ;;  %v6482_v5 = vadd.f32 %v14175_v32, %v14174_v41  ;;  %v11370_v41 = vld [vmem:[%s13772_s11 + $0x40] sm:$0xff]  }
 0x59f   :  { %v7216_v0 = vmax.f32 %v7142_v24, 0.0  ;;  %v11388_v32 = vmov 0.0  }
 0x5a0   :  { %v13586_v61 = vpack.c.bf16 %v7249_v29, %v7248_v54  ;;  %v11341_v29 = vld [vmem:[%s13770_s9 + $0x264] ss:$8 sps:$4 sm:$0xff]  }
 0x5a1   :  { %v7309_v47 = vpop.permute.xlu0 %7308  ;;  %v7357_v56 = vpop.permute.xlu1 %7356  ;;  %v7274_v54 = vpack.c.bf16 %v7217_v16, %v7216_v0 }
 0x5a2   :  { %v7330_v17 = vsel %vm7328_vm4, %v7327_v23, %v7309_v47  ;;  %v7375_v34 = vsel %vm7325_vm3, %v7373_v37, %v7357_v56  ;;  %v11339_v56 = vld [vmem:[%s13770_s9 + $0x260] ss:$8 sps:$4 sm:$0xff]   ;;  %v6780_v37 = vadd.f32 %v14177_v39, %v6482_v5 }
 0x5a3   :  { %v11371_v5 = vld [vmem:[%s13773_s13 + $0x20] sm:$0xff]  }
 0x5a5   :  { %v7312_v42 = vpop.permute.xlu0 %7311  ;;  %v7360_v30 = vpop.permute.xlu1 %7359 }
 0x5a6   :  { %v7333_v49 = vsel %vm7331_vm5, %v7330_v17, %v7312_v42  ;;  %v7377_v36 = vsel %vm7328_vm4, %v7375_v34, %v7360_v30  ;;  %v14172_v42 = vld [vmem:[#allocation79_spill] sm:$0xff]  ;;  %v14173_v30 = vld [vmem:[#allocation161_spill] sm:$0xff] }
 0x5a7   :  { %v6481_v40 = vadd.f32 %v14173_v30, %v14172_v42  ;;  %v11350_v34 = vld [vmem:[%s13770_s9 + $0x234] ss:$8 sps:$4 sm:$0xff]   ;;  %v11363_v30 = vld [vmem:[%s13772_s11 + $0x28] sm:$0xff]  }
 0x5a8   :  { %v11362_v42 = vld [vmem:[%s13772_s11 + $0x30] sm:$0xff]  }
 0x5a9   :  { %v7315_v13 = vpop.permute.xlu0 %7314  ;;  %v7363_v28 = vpop.permute.xlu1 %7362 }
 0x5aa   :  { %v7336_v4 = vsel %vm7334_vm6, %v7333_v49, %v7315_v13  ;;  %v7379_v60 = vsel %vm7331_vm5, %v7377_v36, %v7363_v28  ;;  %v14176_v49 = vld [vmem:[#allocation169_spill] sm:$0xff] }
 0x5ab   :  { %v9002_v25 = vcombine.low %v7336_v4, %v7336_v4  ;;  %v9003_v18 = vcombine.high %v7336_v4, %v7336_v4  ;;  %v6779_v13 = vadd.f32 %v14176_v49, %v6481_v40  ;;  %v11353_v36 = vld [vmem:[%s13770_s9 + $0x224] ss:$8 sps:$4 sm:$0xff]   ;;  %v11372_v49 = vld [vmem:[%s13773_s13 + $0x18] sm:$0xff]  }
 0x5ac   :  { %v11364_v40 = vld [vmem:[%s13772_s11 + $0x20] sm:$0xff]  }
 0x5ad   :  { %7344 = vst [vmem:[#allocation5] sm:$0xf] %v9002_v25  ;;  %7345 = vst [vmem:[#allocation5 + $0x14] sm:$0xf] %v9003_v18  ;;  %v7393_v31 = vpop.permute.xlu0 %7392  ;;  %v7366_v27 = vpop.permute.xlu1 %7365  ;;  %v7077_v4 = vadd.f32 %v13556_v52, %v6779_v13  ;;  %v7078_v25 = vadd.f32 %v13542_v26, %v6780_v37  ;;  %v11348_v52 = vld [vmem:[%s13770_s9 + $0x230] ss:$8 sps:$4 sm:$0xff]  }
 0x5ae   :  { %v7381_v22 = vsel %vm7334_vm6, %v7379_v60, %v7366_v27  ;;  %v7414_v9 = vsel %vm7316_vm1, %v7274_v54, %v7393_v31  ;;  %v11351_v26 = vld [vmem:[%s13770_s9 + $0x220] ss:$8 sps:$4 sm:$0xff]   ;;  %v11356_v31 = vld [vmem:[%s13770_s9 + $0x214] ss:$8 sps:$4 sm:$0xff]  }
 0x5af   :  { %v9004_v38 = vcombine.low %v7381_v22, %v7381_v22  ;;  %v9005_v55 = vcombine.high %v7381_v22, %v7381_v22  ;;  %v7158_v18 = vadd.f32 %v13469_v12, %v7077_v4  ;;  %v7159_v48 = vadd.f32 %v13469_v12, %v7078_v25  ;;  %v11354_v12 = vld [vmem:[%s13770_s9 + $0x210] ss:$8 sps:$4 sm:$0xff]  }
 0x5b1   :  { %7389 = vst [vmem:[#allocation5 + $0x4] sm:$0xf] %v9004_v38  ;;  %7390 = vst [vmem:[#allocation5 + $0x18] sm:$0xf] %v9005_v55  ;;  %v7396_v50 = vpop.permute.xlu0 %7395  ;;  %v7411_v33 = vpop.permute.xlu1 %7410  ;;  %v7232_v60 = vmax.f32 %v7158_v18, 0.0  ;;  %v7233_v27 = vmax.f32 %v7159_v48, 0.0 }
 0x5b2   :  { %v7416_v58 = vsel %vm362_vm0, %v7414_v9, %v7396_v50  ;;  %v11357_v50 = vld [vmem:[%s13770_s9 + $0x200] ss:$8 sps:$4 sm:$0xff]  }
 0x5b3   :  { %v7282_v11 = vpack.c.bf16 %v7233_v27, %v7232_v60 }
 0x5b4   :  { %v11303_v63 = vld [vmem:[#allocation5] ss:$20 sps:$4 sm:$0xff]  }
 0x5b5   :  { %v7399_v7 = vpop.permute.xlu0 %7398  ;;  %v7438_v20 = vpop.permute.xlu1 %7437 }
 0x5b6   :  { %v7418_v21 = vsel %vm7322_vm2, %v7416_v58, %v7399_v7  ;;  %v7459_v38 = vsel %vm7316_vm1, %v7282_v11, %v7438_v20 }
 0x5b8   :  { %v11305_v8 = vld [vmem:[#allocation5 + $0x4] ss:$20 sps:$4 sm:$0xff]  }
 0x5b9   :  { %v7402_v15 = vpop.permute.xlu0 %7401  ;;  %8069 = vmatprep.mubr.bf16.mxu0 %v11305_v8  ;;  %v7441_v53 = vpop.permute.xlu1 %7440 }
 0x5ba   :  { %8070 = vmatmul.mubr.bf16.vlgmr.msra.gmra.mxu0 %v11303_v63  ;;  %v7420_v46 = vsel %vm7325_vm3, %v7418_v21, %v7402_v15  ;;  %v7461_v55 = vsel %vm362_vm0, %v7459_v38, %v7441_v53 }
 0x5bb   :  { %8124 = vmatpush1.bf16.msra.mxu0 %v11336_v2  ;;  %8155 = vmatprep.mubr.bf16.mxu0 %v14137_v62 }
 0x5bc   :  { %8125 = vmatprep.subr.bf16.mxu0 %v11341_v29 }
 0x5bd   :  { %v7405_v47 = vpop.permute.xlu0 %7404  ;;  %v7444_v10 = vpop.permute.xlu1 %7443 }
 0x5be   :  { %v7422_v45 = vsel %vm7328_vm4, %v7420_v46, %v7405_v47  ;;  %v7463_v19 = vsel %vm7322_vm2, %v7461_v55, %v7444_v10 }
 0x5bf   :  { %8126 = vmatpush1.bf16.msra.mxu0 %v11339_v56 }
 0x5c0   :  { %8127 = vmatprep.subr.bf16.mxu0 %v11344_v43 }
 0x5c1   :  { %v7408_v23 = vpop.permute.xlu0 %7407  ;;  %v7447_v14 = vpop.permute.xlu1 %7446 }
 0x5c2   :  { %v7424_v17 = vsel %vm7331_vm5, %v7422_v45, %v7408_v23  ;;  %v7465_v35 = vsel %vm7325_vm3, %v7463_v19, %v7447_v14  ;;  %v11365_v45 = vld [vmem:[%s13772_s11 + $0x18] sm:$0xff]   ;;  %v11366_v23 = vld [vmem:[%s13772_s11 + $0x10] sm:$0xff]  }
 0x5c3   :  { %v7426_v28 = vsel %vm7334_vm6, %v7424_v17, %v7411_v33  ;;  %8128 = vmatpush1.bf16.msra.mxu0 %v11342_v6  ;;  %v11367_v6 = vld [vmem:[%s13772_s11 + $0x8] sm:$0xff]   ;;  %v11368_v17 = vld [vmem:[%s13772_s11] sm:$0xff]  }
 0x5c4   :  { %v9006_v1 = vcombine.low %v7426_v28, %v7426_v28  ;;  %v9007_v51 = vcombine.high %v7426_v28, %v7426_v28  ;;  %8129 = vmatprep.subr.bf16.mxu0 %v11347_v57  ;;  %v11369_v57 = vld [vmem:[%s13772_s11 + $0x48] sm:$0xff]  }
 0x5c6   :  { %7434 = vst [vmem:[#allocation5 + $0x8] sm:$0xf] %v9006_v1  ;;  %7435 = vst [vmem:[#allocation5 + $0x1c] sm:$0xf] %v9007_v51 }
 0x5c7   :  { %8130 = vmatpush1.bf16.msra.mxu0 %v11345_v3  ;;  %v7599_v3 = vld [vmem:[%s13774_s10] sm:$0x3] }
 0x5c8   :  { %8131 = vmatprep.subr.bf16.mxu0 %v11350_v34  ;;  %v7450_v22 = vpop.permute.xlu1 %7449 }
 0x5c9   :  { %v7467_v33 = vsel %vm7328_vm4, %v7465_v35, %v7450_v22 }
 0x5cb   :  { %8132 = vmatpush1.bf16.msra.mxu0 %v11348_v52 }
 0x5cc   :  { %8133 = vmatprep.subr.bf16.mxu0 %v11353_v36  ;;  %v7453_v59 = vpop.permute.xlu1 %7452 }
 0x5cd   :  { %v7469_v24 = vsel %vm7331_vm5, %v7467_v33, %v7453_v59  ;;  %v11333_v20 = vld [vmem:[#allocation5 + $0x8] ss:$20 sps:$4 sm:$0xff]  }
 0x5cf   :  { %8134 = vmatpush1.bf16.msra.mxu0 %v11351_v26 }
 0x5d0   :  { %8135 = vmatprep.subr.bf16.mxu0 %v11356_v31 }
 0x5d3   :  { %8136 = vmatpush1.bf16.msra.mxu0 %v11354_v12 }
 0x5d4   :  { %8137 = vmatprep.subr.bf16.mxu0 %v11359_v44 }
 0x5d7   :  { %8138 = vmatpush1.bf16.msra.mxu0 %v11357_v50 }
 0x5d8   :  { %v7456_v7 = vpop.permute.xlu0 %7455  ;;  %10928 = vmatprep.subr.bf16.mxu0 %v11388_v32 }
 0x5d9   :  { %v7471_v16 = vsel %vm7334_vm6, %v7469_v24, %v7456_v7 }
 0x5da   :  { %v9008_v63 = vcombine.low %v7471_v16, %v7471_v16  ;;  %v9009_v0 = vcombine.high %v7471_v16, %v7471_v16 }
 0x5dc   :  { %7479 = vst [vmem:[#allocation5 + $0xc] sm:$0xf] %v9008_v63  ;;  %7480 = vst [vmem:[#allocation5 + $0x20] sm:$0xf] %v9009_v0 }
 0x5e3   :  { %v11335_v15 = vld [vmem:[#allocation5 + $0xc] ss:$20 sps:$4 sm:$0xff]  }
 0x5e4   :  { %8112 = vmatprep.mubr.bf16.mxu1 %v11335_v15  ;;  %v11374_v15 = vld [vmem:[%s13773_s13 + $0x8] sm:$0xff]  }
 0x5e5   :  { %8113 = vmatmul.mubr.bf16.vlgmr.msra.gmra.mxu1 %v11333_v20  ;;  %v11373_v20 = vld [vmem:[%s13773_s13 + $0x10] sm:$0xff]  }
 0x5ee   :  { %v7486_v2 = vpop.permute.xlu1 %7485 }
 0x5f0   :  { %v7483_v8 = vpop.permute.xlu0 %7482 }
 0x5f1   :  { %v7495_v29 = vsel %vm7316_vm1, %v13586_v61, %v7483_v8  ;;  %v11361_v61 = vld [vmem:[%s13772_s11 + $0x38] sm:$0xff]   ;;  %v11375_v8 = vld [vmem:[%s13773_s13] sm:$0xff]  }
 0x5f2   :  { %v7497_v9 = vsel %vm362_vm0, %v7495_v29, %v7486_v2  ;;  %8263 = vmatpush1.bf16.msra.mxu1 %v11361_v61  ;;  %v20_v2 = vstv %s13775_s14  ;;  %v9097_v29 = vld [vmem:[%s13776_s12] ss:$0 sm:$0xff] }
 0x5f3   :  { %8264 = vmatprep.subr.bf16.mxu1 %v14137_v62  ;;  %21 = vst [vmem:[#allocation6] sm:$0x1] %v20_v2 }
 0x5f6   :  { %8265 = vmatpush1.bf16.msra.mxu1 %v11362_v42 }
 0x5f7   :  { %8266 = vmatprep.subr.bf16.mxu1 %v14137_v62 }
 0x5fa   :  { %8267 = vmatpush1.bf16.msra.mxu1 %v11363_v30  ;;  %v9109_v61 = vld [vmem:[#allocation6] ss:$0 sm:$0xff] }
 0x5fb   :  { %8268 = vmatprep.subr.bf16.mxu1 %v14137_v62 }
 0x5fe   :  { %8269 = vmatpush1.bf16.msra.mxu1 %v11364_v40 }
 0x5ff   :  { %8270 = vmatprep.subr.bf16.mxu1 %v14137_v62 }
 0x602   :  { %8271 = vmatpush1.bf16.msra.mxu1 %v11365_v45 }
 0x603   :  { %8272 = vmatprep.subr.bf16.mxu1 %v14137_v62 }
 0x606   :  { %v7492_v47 = vpop.permute.xlu1 %7491  ;;  %8273 = vmatpush1.bf16.msra.mxu1 %v11366_v23 }
 0x607   :  { %8274 = vmatprep.subr.bf16.mxu1 %v14137_v62 }
 0x608   :  { %v7489_v54 = vpop.permute.xlu0 %7488 }
 0x609   :  { %v7499_v56 = vsel %vm7322_vm2, %v7497_v9, %v7489_v54 }
 0x60a   :  { %v7501_v58 = vsel %vm7325_vm3, %v7499_v56, %v7492_v47  ;;  %8275 = vmatpush1.bf16.msra.mxu1 %v11367_v6 }
 0x60b   :  { %v7503_v43 = vsel %vm7328_vm4, %v7501_v58, 0  ;;  %8276 = vmatprep.subr.bf16.mxu1 %v14137_v62 }
 0x60c   :  { %v9010_v21 = vcombine.low %v7503_v43, %v7503_v43  ;;  %v9011_v53 = vcombine.high %v7503_v43, %v7503_v43 }
 0x60e   :  { %7511 = vst [vmem:[#allocation5 + $0x10] sm:$0xf] %v9010_v21  ;;  %7512 = vst [vmem:[#allocation5 + $0x24] sm:$0xf] %v9011_v53  ;;  %8277 = vmatpush1.bf16.msra.mxu1 %v11368_v17 }
 0x60f   :  { %8290 = vmatprep.subr.bf16.mxu1 %v14137_v62 }
 0x612   :  { %8291 = vmatpush2.bf16.msra.mxu1 %v11369_v57 }
 0x613   :  { %8292 = vmatprep.subr.bf16.mxu1 %v14137_v62  ;;  %v7601_v62 = vlaneseq }
 0x615   :  { %v11360_v46 = vld [vmem:[#allocation5 + $0x10] ss:$20 sps:$4 sm:$0xff]   ;;  %v7602_v28 = vshrl.u32 %v7601_v62, 7 }
 0x616   :  { %8156 = vmatmul.mubr.bf16.vlgmr.msra.gmra.mxu0 %v11360_v46  ;;  %8293 = vmatpush2.bf16.msra.mxu1 %v11370_v41 }
 0x617   :  { %10929 = vmatpush3.bf16.msra.mxu0 %v11371_v5  ;;  %v7607_v39 = vsub.s32 1, %v7602_v28  ;;  %v7603_v37 = vsub.s32 0, %v7602_v28  ;;  %10938 = vmatprep.mubr.msk.bf16.mxu0 %vm11389_vm7, %v11388_v32 }
 0x618   :  { %10930 = vmatprep.subr.bf16.mxu0 %v11388_v32 }
 0x619   :  { %v7608_v34 = vrot.slane %v7599_v3, %v7607_v39  ;;  %v7604_v25 = vrot.slane %v7599_v3, %v7603_v37 }
 0x61b   :  { %10931 = vmatpush3.bf16.msra.mxu0 %v11372_v49 }
 0x61c   :  { %10932 = vmatprep.subr.bf16.mxu0 %v11388_v32 }
 0x61f   :  { %10933 = vmatpush3.bf16.msra.mxu0 %v11373_v20 }
 0x620   :  { %10934 = vmatprep.subr.bf16.mxu0 %v11388_v32 }
 0x623   :  { %10935 = vmatpush3.bf16.msra.mxu0 %v11374_v15 }
 0x624   :  { %10936 = vmatprep.subr.bf16.mxu0 %v11388_v32 }
 0x627   :  { %10937 = vmatpush3.bf16.msra.mxu0 %v11375_v8 }
 0x67a   :  { %v8071_v13 = vpop.f32.mrf.mxu0 }
 0x67b   :  { %v8072_v60 = vadd.f32 %v8071_v13, %v7604_v25 }
 0x67c   :  { %v8073_v1 = vpop.f32.mrf.mxu0 }
 0x67d   :  { %v8074_v48 = vadd.f32 %v8073_v1, %v7608_v34 }
 0x67e   :  { %v8075_v4 = vpop.f32.mrf.mxu0 }
 0x67f   :  { %v8076_v14 = vadd.f32 %v8075_v4, %v7604_v25 }
 0x680   :  { %v8077_v18 = vpop.f32.mrf.mxu0 }
 0x681   :  { %v8078_v27 = vadd.f32 %v8077_v18, %v7608_v34 }
 0x6a5   :  { %v8114_v51 = vpop.f32.mrf.mxu1 }
 0x6a6   :  { %v8115_v12 = vadd.f32 %v8114_v51, %v8072_v60 }
 0x6a7   :  { %v8116_v10 = vpop.f32.mrf.mxu1 }
 0x6a8   :  { %v8117_v22 = vadd.f32 %v8116_v10, %v8074_v48 }
 0x6a9   :  { %v8118_v52 = vpop.f32.mrf.mxu1 }
 0x6aa   :  { %v8119_v11 = vadd.f32 %v8118_v52, %v8076_v14 }
 0x6ab   :  { %v8120_v26 = vpop.f32.mrf.mxu1 }
 0x6ac   :  { %v8121_v38 = vadd.f32 %v8120_v26, %v8078_v27 }
 0x6d6   :  { %v8157_v36 = vpop.f32.mrf.mxu0 }
 0x6d7   :  { %v8158_v59 = vadd.f32 %v8157_v36, %v8115_v12 }
 0x6d8   :  { %v8159_v31 = vpop.f32.mrf.mxu0 }
 0x6d9   :  { %v8160_v55 = vadd.f32 %v8159_v31, %v8117_v22  ;;  %v8166_v16 = vmax.f32 %v8158_v59, 0.0 }
 0x6da   :  { %v8161_v44 = vpop.f32.mrf.mxu0 }
 0x6db   :  { %v8162_v19 = vadd.f32 %v8161_v44, %v8119_v11  ;;  %v8167_v24 = vmax.f32 %v8160_v55, 0.0 }
 0x6dc   :  { %v8163_v50 = vpop.f32.mrf.mxu0 }
 0x6dd   :  { %v8164_v35 = vadd.f32 %v8163_v50, %v8121_v38  ;;  %v8168_v33 = vmax.f32 %v8162_v19, 0.0 }
 0x6df   :  { %v8169_v7 = vmax.f32 %v8164_v35, 0.0  ;;  %v8170_v0 = vpack.c.bf16 %v8168_v33, %v8166_v16 }
 0x6e1   :  { %v8171_v63 = vpack.c.bf16 %v8169_v7, %v8167_v24 }
 0x6e3   :  { %9108 = vmatprep.mubr.msk.bf16.mxu1 %vm362_vm0, %v8171_v63 }
 0x6e4   :  { %8295 = vmatmul.mubr.bf16.vlgmr.msra.gmra.mxu1 %v8170_v0 }
 0x7a4   :  { %v8296_v54 = vpop.f32.mrf.mxu1 }
 0x7a5   :  { %v8297_v47 = vadd.f32 %v9097_v29, %v8296_v54 }
 0x7a6   :  { %v8298_v9 = vpop.f32.mrf.mxu1 }
 0x7a7   :  { %v8303_v21 = vmax.f32 %v8297_v47, 0.0 }
 0x7a8   :  { %v8299_v56 = vpop.f32.mrf.mxu1 }
 0x7a9   :  { %v8300_v58 = vadd.f32 %v9097_v29, %v8299_v56 }
 0x7aa   :  { %v8301_v43 = vpop.f32.mrf.mxu1 }
 0x7ab   :  { %v8304_v53 = vmax.f32 %v8300_v58, 0.0 }
 0x7ad   :  { %v8305_v46 = vpack.c.bf16 %v8304_v53, %v8303_v21 }
 0x7af   :  { %10939 = vmatmul.mubr.msk.bf16.vlgmr.msra.gmra.mxu0 %vm7328_vm4, %v8305_v46 }
 0x86f   :  { %v8390_v42 = vpop.f32.mrf.mxu0 }
 0x870   :  { %v8391_v30 = vadd.f32 %v9109_v61, %v8390_v42 }
 0x871   :  { %v10940_v40 = vpop.f32.mrf.mxu0 }
 0x872   :  { %8398 = vst.msk [vmem:[%s13777_s15] sm:$0xff] %vm8397_vm8, %v8391_v30 }
 0x873   :  { %v8393_v45 = vpop.f32.mrf.mxu0 }
 0x874   :  { %v8394_v23 = vadd.f32 %v9109_v61, %v8393_v45 }
 0x875   :  { %v10941_v6 = vpop.f32.mrf.mxu0 }
 0x876   :  { %8399 = vst.msk [vmem:[%s13777_s15 + $0x8] sm:$0xff] %vm8397_vm8, %v8394_v23 }

</bundles_post_ra>
